<compile_context>
chip_gen: v7x
topology: tpu7x:2x2x1
jax: 0.10.0
libtpu: 0.0.40
codegen_flags: <defaults>
</compile_context>

<pallas_src>
import jax
import jax.numpy as jnp
from jax.experimental import pallas as pl
from jax.experimental.pallas import tpu as pltpu


def domain_kernel(x_ref, w1_ref, b1_ref, w2_ref, b2_ref, w3_ref, b3_ref, o_ref):
    # GRL is identity in forward; dropout is identity at eval.
    x = x_ref[...]
    x_bf = x if x.dtype == jnp.bfloat16 else x.astype(jnp.bfloat16)

    # fc1: bf16 operands on the MXU, f32 accumulation; bias + ReLU in f32.
    h1 = jnp.dot(x_bf, w1_ref[...], preferred_element_type=jnp.float32)
    h1 = jnp.maximum(h1 + b1_ref[...], 0.0)

    # fc2
    h2 = jnp.dot(h1.astype(jnp.bfloat16), w2_ref[...],
                 preferred_element_type=jnp.float32)
    h2 = jnp.maximum(h2 + b2_ref[...], 0.0)

    # fc3: contract h2's hidden axis against w3 (1, hidden) on the MXU.  The
    # (1, block_bs) result is lane-dense (batch on the lane axis), so the output
    # store is an unmasked, wide vst instead of a 1-lane masked store.
    logits = jnp.einsum("oh,bh->ob", w3_ref[...], h2.astype(jnp.bfloat16),
                        preferred_element_type=jnp.float32)
    logits = logits + b3_ref[...]                     # (1,1) broadcast

    # Numerically stable sigmoid (no inf intermediate for large |logits|).
    z = jnp.exp(-jnp.abs(logits))
    sig = jnp.where(logits >= 0.0, 1.0 / (1.0 + z), z / (1.0 + z))
    o_ref[...] = sig.astype(o_ref.dtype)


def domain_forward(x, alpha, params, *, block_bs=512):
    """Domain classifier forward. `alpha` only affects the GRL backward pass;
    forward is identity, so it is unused here."""
    del alpha
    w1, b1, w2, b2, w3, b3 = params
    bs, in_features = x.shape
    hidden = w1.shape[1]

    block_bs = min(block_bs, bs)
    # v7x megacore: ensure the "parallel" batch axis has >= 2 grid steps when the
    # batch is big enough, so both TensorCores get work (weights get replicated
    # into each core's VMEM once — negligible vs HBM bandwidth).
    if bs >= 512 and pl.cdiv(bs, block_bs) < 2:
        block_bs = 256 * max(1, pl.cdiv(bs, 2) // 256)
    grid = (pl.cdiv(bs, block_bs),)
    # NOTE: when bs % block_bs != 0 the last step computes on padded rows; the
    # stable sigmoid keeps them finite and Pallas masks the output writeback.

    # Weights/biases: constant block index across the batch grid -> VMEM-resident,
    # DMA'd exactly once; single-buffered because they are never revisited.
    def resident(shape):
        return pl.BlockSpec(shape, lambda i: (0,) * len(shape),
                            pipeline_mode=pl.Buffered(1))

    flops = 2 * bs * (in_features * hidden + hidden * hidden + hidden)
    bytes_accessed = (
        x.size * x.dtype.itemsize
        + sum(int(a.size) * a.dtype.itemsize for a in (w1, b1, w2, b2, w3, b3))
        + bs * 4
    )
    cost = pl.CostEstimate(flops=flops, transcendentals=bs,
                           bytes_accessed=bytes_accessed)

    out_row = pl.pallas_call(
        domain_kernel,
        out_shape=jax.ShapeDtypeStruct((1, bs), jnp.float32),
        grid_spec=pltpu.PrefetchScalarGridSpec(
            num_scalar_prefetch=0,
            grid=grid,
            in_specs=[
                pl.BlockSpec((block_bs, in_features), lambda i: (i, 0)),  # x tile
                resident((in_features, hidden)),   # w1 (bf16)
                resident((1, hidden)),             # b1 (f32)
                resident((hidden, hidden)),        # w2 (bf16)
                resident((1, hidden)),             # b2 (f32)
                resident((1, hidden)),             # w3 as a row (bf16)
                resident((1, 1)),                  # b3 (f32)
            ],
            out_specs=pl.BlockSpec((1, block_bs), lambda i: (0, i)),
        ),
        compiler_params=pltpu.CompilerParams(
            dimension_semantics=("parallel",),
            vmem_limit_bytes=32 << 20,
        ),
        cost_estimate=cost,
    )(x, w1, b1, w2, b2, w3, b3)

    # Kernel emits a lane-dense (1, bs) row; present the module's (bs, 1) column.
    return out_row.reshape(bs, 1)


def init_params(key, in_features=256, hidden_size=1024):
    """Deterministic init matching Domain.init_weight():
       fc1/fc2 weights ~ N(0, 0.01), fc3 weight ~ N(0, 0.3),
       biases follow nn.Linear default U(-1/sqrt(fan_in), 1/sqrt(fan_in)).
       Weights are stored bf16 (streamed to the MXU), biases stay f32."""
    k1, k2, k3, kb1, kb2, kb3 = jax.random.split(key, 6)
    w1 = (0.01 * jax.random.normal(k1, (in_features, hidden_size), jnp.float32)
          ).astype(jnp.bfloat16)
    w2 = (0.01 * jax.random.normal(k2, (hidden_size, hidden_size), jnp.float32)
          ).astype(jnp.bfloat16)
    w3 = (0.30 * jax.random.normal(k3, (1, hidden_size), jnp.float32)
          ).astype(jnp.bfloat16)                   # fc3 weight as a (1, hidden) row
    bound1 = 1.0 / jnp.sqrt(in_features)
    bound2 = 1.0 / jnp.sqrt(hidden_size)
    b1 = jax.random.uniform(kb1, (1, hidden_size), jnp.float32, -bound1, bound1)
    b2 = jax.random.uniform(kb2, (1, hidden_size), jnp.float32, -bound2, bound2)
    b3 = jax.random.uniform(kb3, (1, 1), jnp.float32, -bound2, bound2)
    return (w1, b1, w2, b2, w3, b3)


if __name__ == "__main__":
    key = jax.random.PRNGKey(0)
    kx, kp = jax.random.split(key)

    bs, in_features, hidden_size = 8, 256, 1024
    x = jax.random.normal(kx, (bs, in_features), jnp.float32)
    alpha = 0.5  # GRL ratio; forward is identity w.r.t. alpha
    params = init_params(kp, in_features, hidden_size)

    out = domain_forward(x, alpha, params)
    out = jax.block_until_ready(out)

    # Reference check in plain JAX with the same bf16-weight / f32-accum arithmetic.
    # (Weights are bf16 by design; divergence from an f32 master-weight reference is
    #  ~1e-3 relative and acceptable for this classifier head.)
    w1, b1, w2, b2, w3, b3 = params
    xb = x.astype(jnp.bfloat16)
    h1 = jnp.maximum(jnp.dot(xb, w1, preferred_element_type=jnp.float32) + b1, 0.0)
    h2 = jnp.maximum(
        jnp.dot(h1.astype(jnp.bfloat16), w2, preferred_element_type=jnp.float32) + b2,
        0.0)
    logits = jnp.einsum("bh,oh->bo", h2.astype(jnp.bfloat16), w3,
                        preferred_element_type=jnp.float32) + b3
    ref = jax.nn.sigmoid(logits)

    assert out.shape == (bs, 1)
    assert jnp.allclose(out, ref, atol=2e-3, rtol=2e-3), (
        float(jnp.max(jnp.abs(out - ref))))

    print("KERNEL_OK")
</pallas_src>

<mosaic_0001>
module attributes {stable_mosaic.version = 11 : i64} {
  func.func @domain_kernel(%arg0: i32, %arg1: memref<8x256xf32, #tpu.memory_space<vmem>>, %arg2: memref<256x1024xbf16, #tpu.memory_space<vmem>>, %arg3: memref<1x1024xf32, #tpu.memory_space<vmem>>, %arg4: memref<1024x1024xbf16, #tpu.memory_space<vmem>>, %arg5: memref<1x1024xf32, #tpu.memory_space<vmem>>, %arg6: memref<1x1024xbf16, #tpu.memory_space<vmem>>, %arg7: memref<1x1xf32, #tpu.memory_space<vmem>>, %arg8: memref<1x8xf32, #tpu.memory_space<vmem>>) attributes {dimension_semantics = [#tpu.dimension_semantics<parallel>], iteration_bounds = array<i64: 1>, scalar_prefetch = 0 : i64, scratch_operands = 0 : i64, tpu.core_type = #tpu.core_type<tc>, window_params = [{transform_indices = @transform_0, window_bounds = array<i64: 8, 256>}, {pipeline_mode = #tpu.pipeline_mode<synchronous>, transform_indices = @transform_1, window_bounds = array<i64: 256, 1024>}, {pipeline_mode = #tpu.pipeline_mode<synchronous>, transform_indices = @transform_2, window_bounds = array<i64: 1, 1024>}, {pipeline_mode = #tpu.pipeline_mode<synchronous>, transform_indices = @transform_3, window_bounds = array<i64: 1024, 1024>}, {pipeline_mode = #tpu.pipeline_mode<synchronous>, transform_indices = @transform_4, window_bounds = array<i64: 1, 1024>}, {pipeline_mode = #tpu.pipeline_mode<synchronous>, transform_indices = @transform_5, window_bounds = array<i64: 1, 1024>}, {pipeline_mode = #tpu.pipeline_mode<synchronous>, transform_indices = @transform_6, window_bounds = array<i64: 1, 1>}, {transform_indices = @transform_7, window_bounds = array<i64: 1, 8>}]} {
    %c0 = arith.constant 0 : index
    %c0_0 = arith.constant 0 : index
    %0 = vector.load %arg1[%c0, %c0_0] : memref<8x256xf32, #tpu.memory_space<vmem>>, vector<8x256xf32>
    %1 = arith.truncf %0 : vector<8x256xf32> to vector<8x256xbf16>
    %c0_1 = arith.constant 0 : index
    %c0_2 = arith.constant 0 : index
    %2 = vector.load %arg2[%c0_1, %c0_2] : memref<256x1024xbf16, #tpu.memory_space<vmem>>, vector<256x1024xbf16>
    %cst = arith.constant dense<0.000000e+00> : vector<8x1024xf32>
    %3 = tpu.matmul %1, %2, %cst {dimension_numbers = #tpu.dot_dimension_numbers<[1], [0], [0], [1], [0, 0, 1, 1], [], []>} : vector<8x256xbf16>, vector<256x1024xbf16>, vector<8x1024xf32> -> vector<8x1024xf32>
    %c0_3 = arith.constant 0 : index
    %c0_4 = arith.constant 0 : index
    %4 = vector.load %arg3[%c0_3, %c0_4] : memref<1x1024xf32, #tpu.memory_space<vmem>>, vector<1x1024xf32>
    %5 = vector.broadcast %4 : vector<1x1024xf32> to vector<8x1024xf32>
    %6 = arith.addf %3, %5 : vector<8x1024xf32>
    %cst_5 = arith.constant 0.000000e+00 : f32
    %7 = vector.broadcast %cst_5 : f32 to vector<8x1024xf32>
    %8 = arith.maximumf %6, %7 : vector<8x1024xf32>
    %9 = arith.truncf %8 : vector<8x1024xf32> to vector<8x1024xbf16>
    %c0_6 = arith.constant 0 : index
    %c0_7 = arith.constant 0 : index
    %10 = vector.load %arg4[%c0_6, %c0_7] : memref<1024x1024xbf16, #tpu.memory_space<vmem>>, vector<1024x1024xbf16>
    %cst_8 = arith.constant dense<0.000000e+00> : vector<8x1024xf32>
    %11 = tpu.matmul %9, %10, %cst_8 {dimension_numbers = #tpu.dot_dimension_numbers<[1], [0], [0], [1], [0, 0, 1, 1], [], []>} : vector<8x1024xbf16>, vector<1024x1024xbf16>, vector<8x1024xf32> -> vector<8x1024xf32>
    %c0_9 = arith.constant 0 : index
    %c0_10 = arith.constant 0 : index
    %12 = vector.load %arg5[%c0_9, %c0_10] : memref<1x1024xf32, #tpu.memory_space<vmem>>, vector<1x1024xf32>
    %13 = vector.broadcast %12 : vector<1x1024xf32> to vector<8x1024xf32>
    %14 = arith.addf %11, %13 : vector<8x1024xf32>
    %cst_11 = arith.constant 0.000000e+00 : f32
    %15 = vector.broadcast %cst_11 : f32 to vector<8x1024xf32>
    %16 = arith.maximumf %14, %15 : vector<8x1024xf32>
    %c0_12 = arith.constant 0 : index
    %c0_13 = arith.constant 0 : index
    %17 = vector.load %arg6[%c0_12, %c0_13] : memref<1x1024xbf16, #tpu.memory_space<vmem>>, vector<1x1024xbf16>
    %18 = arith.truncf %16 : vector<8x1024xf32> to vector<8x1024xbf16>
    "tpu.trace_start"() <{level = 10 : i32, message = "oh,bh->ob"}> : () -> ()
    %cst_14 = arith.constant dense<0.000000e+00> : vector<1x8xf32>
    %19 = tpu.matmul %17, %18, %cst_14 {dimension_numbers = #tpu.dot_dimension_numbers<[1], [1], [0], [0], [0, 0, 1, 0], [], []>} : vector<1x1024xbf16>, vector<8x1024xbf16>, vector<1x8xf32> -> vector<1x8xf32>
    "tpu.trace_stop"() : () -> ()
    %c0_15 = arith.constant 0 : index
    %c0_16 = arith.constant 0 : index
    %20 = vector.load %arg7[%c0_15, %c0_16] : memref<1x1xf32, #tpu.memory_space<vmem>>, vector<1x1xf32>
    %21 = vector.broadcast %20 : vector<1x1xf32> to vector<1x8xf32>
    %22 = arith.addf %19, %21 : vector<1x8xf32>
    %23 = math.absf %22 : vector<1x8xf32>
    %cst_17 = arith.constant 0.000000e+00 : f32
    %24 = vector.broadcast %cst_17 : f32 to vector<1x8xf32>
    %25 = arith.subf %24, %23 : vector<1x8xf32>
    %26 = math.exp %25 : vector<1x8xf32>
    %cst_18 = arith.constant 0.000000e+00 : f32
    %27 = vector.broadcast %cst_18 : f32 to vector<1x8xf32>
    %28 = arith.cmpf oge, %22, %27 : vector<1x8xf32>
    %cst_19 = arith.constant 1.000000e+00 : f32
    %29 = vector.broadcast %cst_19 : f32 to vector<1x8xf32>
    %30 = arith.addf %29, %26 : vector<1x8xf32>
    %cst_20 = arith.constant 1.000000e+00 : f32
    %31 = vector.broadcast %cst_20 : f32 to vector<1x8xf32>
    %32 = arith.divf %31, %30 : vector<1x8xf32>
    %cst_21 = arith.constant 1.000000e+00 : f32
    %33 = vector.broadcast %cst_21 : f32 to vector<1x8xf32>
    %34 = arith.addf %33, %26 : vector<1x8xf32>
    %35 = arith.divf %26, %34 : vector<1x8xf32>
    %36 = arith.select %28, %32, %35 : vector<1x8xi1>, vector<1x8xf32>
    %c0_22 = arith.constant 0 : index
    %c0_23 = arith.constant 0 : index
    %37 = vector.load %arg8[%c0_22, %c0_23] : memref<1x8xf32, #tpu.memory_space<vmem>>, vector<1x8xf32>
    tpu.vector_store %arg8[%c0_22, %c0_23], %36 {strides = array<i32>} : memref<1x8xf32, #tpu.memory_space<vmem>>, vector<1x8xf32>,
    return
  }
  func.func @transform_0(%arg0: i32) -> (i32, i32) {
    %c0_i32 = arith.constant 0 : i32
    %c0_i32_0 = arith.constant 0 : i32
    return %arg0, %c0_i32 : i32, i32
  }
  func.func @transform_1(%arg0: i32) -> (i32, i32) {
    %c0_i32 = arith.constant 0 : i32
    %c0_i32_0 = arith.constant 0 : i32
    %c0_i32_1 = arith.constant 0 : i32
    return %c0_i32, %c0_i32_0 : i32, i32
  }
  func.func @transform_2(%arg0: i32) -> (i32, i32) {
    %c0_i32 = arith.constant 0 : i32
    %c0_i32_0 = arith.constant 0 : i32
    %c0_i32_1 = arith.constant 0 : i32
    return %c0_i32, %c0_i32_0 : i32, i32
  }
  func.func @transform_3(%arg0: i32) -> (i32, i32) {
    %c0_i32 = arith.constant 0 : i32
    %c0_i32_0 = arith.constant 0 : i32
    %c0_i32_1 = arith.constant 0 : i32
    return %c0_i32, %c0_i32_0 : i32, i32
  }
  func.func @transform_4(%arg0: i32) -> (i32, i32) {
    %c0_i32 = arith.constant 0 : i32
    %c0_i32_0 = arith.constant 0 : i32
    %c0_i32_1 = arith.constant 0 : i32
    return %c0_i32, %c0_i32_0 : i32, i32
  }
  func.func @transform_5(%arg0: i32) -> (i32, i32) {
    %c0_i32 = arith.constant 0 : i32
    %c0_i32_0 = arith.constant 0 : i32
    %c0_i32_1 = arith.constant 0 : i32
    return %c0_i32, %c0_i32_0 : i32, i32
  }
  func.func @transform_6(%arg0: i32) -> (i32, i32) {
    %c0_i32 = arith.constant 0 : i32
    %c0_i32_0 = arith.constant 0 : i32
    %c0_i32_1 = arith.constant 0 : i32
    return %c0_i32, %c0_i32_0 : i32, i32
  }
  func.func @transform_7(%arg0: i32) -> (i32, i32) {
    %c0_i32 = arith.constant 0 : i32
    %c0_i32_0 = arith.constant 0 : i32
    return %c0_i32, %arg0 : i32, i32
  }
}

</mosaic_0001>

<bundles_post_ra>
// kernel: tpu_custom_call.1
= control target key start
LH: loop header
LB: loop body
LE: loop exit
PB: predicated region body
PF: predicated region fallthrough
CT: control target
= control target key end

     0   :  { %s6346_s0 = inlined_call_operand.hbm [shape: f32[8,256], index: 0, kind: input, shape index: {}]   ;;  %s6347_s1 = inlined_call_operand.hbm [shape: bf16[256,1024], index: 1, kind: input, shape index: {}]   ;;  %s6348_s2 = inlined_call_operand.hbm [shape: f32[1,1024], index: 2, kind: input, shape index: {}]   ;;  %s6349_s3 = inlined_call_operand.hbm [shape: bf16[1024,1024], index: 3, kind: input, shape index: {}]   ;;  %s6350_s4 = inlined_call_operand.hbm [shape: f32[1,1024], index: 4, kind: input, shape index: {}]   ;;  %s6351_s5 = inlined_call_operand.hbm [shape: bf16[1,1024], index: 5, kind: input, shape index: {}]   ;;  %s6352_s6 = inlined_call_operand.<no memory space> [shape: f32[1,1], index: 6, kind: input, shape index: {}]   ;;  %s6353_s7 = inlined_call_operand.hbm [shape: f32[1,8], index: 7, kind: output, shape index: {}]  }
   0x1   :  { %v12_v0 = vstv %s6352_s6 }
   0x2   :  { %13 = vst [vmem:[#allocation2] sm:$0x1] %v12_v0 }
   0x3   :  { %14 = vsyncpa [#allocation4], 0 }
   0x4   :  { %15 = vsyncpa [#allocation7], 0 }
   0x5   :  { %16 = vsyncpa [#allocation10], 0 }
   0x6   :  { %17 = vsyncpa [#allocation13], 0 }
   0x7   :  { %18 = vsyncpa [#allocation5], 0  ;;  %s6031_s26 = smov [#allocation6]   ;;  %s5867_s30 = scalar_lea.hbm %s6347_s1, 16384 }
   0x8   :  { %s34_s27 = sshll.u32 %s6031_s26, 4  ;;  %p5868_p0 = scmp.ne.s32.totalorder %s6347_s1, %s5867_s30  ;;  %s35_s27 = int_to_ptr.vmem [resolvable:$true] %s34_s27 }
   0x9   :  { %p5871_p1 = scmp.lt.u32.totalorder %s5867_s30, %s6347_s1 }
   0xb   :  { %p5873_p2 = pnand %p5871_p1, %p5868_p0 }
   0xd   :  { %5876 = shalt.err (!%p5873_p2)
}
   0xe   :  { %s5877_s6 = scalar_lea.vmem %s35_s27, 16384  ;;  %p5882_p4 = scmp.lt.s32.totalorder %s35_s27, %s35_s27 }
   0xf   :  { %p5878_p3 = scmp.ne.s32.totalorder %s35_s27, %s5877_s6  ;;  %p5883_p5 = scmp.lt.s32.totalorder %s5877_s6, %s5877_s6 }
  0x11   :  { %p5884_p6 = por %p5883_p5, %p5882_p4 }
  0x13   :  { %p5885_p7 = pnand %p5884_p6, %p5878_p3 }
  0x15   :  { %5888 = shalt.err (!%p5885_p7)
}
  0x16   :  { %s6032_s12 = smov 512   ;;  %s6033_s13 = smov 32  }
  0x17   :  { %40 = dma.hbm_to_vmem [thread:$0]  %s6347_s1, 16384, %s35_s27, [#allocation7], %s6032_s12, %s6032_s12, %s6033_s13  }
  0x18   :  { %s6034_s16 = smov [#allocation9]   ;;  %s6035_s18 = smov [#allocation3]  }
  0x19   :  { %s56_s17 = sshll.u32 %s6034_s16, 4  ;;  %s25_s19 = sshll.u32 %s6035_s18, 4  ;;  %s57_s17 = int_to_ptr.vmem [resolvable:$true] %s56_s17  ;;  %s26_s19 = int_to_ptr.vmem [resolvable:$true] %s25_s19 }
  0x1a   :  { %s5889_s22 = scalar_lea.hbm %s6349_s3, 65536 }
  0x1b   :  { %p5890_p8 = scmp.ne.s32.totalorder %s6349_s3, %s5889_s22  ;;  %p5893_p9 = scmp.lt.u32.totalorder %s5889_s22, %s6349_s3 }
  0x1d   :  { %p5895_p10 = pnand %p5893_p9, %p5890_p8 }
  0x1f   :  { %5898 = shalt.err (!%p5895_p10)
}
  0x20   :  { %s5899_s1 = scalar_lea.vmem %s57_s17, 65536  ;;  %p5904_p12 = scmp.lt.s32.totalorder %s57_s17, %s57_s17 }
  0x21   :  { %p5900_p11 = scmp.ne.s32.totalorder %s57_s17, %s5899_s1  ;;  %p5905_p13 = scmp.lt.s32.totalorder %s5899_s1, %s5899_s1 }
  0x23   :  { %p5906_p0 = por %p5905_p13, %p5904_p12 }
  0x25   :  { %p5907_p1 = pnand %p5906_p0, %p5900_p11 }
  0x27   :  { %5910 = shalt.err (!%p5907_p1)
}
  0x28   :  { %62 = dma.hbm_to_vmem [thread:$0]  %s6349_s3, 65536, %s57_s17, [#allocation10], %s6032_s12, %s6032_s12, %s6033_s13  }
  0x29   :  { %s5911_s8 = scalar_lea.hbm %s6346_s0, 256 }
  0x2a   :  { %p5912_p2 = scmp.ne.s32.totalorder %s6346_s0, %s5911_s8  ;;  %p5915_p3 = scmp.lt.u32.totalorder %s5911_s8, %s6346_s0 }
  0x2c   :  { %p5917_p4 = pnand %p5915_p3, %p5912_p2 }
  0x2e   :  { %5920 = shalt.err (!%p5917_p4)
}
  0x2f   :  { %s5921_s14 = scalar_lea.vmem %s26_s19, 256  ;;  %p5926_p6 = scmp.lt.s32.totalorder %s26_s19, %s26_s19 }
  0x30   :  { %p5922_p5 = scmp.ne.s32.totalorder %s26_s19, %s5921_s14  ;;  %p5927_p7 = scmp.lt.s32.totalorder %s5921_s14, %s5921_s14 }
  0x32   :  { %p5928_p8 = por %p5927_p7, %p5926_p6 }
  0x34   :  { %p5929_p9 = pnand %p5928_p8, %p5922_p5 }
  0x36   :  { %5932 = shalt.err (!%p5929_p9)
}
  0x37   :  { %28 = dma.hbm_to_vmem [thread:$0]  %s6346_s0, 256, %s26_s19, [#allocation4]  }
  0x38   :  { %s6036_s13 = smov [#allocation8]   ;;  %s6037_s16 = smov [#allocation11]  }
  0x39   :  { %s47_s15 = sshll.u32 %s6036_s13, 4  ;;  %s69_s17 = sshll.u32 %s6037_s16, 4  ;;  %s48_s15 = int_to_ptr.vmem [resolvable:$true] %s47_s15  ;;  %s70_s17 = int_to_ptr.vmem [resolvable:$true] %s69_s17 }
  0x3a   :  { %s5933_s21 = scalar_lea.hbm %s6348_s2, 128 }
  0x3b   :  { %p5934_p10 = scmp.ne.s32.totalorder %s6348_s2, %s5933_s21  ;;  %p5937_p11 = scmp.lt.u32.totalorder %s5933_s21, %s6348_s2 }
  0x3d   :  { %p5939_p12 = pnand %p5937_p11, %p5934_p10 }
  0x3f   :  { %5942 = shalt.err (!%p5939_p12)
}
  0x40   :  { %s5943_s0 = scalar_lea.vmem %s48_s15, 128  ;;  %p5948_p0 = scmp.lt.s32.totalorder %s48_s15, %s48_s15 }
  0x41   :  { %p5944_p13 = scmp.ne.s32.totalorder %s48_s15, %s5943_s0  ;;  %p5949_p1 = scmp.lt.s32.totalorder %s5943_s0, %s5943_s0 }
  0x43   :  { %p5950_p2 = por %p5949_p1, %p5948_p0 }
  0x45   :  { %p5951_p3 = pnand %p5950_p2, %p5944_p13 }
  0x47   :  { %5954 = shalt.err (!%p5951_p3)
}
  0x48   :  { %50 = dma.hbm_to_vmem [thread:$0]  %s6348_s2, 128, %s48_s15, [#allocation7]  }
  0x49   :  { %s5955_s28 = scalar_lea.hbm %s6350_s4, 128 }
  0x4a   :  { %p5956_p4 = scmp.ne.s32.totalorder %s6350_s4, %s5955_s28  ;;  %p5959_p5 = scmp.lt.u32.totalorder %s5955_s28, %s6350_s4 }
  0x4c   :  { %p5961_p6 = pnand %p5959_p5, %p5956_p4 }
  0x4e   :  { %5964 = shalt.err (!%p5961_p6)
}
  0x4f   :  { %s5965_s10 = scalar_lea.vmem %s70_s17, 128  ;;  %p5970_p8 = scmp.lt.s32.totalorder %s70_s17, %s70_s17 }
  0x50   :  { %p5966_p7 = scmp.ne.s32.totalorder %s70_s17, %s5965_s10  ;;  %p5971_p9 = scmp.lt.s32.totalorder %s5965_s10, %s5965_s10 }
  0x52   :  { %p5972_p10 = por %p5971_p9, %p5970_p8 }
  0x54   :  { %p5973_p11 = pnand %p5972_p10, %p5966_p7 }
  0x56   :  { %5976 = shalt.err (!%p5973_p11)
}
  0x57   :  { %72 = dma.hbm_to_vmem [thread:$0]  %s6350_s4, 128, %s70_s17, [#allocation10]  }
  0x58   :  { %s6038_s6 = smov [#allocation12]   ;;  %s5977_s13 = scalar_lea.hbm %s6351_s5, 128 }
  0x59   :  { %s79_s14 = sshll.u32 %s6038_s6, 4  ;;  %p5978_p12 = scmp.ne.s32.totalorder %s6351_s5, %s5977_s13  ;;  %s80_s14 = int_to_ptr.vmem [resolvable:$true] %s79_s14 }
  0x5a   :  { %p5981_p13 = scmp.lt.u32.totalorder %s5977_s13, %s6351_s5 }
  0x5c   :  { %p5983_p0 = pnand %p5981_p13, %p5978_p12 }
  0x5e   :  { %5986 = shalt.err (!%p5983_p0)
}
  0x5f   :  { %s5987_s21 = scalar_lea.vmem %s80_s14, 128  ;;  %p5992_p2 = scmp.lt.s32.totalorder %s80_s14, %s80_s14 }
  0x60   :  { %p5988_p1 = scmp.ne.s32.totalorder %s80_s14, %s5987_s21  ;;  %p5993_p3 = scmp.lt.s32.totalorder %s5987_s21, %s5987_s21 }
  0x62   :  { %p5994_p4 = por %p5993_p3, %p5992_p2 }
  0x64   :  { %p5995_p5 = pnand %p5994_p4, %p5988_p1 }
  0x66   :  { %5998 = shalt.err (!%p5995_p5)
}
  0x67   :  { %82 = dma.hbm_to_vmem [thread:$0]  %s6351_s5, 128, %s80_s14, [#allocation13]  }
  0x68   :  { %6021 = dma.done.wait [#allocation4], 256  }
  0x69   :  { %6022 = vsyncadd [#allocation4], 4294967040 }
  0x6a   :  { %6023 = dma.done.wait [#allocation7], 16512  }
  0x6b   :  { %6024 = vsyncadd [#allocation7], 4294950784 }
  0x6c   :  { %6025 = dma.done.wait [#allocation10], 65664  }
  0x6d   :  { %6026 = vsyncadd [#allocation10], 4294901632 }
  0x6e   :  { %6027 = dma.done.wait [#allocation13], 128  }
  0x6f   :  { %6028 = vsyncadd [#allocation13], 4294967168  ;;  %v108_v1 = vld [vmem:[#allocation6] sm:$0xff]  ;;  %v109_v18 = vld [vmem:[#allocation6 + $0x8] sm:$0xff]  ;;  %s6041_s5 = smov [#allocation14]   ;;  %vm5123_vm0 = vcmask 57344  }
  0x70   :  { %v112_v2 = vld [vmem:[#allocation6 + $0x20] sm:$0xff]  ;;  %v113_v19 = vld [vmem:[#allocation6 + $0x28] sm:$0xff]  ;;  %v105_v20 = vld [vmem:[#allocation3 + $0x8] sm:$0xff]  ;;  %s5131_s22 = sshll.u32 %s6041_s5, 4  ;;  %s5132_s22 = int_to_ptr.vmem [resolvable:$true] %s5131_s22 }
  0x71   :  { %v116_v3 = vld [vmem:[#allocation6 + $0x40] sm:$0xff]  ;;  %v5144_v4 = vcombine.high %v108_v1, %v112_v2  ;;  %v5143_v5 = vcombine.low %v108_v1, %v112_v2  ;;  %v5146_v22 = vcombine.high %v109_v18, %v113_v19  ;;  %v5145_v23 = vcombine.low %v109_v18, %v113_v19  ;;  %v117_v25 = vld [vmem:[#allocation6 + $0x48] sm:$0xff]  ;;  %s5999_s23 = scalar_lea.vmem %s5132_s22, 16  ;;  %s6003_s24 = scalar_lea.vmem %s5132_s22, 32 }
  0x72   :  { %v120_v6 = vld [vmem:[#allocation6 + $0x60] sm:$0xff]  ;;  %v6157_v24 = vpack.c.bf16 %v105_v20, %v105_v20  ;;  %v121_v26 = vld [vmem:[#allocation6 + $0x68] sm:$0xff]  ;;  %p6000_p6 = scmp.ne.s32.totalorder %s5132_s22, %s5999_s23  ;;  %p6004_p7 = scmp.lt.s32.totalorder %s5132_s22, %s5132_s22 }
  0x73   :  { %v5152_v7 = vcombine.high %v116_v3, %v120_v6  ;;  %v124_v8 = vld [vmem:[#allocation6 + $0x80] sm:$0xff]  ;;  %918 = vmatprep.subr.bf16.mxu0 %v5144_v4  ;;  %v5151_v10 = vcombine.low %v116_v3, %v120_v6  ;;  %v5154_v28 = vcombine.high %v117_v25, %v121_v26  ;;  %v125_v29 = vld [vmem:[#allocation6 + $0x88] sm:$0xff]  ;;  %959 = vmatprep.subr.bf16.mxu1 %v5146_v22  ;;  %p6005_p8 = scmp.lt.s32.totalorder %s6003_s24, %s5999_s23 }
  0x74   :  { %v128_v9 = vld [vmem:[#allocation6 + $0xa0] sm:$0xff]  ;;  %919 = vmatpush1.bf16.msra.mxu0 %v5143_v5  ;;  %v129_v30 = vld [vmem:[#allocation6 + $0xa8] sm:$0xff]  ;;  %950 = vmatprep.mubr.bf16.mxu0 %v6157_v24  ;;  %v5153_v33 = vcombine.low %v117_v25, %v121_v26 }
  0x75   :  { %920 = vmatprep.subr.bf16.mxu0 %v5152_v7  ;;  %v5160_v11 = vcombine.high %v124_v8, %v128_v9  ;;  %v132_v12 = vld [vmem:[#allocation6 + $0xc0] sm:$0xff]  ;;  %v5159_v14 = vcombine.low %v124_v8, %v128_v9  ;;  %960 = vmatpush1.bf16.msra.mxu1 %v5145_v23  ;;  %v5162_v35 = vcombine.high %v125_v29, %v129_v30  ;;  %v133_v37 = vld [vmem:[#allocation6 + $0xc8] sm:$0xff]  ;;  %p6006_p9 = por %p6005_p8, %p6004_p7 }
  0x76   :  { %v136_v13 = vld [vmem:[#allocation6 + $0xe0] sm:$0xff]  ;;  %991 = vmatprep.mubr.bf16.mxu1 %v6157_v24  ;;  %961 = vmatprep.subr.bf16.mxu1 %v5154_v28  ;;  %v137_v38 = vld [vmem:[#allocation6 + $0xe8] sm:$0xff]  ;;  %v5161_v41 = vcombine.low %v125_v29, %v129_v30 }
  0x77   :  { %v5168_v15 = vcombine.high %v132_v12, %v136_v13  ;;  %v140_v16 = vld [vmem:[#allocation6 + $0x100] sm:$0xff]  ;;  %v5167_v21 = vcombine.low %v132_v12, %v136_v13  ;;  %v5170_v43 = vcombine.high %v133_v37, %v137_v38  ;;  %v141_v45 = vld [vmem:[#allocation6 + $0x108] sm:$0xff]  ;;  %v5169_v49 = vcombine.low %v133_v37, %v137_v38  ;;  %p6007_p10 = pnand %p6006_p9, %p6000_p6 }
  0x78   :  { %921 = vmatpush1.bf16.msra.mxu0 %v5151_v10  ;;  %v144_v17 = vld [vmem:[#allocation6 + $0x120] sm:$0xff]  ;;  %v145_v46 = vld [vmem:[#allocation6 + $0x128] sm:$0xff] }
  0x79   :  { %922 = vmatprep.subr.bf16.mxu0 %v5160_v11  ;;  %v5176_v27 = vcombine.high %v140_v16, %v144_v17  ;;  %v148_v31 = vld [vmem:[#allocation6 + $0x140] sm:$0xff]  ;;  %v5175_v34 = vcombine.low %v140_v16, %v144_v17  ;;  %962 = vmatpush1.bf16.msra.mxu1 %v5153_v33  ;;  %v5178_v51 = vcombine.high %v141_v45, %v145_v46  ;;  %v149_v53 = vld [vmem:[#allocation6 + $0x148] sm:$0xff] }
  0x7a   :  { %v152_v32 = vld [vmem:[#allocation6 + $0x160] sm:$0xff]  ;;  %963 = vmatprep.subr.bf16.mxu1 %v5162_v35  ;;  %v153_v54 = vld [vmem:[#allocation6 + $0x168] sm:$0xff]  ;;  %v5177_v57 = vcombine.low %v141_v45, %v145_v46 }
  0x7b   :  { %v5184_v36 = vcombine.high %v148_v31, %v152_v32  ;;  %v156_v39 = vld [vmem:[#allocation6 + $0x180] sm:$0xff]  ;;  %v5183_v42 = vcombine.low %v148_v31, %v152_v32  ;;  %v5186_v59 = vcombine.high %v149_v53, %v153_v54  ;;  %v157_v61 = vld [vmem:[#allocation6 + $0x188] sm:$0xff]  ;;  %v5185_v1 = vcombine.low %v149_v53, %v153_v54 }
  0x7c   :  { %923 = vmatpush1.bf16.msra.mxu0 %v5159_v14  ;;  %v160_v40 = vld [vmem:[#allocation6 + $0x1a0] sm:$0xff]  ;;  %v161_v62 = vld [vmem:[#allocation6 + $0x1a8] sm:$0xff] }
  0x7d   :  { %924 = vmatprep.subr.bf16.mxu0 %v5168_v15  ;;  %v5192_v44 = vcombine.high %v156_v39, %v160_v40  ;;  %v164_v47 = vld [vmem:[#allocation6 + $0x1c0] sm:$0xff]  ;;  %964 = vmatpush1.bf16.msra.mxu1 %v5161_v41  ;;  %v5191_v50 = vcombine.low %v156_v39, %v160_v40  ;;  %v5194_v3 = vcombine.high %v157_v61, %v161_v62  ;;  %v165_v5 = vld [vmem:[#allocation6 + $0x1c8] sm:$0xff] }
  0x7e   :  { %v168_v48 = vld [vmem:[#allocation6 + $0x1e0] sm:$0xff]  ;;  %965 = vmatprep.subr.bf16.mxu1 %v5170_v43  ;;  %v169_v6 = vld [vmem:[#allocation6 + $0x1e8] sm:$0xff]  ;;  %v5193_v9 = vcombine.low %v157_v61, %v161_v62 }
  0x7f   :  { %v5200_v52 = vcombine.high %v164_v47, %v168_v48  ;;  %v172_v55 = vld [vmem:[#allocation6 + $0x200] sm:$0xff]  ;;  %v5199_v58 = vcombine.low %v164_v47, %v168_v48  ;;  %v5202_v11 = vcombine.high %v165_v5, %v169_v6  ;;  %v173_v13 = vld [vmem:[#allocation6 + $0x208] sm:$0xff]  ;;  %v5201_v17 = vcombine.low %v165_v5, %v169_v6 }
  0x80   :  { %925 = vmatpush1.bf16.msra.mxu0 %v5167_v21  ;;  %v176_v56 = vld [vmem:[#allocation6 + $0x220] sm:$0xff]  ;;  %v177_v14 = vld [vmem:[#allocation6 + $0x228] sm:$0xff] }
  0x81   :  { %926 = vmatprep.subr.bf16.mxu0 %v5176_v27  ;;  %966 = vmatpush1.bf16.msra.mxu1 %v5169_v49  ;;  %v5208_v60 = vcombine.high %v172_v55, %v176_v56  ;;  %v180_v63 = vld [vmem:[#allocation6 + $0x240] sm:$0xff]  ;;  %v5207_v2 = vcombine.low %v172_v55, %v176_v56  ;;  %v5210_v19 = vcombine.high %v173_v13, %v177_v14  ;;  %v181_v21 = vld [vmem:[#allocation6 + $0x248] sm:$0xff]  ;;  %v110_v56 = vld [vmem:[#allocation6 + $0x10] sm:$0xff] }
  0x82   :  { %967 = vmatprep.subr.bf16.mxu1 %v5178_v51  ;;  %v184_v0 = vld [vmem:[#allocation6 + $0x260] sm:$0xff]  ;;  %v185_v22 = vld [vmem:[#allocation6 + $0x268] sm:$0xff]  ;;  %v5209_v26 = vcombine.low %v173_v13, %v177_v14 }
  0x83   :  { %v5216_v4 = vcombine.high %v180_v63, %v184_v0  ;;  %v188_v7 = vld [vmem:[#allocation6 + $0x280] sm:$0xff]  ;;  %v5215_v10 = vcombine.low %v180_v63, %v184_v0  ;;  %v5218_v28 = vcombine.high %v181_v21, %v185_v22  ;;  %v189_v30 = vld [vmem:[#allocation6 + $0x288] sm:$0xff] }
  0x84   :  { %927 = vmatpush1.bf16.msra.mxu0 %v5175_v34  ;;  %v192_v8 = vld [vmem:[#allocation6 + $0x2a0] sm:$0xff]  ;;  %v193_v31 = vld [vmem:[#allocation6 + $0x2a8] sm:$0xff]  ;;  %v5217_v34 = vcombine.low %v181_v21, %v185_v22 }
  0x85   :  { %928 = vmatprep.subr.bf16.mxu0 %v5184_v36  ;;  %968 = vmatpush1.bf16.msra.mxu1 %v5177_v57  ;;  %v5224_v12 = vcombine.high %v188_v7, %v192_v8  ;;  %v196_v15 = vld [vmem:[#allocation6 + $0x2c0] sm:$0xff]  ;;  %v5223_v18 = vcombine.low %v188_v7, %v192_v8  ;;  %v5226_v36 = vcombine.high %v189_v30, %v193_v31  ;;  %v197_v38 = vld [vmem:[#allocation6 + $0x2c8] sm:$0xff]  ;;  %v114_v57 = vld [vmem:[#allocation6 + $0x30] sm:$0xff] }
  0x86   :  { %969 = vmatprep.subr.bf16.mxu1 %v5186_v59  ;;  %v200_v16 = vld [vmem:[#allocation6 + $0x2e0] sm:$0xff]  ;;  %v201_v39 = vld [vmem:[#allocation6 + $0x2e8] sm:$0xff]  ;;  %v5148_v0 = vcombine.high %v110_v56, %v114_v57  ;;  %v5147_v6 = vcombine.low %v110_v56, %v114_v57  ;;  %v151_v56 = vld [vmem:[#allocation6 + $0x158] sm:$0xff] }
  0x87   :  { %v5232_v20 = vcombine.high %v196_v15, %v200_v16  ;;  %v204_v23 = vld [vmem:[#allocation6 + $0x300] sm:$0xff]  ;;  %v5231_v27 = vcombine.low %v196_v15, %v200_v16  ;;  %v205_v46 = vld [vmem:[#allocation6 + $0x308] sm:$0xff]  ;;  %v111_v16 = vld [vmem:[#allocation6 + $0x18] sm:$0xff] }
  0x88   :  { %929 = vmatpush1.bf16.msra.mxu0 %v5183_v42  ;;  %v208_v25 = vld [vmem:[#allocation6 + $0x320] sm:$0xff]  ;;  %v5225_v42 = vcombine.low %v189_v30, %v193_v31  ;;  %v209_v47 = vld [vmem:[#allocation6 + $0x328] sm:$0xff]  ;;  %v155_v57 = vld [vmem:[#allocation6 + $0x178] sm:$0xff] }
  0x89   :  { %930 = vmatprep.subr.bf16.mxu0 %v5192_v44  ;;  %970 = vmatpush1.bf16.msra.mxu1 %v5185_v1  ;;  %v5240_v29 = vcombine.high %v204_v23, %v208_v25  ;;  %v212_v32 = vld [vmem:[#allocation6 + $0x340] sm:$0xff]  ;;  %v5239_v35 = vcombine.low %v204_v23, %v208_v25  ;;  %v5234_v44 = vcombine.high %v197_v38, %v201_v39  ;;  %v213_v54 = vld [vmem:[#allocation6 + $0x348] sm:$0xff]  ;;  %v118_v1 = vld [vmem:[#allocation6 + $0x50] sm:$0xff] }
  0x8a   :  { %971 = vmatprep.subr.bf16.mxu1 %v5194_v3  ;;  %v216_v33 = vld [vmem:[#allocation6 + $0x360] sm:$0xff]  ;;  %v217_v55 = vld [vmem:[#allocation6 + $0x368] sm:$0xff]  ;;  %v119_v25 = vld [vmem:[#allocation6 + $0x58] sm:$0xff] }
  0x8b   :  { %v5248_v37 = vcombine.high %v212_v32, %v216_v33  ;;  %v220_v40 = vld [vmem:[#allocation6 + $0x380] sm:$0xff]  ;;  %v5247_v43 = vcombine.low %v212_v32, %v216_v33  ;;  %v5250_v61 = vcombine.high %v213_v54, %v217_v55  ;;  %v221_v62 = vld [vmem:[#allocation6 + $0x388] sm:$0xff]  ;;  %v127_v33 = vld [vmem:[#allocation6 + $0x98] sm:$0xff] }
  0x8c   :  { %931 = vmatpush1.bf16.msra.mxu0 %v5191_v50  ;;  %v224_v41 = vld [vmem:[#allocation6 + $0x3a0] sm:$0xff]  ;;  %v5233_v50 = vcombine.low %v197_v38, %v201_v39  ;;  %v225_v63 = vld [vmem:[#allocation6 + $0x3a8] sm:$0xff] }
  0x8d   :  { %932 = vmatprep.subr.bf16.mxu0 %v5200_v52  ;;  %972 = vmatpush1.bf16.msra.mxu1 %v5193_v9  ;;  %v5256_v45 = vcombine.high %v220_v40, %v224_v41  ;;  %v228_v48 = vld [vmem:[#allocation6 + $0x3c0] sm:$0xff]  ;;  %v5255_v51 = vcombine.low %v220_v40, %v224_v41  ;;  %v5242_v52 = vcombine.high %v205_v46, %v209_v47  ;;  %v229_v7 = vld [vmem:[#allocation6 + $0x3c8] sm:$0xff]  ;;  %v135_v41 = vld [vmem:[#allocation6 + $0xd8] sm:$0xff] }
  0x8e   :  { %973 = vmatprep.subr.bf16.mxu1 %v5202_v11  ;;  %v232_v49 = vld [vmem:[#allocation6 + $0x3e0] sm:$0xff]  ;;  %v5258_v5 = vcombine.high %v221_v62, %v225_v63  ;;  %v233_v8 = vld [vmem:[#allocation6 + $0x3e8] sm:$0xff]  ;;  %v130_v11 = vld [vmem:[#allocation6 + $0xb0] sm:$0xff] }
  0x8f   :  { %v5264_v53 = vcombine.high %v228_v48, %v232_v49  ;;  %v5263_v59 = vcombine.low %v228_v48, %v232_v49  ;;  %v5266_v13 = vcombine.high %v229_v7, %v233_v8  ;;  %v143_v49 = vld [vmem:[#allocation6 + $0x118] sm:$0xff] }
  0x90   :  { %933 = vmatpush1.bf16.msra.mxu0 %v5199_v58  ;;  %v5241_v58 = vcombine.low %v205_v46, %v209_v47 }
  0x91   :  { %934 = vmatprep.subr.bf16.mxu0 %v5208_v60  ;;  %974 = vmatpush1.bf16.msra.mxu1 %v5201_v17  ;;  %v104_v60 = vld [vmem:[#allocation3] sm:$0xff]  ;;  %v115_v17 = vld [vmem:[#allocation6 + $0x38] sm:$0xff] }
  0x92   :  { %975 = vmatprep.subr.bf16.mxu1 %v5210_v19  ;;  %v6161_v3 = vpack.c.bf16 %v104_v60, %v104_v60  ;;  %v138_v19 = vld [vmem:[#allocation6 + $0xf0] sm:$0xff]  ;;  %v5150_v22 = vcombine.high %v111_v16, %v115_v17 }
  0x94   :  { %935 = vmatpush1.bf16.msra.mxu0 %v5207_v2  ;;  %v122_v2 = vld [vmem:[#allocation6 + $0x70] sm:$0xff] }
  0x95   :  { %936 = vmatprep.subr.bf16.mxu0 %v5216_v4  ;;  %976 = vmatpush1.bf16.msra.mxu1 %v5209_v26  ;;  %v5249_v4 = vcombine.low %v213_v54, %v217_v55  ;;  %v5156_v9 = vcombine.high %v118_v1, %v122_v2  ;;  %v5155_v14 = vcombine.low %v118_v1, %v122_v2  ;;  %v123_v26 = vld [vmem:[#allocation6 + $0x78] sm:$0xff]  ;;  %v182_v2 = vld [vmem:[#allocation6 + $0x250] sm:$0xff] }
  0x96   :  { %977 = vmatprep.subr.bf16.mxu1 %v5218_v28  ;;  %v146_v28 = vld [vmem:[#allocation6 + $0x130] sm:$0xff]  ;;  %v5158_v31 = vcombine.high %v119_v25, %v123_v26  ;;  %v163_v1 = vld [vmem:[#allocation6 + $0x1b8] sm:$0xff] }
  0x98   :  { %937 = vmatpush1.bf16.msra.mxu0 %v5215_v10  ;;  %v126_v10 = vld [vmem:[#allocation6 + $0x90] sm:$0xff] }
  0x99   :  { %938 = vmatprep.subr.bf16.mxu0 %v5224_v12  ;;  %978 = vmatpush1.bf16.msra.mxu1 %v5217_v34  ;;  %v5257_v12 = vcombine.low %v221_v62, %v225_v63  ;;  %v5164_v15 = vcombine.high %v126_v10, %v130_v11  ;;  %v5163_v21 = vcombine.low %v126_v10, %v130_v11  ;;  %v131_v34 = vld [vmem:[#allocation6 + $0xb8] sm:$0xff]  ;;  %v190_v11 = vld [vmem:[#allocation6 + $0x290] sm:$0xff] }
  0x9a   :  { %979 = vmatprep.subr.bf16.mxu1 %v5226_v36  ;;  %v154_v36 = vld [vmem:[#allocation6 + $0x170] sm:$0xff]  ;;  %v5166_v39 = vcombine.high %v127_v33, %v131_v34  ;;  %v5190_v62 = vcombine.high %v151_v56, %v155_v57  ;;  %v171_v10 = vld [vmem:[#allocation6 + $0x1f8] sm:$0xff] }
  0x9c   :  { %939 = vmatpush1.bf16.msra.mxu0 %v5223_v18  ;;  %v134_v18 = vld [vmem:[#allocation6 + $0xd0] sm:$0xff] }
  0x9d   :  { %940 = vmatprep.subr.bf16.mxu0 %v5232_v20  ;;  %980 = vmatpush1.bf16.msra.mxu1 %v5225_v42  ;;  %v5265_v20 = vcombine.low %v229_v7, %v233_v8  ;;  %v5172_v23 = vcombine.high %v134_v18, %v138_v19  ;;  %v5171_v30 = vcombine.low %v134_v18, %v138_v19  ;;  %v139_v42 = vld [vmem:[#allocation6 + $0xf8] sm:$0xff]  ;;  %v198_v19 = vld [vmem:[#allocation6 + $0x2d0] sm:$0xff] }
  0x9e   :  { %981 = vmatprep.subr.bf16.mxu1 %v5234_v44  ;;  %v162_v44 = vld [vmem:[#allocation6 + $0x1b0] sm:$0xff]  ;;  %v5174_v47 = vcombine.high %v135_v41, %v139_v42  ;;  %v179_v18 = vld [vmem:[#allocation6 + $0x238] sm:$0xff] }
  0xa0   :  { %941 = vmatpush1.bf16.msra.mxu0 %v5231_v27  ;;  %v142_v27 = vld [vmem:[#allocation6 + $0x110] sm:$0xff] }
  0xa1   :  { %942 = vmatprep.subr.bf16.mxu0 %v5240_v29  ;;  %982 = vmatpush1.bf16.msra.mxu1 %v5233_v50  ;;  %v5149_v29 = vcombine.low %v111_v16, %v115_v17  ;;  %v5180_v32 = vcombine.high %v142_v27, %v146_v28  ;;  %v5179_v38 = vcombine.low %v142_v27, %v146_v28  ;;  %v166_v50 = vld [vmem:[#allocation6 + $0x1d0] sm:$0xff]  ;;  %v175_v17 = vld [vmem:[#allocation6 + $0x218] sm:$0xff] }
  0xa2   :  { %983 = vmatprep.subr.bf16.mxu1 %v5242_v52  ;;  %v5173_v52 = vcombine.low %v135_v41, %v139_v42  ;;  %v187_v27 = vld [vmem:[#allocation6 + $0x278] sm:$0xff]  ;;  %v206_v28 = vld [vmem:[#allocation6 + $0x310] sm:$0xff] }
  0xa3   :  { %v199_v42 = vld [vmem:[#allocation6 + $0x2d8] sm:$0xff] }
  0xa4   :  { %943 = vmatpush1.bf16.msra.mxu0 %v5239_v35  ;;  %v150_v35 = vld [vmem:[#allocation6 + $0x150] sm:$0xff] }
  0xa5   :  { %944 = vmatprep.subr.bf16.mxu0 %v5248_v37  ;;  %984 = vmatpush1.bf16.msra.mxu1 %v5241_v58  ;;  %v5157_v37 = vcombine.low %v119_v25, %v123_v26  ;;  %v5188_v40 = vcombine.high %v150_v35, %v154_v36  ;;  %v5187_v46 = vcombine.low %v150_v35, %v154_v36  ;;  %v174_v58 = vld [vmem:[#allocation6 + $0x210] sm:$0xff]  ;;  %v183_v26 = vld [vmem:[#allocation6 + $0x258] sm:$0xff] }
  0xa6   :  { %985 = vmatprep.subr.bf16.mxu1 %v5250_v61  ;;  %v195_v35 = vld [vmem:[#allocation6 + $0x2b8] sm:$0xff]  ;;  %v214_v36 = vld [vmem:[#allocation6 + $0x350] sm:$0xff] }
  0xa8   :  { %945 = vmatpush1.bf16.msra.mxu0 %v5247_v43  ;;  %v158_v43 = vld [vmem:[#allocation6 + $0x190] sm:$0xff] }
  0xa9   :  { %946 = vmatprep.subr.bf16.mxu0 %v5256_v45  ;;  %986 = vmatpush1.bf16.msra.mxu1 %v5249_v4  ;;  %v5165_v45 = vcombine.low %v127_v33, %v131_v34  ;;  %v5196_v48 = vcombine.high %v158_v43, %v162_v44  ;;  %v186_v4 = vld [vmem:[#allocation6 + $0x270] sm:$0xff]  ;;  %v191_v34 = vld [vmem:[#allocation6 + $0x298] sm:$0xff] }
  0xaa   :  { %987 = vmatprep.subr.bf16.mxu1 %v5258_v5  ;;  %v5189_v5 = vcombine.low %v151_v56, %v155_v57  ;;  %v5220_v8 = vcombine.high %v182_v2, %v186_v4  ;;  %v215_v57 = vld [vmem:[#allocation6 + $0x358] sm:$0xff] }
  0xac   :  { %947 = vmatpush1.bf16.msra.mxu0 %v5255_v51  ;;  %v170_v51 = vld [vmem:[#allocation6 + $0x1f0] sm:$0xff] }
  0xad   :  { %948 = vmatprep.subr.bf16.mxu0 %v5264_v53  ;;  %988 = vmatpush1.bf16.msra.mxu1 %v5257_v12  ;;  %v5195_v53 = vcombine.low %v158_v43, %v162_v44  ;;  %v5204_v55 = vcombine.high %v166_v50, %v170_v51  ;;  %v5203_v61 = vcombine.low %v166_v50, %v170_v51  ;;  %v194_v12 = vld [vmem:[#allocation6 + $0x2b0] sm:$0xff]  ;;  %v203_v43 = vld [vmem:[#allocation6 + $0x2f8] sm:$0xff] }
  0xae   :  { %989 = vmatprep.subr.bf16.mxu1 %v5266_v13  ;;  %v5228_v16 = vcombine.high %v190_v11, %v194_v12  ;;  %v222_v44 = vld [vmem:[#allocation6 + $0x390] sm:$0xff]  ;;  %v211_v50 = vld [vmem:[#allocation6 + $0x338] sm:$0xff] }
  0xaf   :  { %v230_v51 = vld [vmem:[#allocation6 + $0x3d0] sm:$0xff] }
  0xb0   :  { %949 = vmatpush1.bf16.msra.mxu0 %v5263_v59  ;;  %v178_v59 = vld [vmem:[#allocation6 + $0x230] sm:$0xff] }
  0xb1   :  { %1000 = vmatprep.subr.bf16.mxu0 %v5148_v0  ;;  %990 = vmatpush1.bf16.msra.mxu1 %v5265_v20  ;;  %v5212_v63 = vcombine.high %v174_v58, %v178_v59  ;;  %v159_v0 = vld [vmem:[#allocation6 + $0x198] sm:$0xff]  ;;  %v202_v20 = vld [vmem:[#allocation6 + $0x2f0] sm:$0xff] }
  0xb2   :  { %1041 = vmatprep.subr.bf16.mxu1 %v5150_v22  ;;  %v5198_v7 = vcombine.high %v159_v0, %v163_v1  ;;  %v5197_v13 = vcombine.low %v159_v0, %v163_v1  ;;  %v5227_v22 = vcombine.low %v190_v11, %v194_v12  ;;  %v5236_v25 = vcombine.high %v198_v19, %v202_v20  ;;  %v223_v0 = vld [vmem:[#allocation6 + $0x398] sm:$0xff]  ;;  %v1114_v12 = vld [vmem:[#allocation9 + $0x80] sm:$0xff] }
  0xb3   :  { %951 = vmatmul.mubr.bf16.vlgmr.msra.gmra.mrb[0].mxu0 %v6161_v3  ;;  %v227_v1 = vld [vmem:[#allocation6 + $0x3b8] sm:$0xff] }
  0xb4   :  { %1001 = vmatpush1.bf16.msra.mxu0 %v5147_v6  ;;  %1032 = vmatprep.mubr.bf16.mxu0 %v6157_v24  ;;  %v5211_v6 = vcombine.low %v174_v58, %v178_v59  ;;  %v219_v58 = vld [vmem:[#allocation6 + $0x378] sm:$0xff]  ;;  %v1098_v59 = vld [vmem:[#allocation9] sm:$0xff] }
  0xb5   :  { %1002 = vmatprep.subr.bf16.mxu0 %v5156_v9  ;;  %992 = vmatmul.mubr.bf16.vlgmr.msra.gmra.mrb[0].mxu1 %v6161_v3  ;;  %v167_v9 = vld [vmem:[#allocation6 + $0x1d8] sm:$0xff] }
  0xb6   :  { %1042 = vmatpush1.bf16.msra.mxu1 %v5149_v29  ;;  %1073 = vmatprep.mubr.bf16.mxu1 %v6157_v24  ;;  %v147_v24 = vld [vmem:[#allocation6 + $0x138] sm:$0xff]  ;;  %v210_v29 = vld [vmem:[#allocation6 + $0x330] sm:$0xff] }
  0xb7   :  { %1043 = vmatprep.subr.bf16.mxu1 %v5158_v31  ;;  %v5182_v54 = vcombine.high %v143_v49, %v147_v24  ;;  %v5181_v60 = vcombine.low %v143_v49, %v147_v24  ;;  %v5235_v31 = vcombine.low %v198_v19, %v202_v20  ;;  %v5244_v33 = vcombine.high %v206_v28, %v210_v29  ;;  %v207_v24 = vld [vmem:[#allocation6 + $0x318] sm:$0xff]  ;;  %v1122_v20 = vld [vmem:[#allocation9 + $0xc0] sm:$0xff] }
  0xb8   :  { %1003 = vmatpush1.bf16.msra.mxu0 %v5155_v14  ;;  %v5219_v14 = vcombine.low %v182_v2, %v186_v4  ;;  %v1106_v4 = vld [vmem:[#allocation9 + $0x40] sm:$0xff] }
  0xb9   :  { %1004 = vmatprep.subr.bf16.mxu0 %v5164_v15  ;;  %v5206_v15 = vcombine.high %v167_v9, %v171_v10 }
  0xba   :  { %1044 = vmatpush1.bf16.msra.mxu1 %v5157_v37  ;;  %v218_v37 = vld [vmem:[#allocation6 + $0x370] sm:$0xff] }
  0xbb   :  { %1045 = vmatprep.subr.bf16.mxu1 %v5166_v39  ;;  %v5243_v39 = vcombine.low %v206_v28, %v210_v29  ;;  %v5252_v41 = vcombine.high %v214_v36, %v218_v37  ;;  %v1130_v29 = vld [vmem:[#allocation9 + $0x100] sm:$0xff] }
  0xbc   :  { %1005 = vmatpush1.bf16.msra.mxu0 %v5163_v21  ;;  %v5205_v21 = vcombine.low %v167_v9, %v171_v10  ;;  %v231_v9 = vld [vmem:[#allocation6 + $0x3d8] sm:$0xff] }
  0xbd   :  { %1006 = vmatprep.subr.bf16.mxu0 %v5172_v23  ;;  %v5214_v23 = vcombine.high %v175_v17, %v179_v18  ;;  %v235_v10 = vld [vmem:[#allocation6 + $0x3f8] sm:$0xff] }
  0xbe   :  { %1046 = vmatpush1.bf16.msra.mxu1 %v5165_v45  ;;  %v226_v45 = vld [vmem:[#allocation6 + $0x3b0] sm:$0xff] }
  0xbf   :  { %1047 = vmatprep.subr.bf16.mxu1 %v5174_v47  ;;  %v5251_v47 = vcombine.low %v214_v36, %v218_v37  ;;  %v5260_v49 = vcombine.high %v222_v44, %v226_v45  ;;  %v1138_v37 = vld [vmem:[#allocation9 + $0x140] sm:$0xff] }
  0xc0   :  { %1007 = vmatpush1.bf16.msra.mxu0 %v5171_v30  ;;  %v5213_v30 = vcombine.low %v175_v17, %v179_v18  ;;  %v1099_v17 = vld [vmem:[#allocation9 + $0x8] sm:$0xff] }
  0xc1   :  { %1008 = vmatprep.subr.bf16.mxu0 %v5180_v32  ;;  %v5222_v32 = vcombine.high %v183_v26, %v187_v27  ;;  %v1103_v18 = vld [vmem:[#allocation9 + $0x28] sm:$0xff] }
  0xc2   :  { %1048 = vmatpush1.bf16.msra.mxu1 %v5173_v52  ;;  %v234_v52 = vld [vmem:[#allocation6 + $0x3f0] sm:$0xff] }
  0xc3   :  { %1049 = vmatprep.subr.bf16.mxu1 %v5182_v54  ;;  %v5259_v54 = vcombine.low %v222_v44, %v226_v45  ;;  %v5268_v56 = vcombine.high %v230_v51, %v234_v52  ;;  %v1146_v45 = vld [vmem:[#allocation9 + $0x180] sm:$0xff] }
  0xc4   :  { %1009 = vmatpush1.bf16.msra.mxu0 %v5179_v38  ;;  %v5221_v38 = vcombine.low %v183_v26, %v187_v27  ;;  %v1107_v26 = vld [vmem:[#allocation9 + $0x48] sm:$0xff] }
  0xc5   :  { %1010 = vmatprep.subr.bf16.mxu0 %v5188_v40  ;;  %v5230_v40 = vcombine.high %v191_v34, %v195_v35  ;;  %v1111_v27 = vld [vmem:[#allocation9 + $0x68] sm:$0xff] }
  0xc6   :  { %1050 = vmatpush1.bf16.msra.mxu1 %v5181_v60  ;;  %v1102_v60 = vld [vmem:[#allocation9 + $0x20] sm:$0xff] }
  0xc7   :  { %1051 = vmatprep.subr.bf16.mxu1 %v5190_v62  ;;  %v5267_v62 = vcombine.low %v230_v51, %v234_v52  ;;  %v5272_v2 = vcombine.high %v1098_v59, %v1102_v60  ;;  %v1154_v51 = vld [vmem:[#allocation9 + $0x1c0] sm:$0xff] }
  0xc8   :  { %1011 = vmatpush1.bf16.msra.mxu0 %v5187_v46  ;;  %v5229_v46 = vcombine.low %v191_v34, %v195_v35  ;;  %v1115_v34 = vld [vmem:[#allocation9 + $0x88] sm:$0xff]  ;;  %v1158_v52 = vld [vmem:[#allocation9 + $0x1e0] sm:$0xff] }
  0xc9   :  { %1012 = vmatprep.subr.bf16.mxu0 %v5196_v48  ;;  %v5238_v48 = vcombine.high %v199_v42, %v203_v43  ;;  %v1119_v35 = vld [vmem:[#allocation9 + $0xa8] sm:$0xff] }
  0xca   :  { %1052 = vmatpush1.bf16.msra.mxu1 %v5189_v5  ;;  %v1110_v5 = vld [vmem:[#allocation9 + $0x60] sm:$0xff] }
  0xcb   :  { %1053 = vmatprep.subr.bf16.mxu1 %v5198_v7  ;;  %v5262_v7 = vcombine.high %v223_v0, %v227_v1  ;;  %v5280_v11 = vcombine.high %v1106_v4, %v1110_v5 }
  0xcc   :  { %1013 = vmatpush1.bf16.msra.mxu0 %v5195_v53  ;;  %v5237_v53 = vcombine.low %v199_v42, %v203_v43  ;;  %v1123_v42 = vld [vmem:[#allocation9 + $0xc8] sm:$0xff] }
  0xcd   :  { %1014 = vmatprep.subr.bf16.mxu0 %v5204_v55  ;;  %v5246_v55 = vcombine.high %v207_v24, %v211_v50  ;;  %v1127_v43 = vld [vmem:[#allocation9 + $0xe8] sm:$0xff] }
  0xce   :  { %1054 = vmatpush1.bf16.msra.mxu1 %v5197_v13  ;;  %v1118_v13 = vld [vmem:[#allocation9 + $0xa0] sm:$0xff] }
  0xcf   :  { %1055 = vmatprep.subr.bf16.mxu1 %v5206_v15  ;;  %v5270_v15 = vcombine.high %v231_v9, %v235_v10  ;;  %v5288_v19 = vcombine.high %v1114_v12, %v1118_v13 }
  0xd0   :  { %1015 = vmatpush1.bf16.msra.mxu0 %v5203_v61  ;;  %v5245_v61 = vcombine.low %v207_v24, %v211_v50  ;;  %v1135_v24 = vld [vmem:[#allocation9 + $0x128] sm:$0xff] }
  0xd1   :  { %1016 = vmatprep.subr.bf16.mxu0 %v5212_v63  ;;  %v5254_v63 = vcombine.high %v215_v57, %v219_v58 }
  0xd2   :  { %1056 = vmatpush1.bf16.msra.mxu1 %v5205_v21  ;;  %v1126_v21 = vld [vmem:[#allocation9 + $0xe0] sm:$0xff] }
  0xd3   :  { %1057 = vmatprep.subr.bf16.mxu1 %v5214_v23  ;;  %v5274_v23 = vcombine.high %v1099_v17, %v1103_v18  ;;  %v5296_v28 = vcombine.high %v1122_v20, %v1126_v21 }
  0xd4   :  { %1017 = vmatpush1.bf16.msra.mxu0 %v5211_v6  ;;  %v5253_v6 = vcombine.low %v215_v57, %v219_v58  ;;  %v1143_v57 = vld [vmem:[#allocation9 + $0x168] sm:$0xff]  ;;  %v5328_v58 = vcombine.high %v1154_v51, %v1158_v52 }
  0xd5   :  { %1018 = vmatprep.subr.bf16.mxu0 %v5220_v8  ;;  %v5271_v8 = vcombine.low %v1098_v59, %v1102_v60  ;;  %v1162_v59 = vld [vmem:[#allocation9 + $0x200] sm:$0xff] }
  0xd6   :  { %1058 = vmatpush1.bf16.msra.mxu1 %v5213_v30  ;;  %v1134_v30 = vld [vmem:[#allocation9 + $0x120] sm:$0xff] }
  0xd7   :  { %1059 = vmatprep.subr.bf16.mxu1 %v5222_v32  ;;  %v5282_v32 = vcombine.high %v1107_v26, %v1111_v27  ;;  %v5304_v36 = vcombine.high %v1130_v29, %v1134_v30  ;;  %v1166_v60 = vld [vmem:[#allocation9 + $0x220] sm:$0xff] }
  0xd8   :  { %1019 = vmatpush1.bf16.msra.mxu0 %v5219_v14  ;;  %v5261_v14 = vcombine.low %v223_v0, %v227_v1  ;;  %v6173_v0 = vld [vmem:[#allocation9 + $0x408] sm:$0xff] }
  0xd9   :  { %1020 = vmatprep.subr.bf16.mxu0 %v5228_v16  ;;  %v5279_v16 = vcombine.low %v1106_v4, %v1110_v5  ;;  %v6175_v4 = vld [vmem:[#allocation9 + $0x428] sm:$0xff] }
  0xda   :  { %1060 = vmatpush1.bf16.msra.mxu1 %v5221_v38  ;;  %v1142_v38 = vld [vmem:[#allocation9 + $0x160] sm:$0xff]  ;;  %v1147_v5 = vld [vmem:[#allocation9 + $0x188] sm:$0xff] }
  0xdb   :  { %1061 = vmatprep.subr.bf16.mxu1 %v5230_v40  ;;  %v5290_v40 = vcombine.high %v1115_v34, %v1119_v35  ;;  %v5312_v44 = vcombine.high %v1138_v37, %v1142_v38 }
  0xdc   :  { %1021 = vmatpush1.bf16.msra.mxu0 %v5227_v22  ;;  %v5269_v22 = vcombine.low %v231_v9, %v235_v10  ;;  %v5401_v9 = vcombine.low %v6173_v0, %v6175_v4  ;;  %v1170_v10 = vld [vmem:[#allocation9 + $0x240] sm:$0xff] }
  0xdd   :  { %1022 = vmatprep.subr.bf16.mxu0 %v5236_v25  ;;  %v5287_v25 = vcombine.low %v1114_v12, %v1118_v13 }
  0xde   :  { %1062 = vmatpush1.bf16.msra.mxu1 %v5229_v46  ;;  %v1150_v46 = vld [vmem:[#allocation9 + $0x1a0] sm:$0xff] }
  0xdf   :  { %1063 = vmatprep.subr.bf16.mxu1 %v5238_v48  ;;  %v5298_v48 = vcombine.high %v1123_v42, %v1127_v43  ;;  %v5320_v50 = vcombine.high %v1146_v45, %v1150_v46 }
  0xe0   :  { %1023 = vmatpush1.bf16.msra.mxu0 %v5235_v31  ;;  %v5273_v31 = vcombine.low %v1099_v17, %v1103_v18  ;;  %v1178_v18 = vld [vmem:[#allocation9 + $0x280] sm:$0xff] }
  0xe1   :  { %1024 = vmatprep.subr.bf16.mxu0 %v5244_v33  ;;  %v5295_v33 = vcombine.low %v1122_v20, %v1126_v21 }
  0xe2   :  { %1064 = vmatpush1.bf16.msra.mxu1 %v5237_v53  ;;  %v5297_v53 = vcombine.low %v1123_v42, %v1127_v43  ;;  %v1202_v43 = vld [vmem:[#allocation9 + $0x340] sm:$0xff] }
  0xe3   :  { %1065 = vmatprep.subr.bf16.mxu1 %v5246_v55  ;;  %v5319_v55 = vcombine.low %v1146_v45, %v1150_v46 }
  0xe4   :  { %1025 = vmatpush1.bf16.msra.mxu0 %v5243_v39  ;;  %v5281_v39 = vcombine.low %v1107_v26, %v1111_v27  ;;  %v1186_v27 = vld [vmem:[#allocation9 + $0x2c0] sm:$0xff] }
  0xe5   :  { %1026 = vmatprep.subr.bf16.mxu0 %v5252_v41  ;;  %v5303_v41 = vcombine.low %v1130_v29, %v1134_v30 }
  0xe6   :  { %1066 = vmatpush1.bf16.msra.mxu1 %v5245_v61 }
  0xe7   :  { %1067 = vmatprep.subr.bf16.mxu1 %v5254_v63  ;;  %v6171_v63 = vld [vmem:[#allocation9 + $0x420] sm:$0xff] }
  0xe8   :  { %1027 = vmatpush1.bf16.msra.mxu0 %v5251_v47  ;;  %v5289_v47 = vcombine.low %v1115_v34, %v1119_v35  ;;  %v1194_v35 = vld [vmem:[#allocation9 + $0x300] sm:$0xff] }
  0xe9   :  { %1028 = vmatprep.subr.bf16.mxu0 %v5260_v49  ;;  %v1131_v49 = vld [vmem:[#allocation9 + $0x108] sm:$0xff] }
  0xea   :  { %1068 = vmatpush1.bf16.msra.mxu1 %v5253_v6  ;;  %v5305_v61 = vcombine.low %v1131_v49, %v1135_v24  ;;  %v1151_v6 = vld [vmem:[#allocation9 + $0x1a8] sm:$0xff] }
  0xeb   :  { %1069 = vmatprep.subr.bf16.mxu1 %v5262_v7  ;;  %v5336_v7 = vcombine.high %v1162_v59, %v1166_v60  ;;  %v5322_v13 = vcombine.high %v1147_v5, %v1151_v6  ;;  %v5321_v20 = vcombine.low %v1147_v5, %v1151_v6 }
  0xec   :  { %1029 = vmatpush1.bf16.msra.mxu0 %v5259_v54  ;;  %v5306_v54 = vcombine.high %v1131_v49, %v1135_v24  ;;  %v1210_v24 = vld [vmem:[#allocation9 + $0x380] sm:$0xff] }
  0xed   :  { %1030 = vmatprep.subr.bf16.mxu0 %v5268_v56  ;;  %v1139_v56 = vld [vmem:[#allocation9 + $0x148] sm:$0xff] }
  0xee   :  { %1070 = vmatpush1.bf16.msra.mxu1 %v5261_v14  ;;  %v5314_v1 = vcombine.high %v1139_v56, %v1143_v57  ;;  %v5313_v12 = vcombine.low %v1139_v56, %v1143_v57  ;;  %v5335_v14 = vcombine.low %v1162_v59, %v1166_v60  ;;  %v1218_v57 = vld [vmem:[#allocation9 + $0x3c0] sm:$0xff] }
  0xef   :  { %1071 = vmatprep.subr.bf16.mxu1 %v5270_v15  ;;  %v1155_v15 = vld [vmem:[#allocation9 + $0x1c8] sm:$0xff] }
  0xf0   :  { %1031 = vmatpush1.bf16.msra.mxu0 %v5267_v62  ;;  %v6169_v62 = vld [vmem:[#allocation9 + $0x400] sm:$0xff] }
  0xf1   :  { %4212 = vmatprep.subr.bf16.mxu0 %v5272_v2  ;;  %v5327_v2 = vcombine.low %v1154_v51, %v1158_v52 }
  0xf2   :  { %1072 = vmatpush1.bf16.msra.mxu1 %v5269_v22 }
  0xf3   :  { %1033 = vmatmul.mubr.bf16.vlgmr.msra.gmra.mrb[4].mxu0 %v6161_v3  ;;  %4376 = vmatprep.subr.bf16.mxu1 %v5274_v23  ;;  %v1163_v23 = vld [vmem:[#allocation9 + $0x208] sm:$0xff] }
  0xf4   :  { %4213 = vmatpush1.bf16.msra.mxu0 %v5271_v8  ;;  %v5399_v8 = vcombine.low %v6169_v62, %v6171_v63 }
  0xf5   :  { %4214 = vmatprep.subr.bf16.mxu0 %v5280_v11  ;;  %1074 = vmatmul.mubr.bf16.vlgmr.msra.gmra.mrb[4].mxu1 %v6161_v3  ;;  %v5311_v3 = vcombine.low %v1138_v37, %v1142_v38  ;;  %v1174_v11 = vld [vmem:[#allocation9 + $0x260] sm:$0xff] }
  0xf6   :  { %4377 = vmatpush1.bf16.msra.mxu1 %v5273_v31  ;;  %v5344_v17 = vcombine.high %v1170_v10, %v1174_v11  ;;  %v5343_v22 = vcombine.low %v1170_v10, %v1174_v11  ;;  %v1211_v11 = vld [vmem:[#allocation9 + $0x388] sm:$0xff] }
  0xf7   :  { %4378 = vmatprep.subr.bf16.mxu1 %v5282_v32  ;;  %v1171_v32 = vld [vmem:[#allocation9 + $0x248] sm:$0xff] }
  0xf8   :  { %4215 = vmatpush1.bf16.msra.mxu0 %v5279_v16  ;;  %v1159_v16 = vld [vmem:[#allocation9 + $0x1e8] sm:$0xff] }
  0xf9   :  { %4216 = vmatprep.subr.bf16.mxu0 %v5288_v19  ;;  %v1182_v19 = vld [vmem:[#allocation9 + $0x2a0] sm:$0xff]  ;;  %v5330_v21 = vcombine.high %v1155_v15, %v1159_v16  ;;  %v5329_v29 = vcombine.low %v1155_v15, %v1159_v16  ;;  %v1219_v16 = vld [vmem:[#allocation9 + $0x3c8] sm:$0xff] }
  0xfa   :  { %4379 = vmatpush1.bf16.msra.mxu1 %v5281_v39  ;;  %v5352_v26 = vcombine.high %v1178_v18, %v1182_v19  ;;  %v5351_v31 = vcombine.low %v1178_v18, %v1182_v19 }
  0xfb   :  { %4380 = vmatprep.subr.bf16.mxu1 %v5290_v40  ;;  %v1179_v40 = vld [vmem:[#allocation9 + $0x288] sm:$0xff] }
  0xfc   :  { %4217 = vmatpush1.bf16.msra.mxu0 %v5287_v25  ;;  %v1167_v25 = vld [vmem:[#allocation9 + $0x228] sm:$0xff] }
  0xfd   :  { %4218 = vmatprep.subr.bf16.mxu0 %v5296_v28  ;;  %v1190_v28 = vld [vmem:[#allocation9 + $0x2e0] sm:$0xff]  ;;  %v5338_v30 = vcombine.high %v1163_v23, %v1167_v25  ;;  %v5337_v37 = vcombine.low %v1163_v23, %v1167_v25 }
  0xfe   :  { %4381 = vmatpush1.bf16.msra.mxu1 %v5289_v47  ;;  %v5360_v34 = vcombine.high %v1186_v27, %v1190_v28  ;;  %v5359_v39 = vcombine.low %v1186_v27, %v1190_v28 }
  0xff   :  { %4382 = vmatprep.subr.bf16.mxu1 %v5298_v48  ;;  %v1187_v48 = vld [vmem:[#allocation9 + $0x2c8] sm:$0xff] }
 0x100   :  { %4219 = vmatpush1.bf16.msra.mxu0 %v5295_v33  ;;  %v1175_v33 = vld [vmem:[#allocation9 + $0x268] sm:$0xff] }
 0x101   :  { %4220 = vmatprep.subr.bf16.mxu0 %v5304_v36  ;;  %v1198_v36 = vld [vmem:[#allocation9 + $0x320] sm:$0xff]  ;;  %v5346_v38 = vcombine.high %v1171_v32, %v1175_v33  ;;  %v5345_v45 = vcombine.low %v1171_v32, %v1175_v33 }
 0x102   :  { %4383 = vmatpush1.bf16.msra.mxu1 %v5297_v53  ;;  %v5368_v42 = vcombine.high %v1194_v35, %v1198_v36  ;;  %v5367_v47 = vcombine.low %v1194_v35, %v1198_v36 }
 0x103   :  { %4384 = vmatprep.subr.bf16.mxu1 %v5306_v54  ;;  %v1195_v54 = vld [vmem:[#allocation9 + $0x308] sm:$0xff] }
 0x104   :  { %4221 = vmatpush1.bf16.msra.mxu0 %v5303_v41  ;;  %v1183_v41 = vld [vmem:[#allocation9 + $0x2a8] sm:$0xff] }
 0x105   :  { %4222 = vmatprep.subr.bf16.mxu0 %v5312_v44  ;;  %v1206_v44 = vld [vmem:[#allocation9 + $0x360] sm:$0xff]  ;;  %v5354_v46 = vcombine.high %v1179_v40, %v1183_v41  ;;  %v5353_v51 = vcombine.low %v1179_v40, %v1183_v41  ;;  %v1235_v40 = vld [vmem:[#allocation9 + $0x448] sm:$0xff] }
 0x106   :  { %4385 = vmatpush1.bf16.msra.mxu1 %v5305_v61  ;;  %v5376_v49 = vcombine.high %v1202_v43, %v1206_v44  ;;  %v5375_v53 = vcombine.low %v1202_v43, %v1206_v44  ;;  %v1239_v41 = vld [vmem:[#allocation9 + $0x468] sm:$0xff] }
 0x107   :  { %4386 = vmatprep.subr.bf16.mxu1 %v5314_v1  ;;  %v1203_v1 = vld [vmem:[#allocation9 + $0x348] sm:$0xff] }
 0x108   :  { %4223 = vmatpush1.bf16.msra.mxu0 %v5311_v3  ;;  %v1191_v3 = vld [vmem:[#allocation9 + $0x2e8] sm:$0xff] }
 0x109   :  { %4224 = vmatprep.subr.bf16.mxu0 %v5320_v50  ;;  %v1214_v50 = vld [vmem:[#allocation9 + $0x3a0] sm:$0xff]  ;;  %v5362_v52 = vcombine.high %v1187_v48, %v1191_v3  ;;  %v5361_v59 = vcombine.low %v1187_v48, %v1191_v3  ;;  %v1243_v3 = vld [vmem:[#allocation9 + $0x488] sm:$0xff] }
 0x10a   :  { %4387 = vmatpush1.bf16.msra.mxu1 %v5313_v12  ;;  %v5384_v56 = vcombine.high %v1210_v24, %v1214_v50  ;;  %v5383_v61 = vcombine.low %v1210_v24, %v1214_v50  ;;  %v1215_v12 = vld [vmem:[#allocation9 + $0x3a8] sm:$0xff]  ;;  %v1246_v48 = vld [vmem:[#allocation9 + $0x4a0] sm:$0xff] }
 0x10b   :  { %4388 = vmatprep.subr.bf16.mxu1 %v5322_v13  ;;  %v5400_v13 = vcombine.high %v6169_v62, %v6171_v63  ;;  %v5386_v15 = vcombine.high %v1211_v11, %v1215_v12  ;;  %v5385_v18 = vcombine.low %v1211_v11, %v1215_v12 }
 0x10c   :  { %4225 = vmatpush1.bf16.msra.mxu0 %v5319_v55  ;;  %v1199_v55 = vld [vmem:[#allocation9 + $0x328] sm:$0xff] }
 0x10d   :  { %4226 = vmatprep.subr.bf16.mxu0 %v5328_v58  ;;  %v1222_v58 = vld [vmem:[#allocation9 + $0x3e0] sm:$0xff]  ;;  %v5370_v60 = vcombine.high %v1195_v54, %v1199_v55  ;;  %v5369_v6 = vcombine.low %v1195_v54, %v1199_v55 }
 0x10e   :  { %4389 = vmatpush1.bf16.msra.mxu1 %v5321_v20  ;;  %v5392_v5 = vcombine.high %v1218_v57, %v1222_v58  ;;  %v5391_v10 = vcombine.low %v1218_v57, %v1222_v58  ;;  %v1250_v54 = vld [vmem:[#allocation9 + $0x4c0] sm:$0xff]  ;;  %v1251_v57 = vld [vmem:[#allocation9 + $0x4c8] sm:$0xff] }
 0x10f   :  { %4390 = vmatprep.subr.bf16.mxu1 %v5330_v21  ;;  %v5402_v21 = vcombine.high %v6173_v0, %v6175_v4  ;;  %v1255_v58 = vld [vmem:[#allocation9 + $0x4e8] sm:$0xff] }
 0x110   :  { %4227 = vmatpush1.bf16.msra.mxu0 %v5327_v2  ;;  %v1207_v2 = vld [vmem:[#allocation9 + $0x368] sm:$0xff]  ;;  %v5425_v11 = vcombine.low %v1251_v57, %v1255_v58 }
 0x111   :  { %4228 = vmatprep.subr.bf16.mxu0 %v5336_v7  ;;  %v5378_v7 = vcombine.high %v1203_v1, %v1207_v2 }
 0x112   :  { %4391 = vmatpush1.bf16.msra.mxu1 %v5329_v29 }
 0x113   :  { %4392 = vmatprep.subr.bf16.mxu1 %v5338_v30 }
 0x114   :  { %4229 = vmatpush1.bf16.msra.mxu0 %v5335_v14  ;;  %v5377_v14 = vcombine.low %v1203_v1, %v1207_v2  ;;  %v1262_v2 = vld [vmem:[#allocation9 + $0x520] sm:$0xff] }
 0x115   :  { %4230 = vmatprep.subr.bf16.mxu0 %v5344_v17  ;;  %v1223_v17 = vld [vmem:[#allocation9 + $0x3e8] sm:$0xff] }
 0x116   :  { %4393 = vmatpush1.bf16.msra.mxu1 %v5337_v37  ;;  %v5394_v19 = vcombine.high %v1219_v16, %v1223_v17  ;;  %v5393_v20 = vcombine.low %v1219_v16, %v1223_v17  ;;  %v1234_v37 = vld [vmem:[#allocation9 + $0x440] sm:$0xff]  ;;  %v1267_v16 = vld [vmem:[#allocation9 + $0x548] sm:$0xff] }
 0x117   :  { %4394 = vmatprep.subr.bf16.mxu1 %v5346_v38  ;;  %v1271_v17 = vld [vmem:[#allocation9 + $0x568] sm:$0xff] }
 0x118   :  { %4231 = vmatpush1.bf16.msra.mxu0 %v5343_v22  ;;  %v238_v22 = vlaneseq }
 0x119   :  { %4232 = vmatprep.subr.bf16.mxu0 %v5352_v26  ;;  %v6190_v26 = vld [vmem:[#allocation8] sm:$0xff] }
 0x11a   :  { %4395 = vmatpush1.bf16.msra.mxu1 %v5345_v45  ;;  %v6185_v23 = vshrl.u32 %v238_v22, 7  ;;  %v1274_v22 = vld [vmem:[#allocation9 + $0x580] sm:$0xff] }
 0x11b   :  { %4396 = vmatprep.subr.bf16.mxu1 %v5354_v46  ;;  %v5410_v46 = vcombine.high %v1235_v40, %v1239_v41 }
 0x11c   :  { %4233 = vmatpush1.bf16.msra.mxu0 %v5351_v31  ;;  %v6188_v25 = vsub.s32 0, %v6185_v23  ;;  %v244_v27 = vsub.s32 1, %v6185_v23 }
 0x11d   :  { %4234 = vmatprep.subr.bf16.mxu0 %v5360_v34 }
 0x11e   :  { %4397 = vmatpush1.bf16.msra.mxu1 %v5353_v51  ;;  %v241_v28 = vrot.slane %v6190_v26, %v6188_v25  ;;  %v245_v29 = vrot.slane %v6190_v26, %v244_v27  ;;  %v5409_v51 = vcombine.low %v1235_v40, %v1239_v41 }
 0x11f   :  { %4398 = vmatprep.subr.bf16.mxu1 %v5362_v52 }
 0x120   :  { %4235 = vmatpush1.bf16.msra.mxu0 %v5359_v39  ;;  %v1238_v39 = vld [vmem:[#allocation9 + $0x460] sm:$0xff] }
 0x121   :  { %4236 = vmatprep.subr.bf16.mxu0 %v5368_v42  ;;  %v252_v42 = vsub.s32 3, %v6185_v23  ;;  %v5408_v45 = vcombine.high %v1234_v37, %v1238_v39  ;;  %v5407_v50 = vcombine.low %v1234_v37, %v1238_v39  ;;  %v1283_v37 = vld [vmem:[#allocation9 + $0x5c8] sm:$0xff] }
 0x122   :  { %4399 = vmatpush1.bf16.msra.mxu1 %v5361_v59 }
 0x123   :  { %4400 = vmatprep.subr.bf16.mxu1 %v5370_v60  ;;  %v253_v24 = vrot.slane %v6190_v26, %v252_v42 }
 0x124   :  { %4237 = vmatpush1.bf16.msra.mxu0 %v5367_v47  ;;  %v1242_v47 = vld [vmem:[#allocation9 + $0x480] sm:$0xff] }
 0x125   :  { %4238 = vmatprep.subr.bf16.mxu0 %v5376_v49  ;;  %v1247_v49 = vld [vmem:[#allocation9 + $0x4a8] sm:$0xff]  ;;  %v5416_v52 = vcombine.high %v1242_v47, %v1246_v48  ;;  %v5415_v63 = vcombine.low %v1242_v47, %v1246_v48  ;;  %v1294_v47 = vld [vmem:[#allocation9 + $0x620] sm:$0xff] }
 0x126   :  { %4401 = vmatpush1.bf16.msra.mxu1 %v5369_v6  ;;  %v5417_v0 = vcombine.low %v1243_v3, %v1247_v49  ;;  %v1263_v6 = vld [vmem:[#allocation9 + $0x528] sm:$0xff] }
 0x127   :  { %4402 = vmatprep.subr.bf16.mxu1 %v5378_v7  ;;  %v1291_v48 = vld [vmem:[#allocation9 + $0x608] sm:$0xff] }
 0x128   :  { %4239 = vmatpush1.bf16.msra.mxu0 %v5375_v53  ;;  %v5418_v53 = vcombine.high %v1243_v3, %v1247_v49  ;;  %v1295_v3 = vld [vmem:[#allocation9 + $0x628] sm:$0xff] }
 0x129   :  { %4240 = vmatprep.subr.bf16.mxu0 %v5384_v56  ;;  %v1254_v56 = vld [vmem:[#allocation9 + $0x4e0] sm:$0xff] }
 0x12a   :  { %4403 = vmatpush1.bf16.msra.mxu1 %v5377_v14  ;;  %v1266_v14 = vld [vmem:[#allocation9 + $0x540] sm:$0xff] }
 0x12b   :  { %4404 = vmatprep.subr.bf16.mxu1 %v5386_v15  ;;  %v1270_v15 = vld [vmem:[#allocation9 + $0x560] sm:$0xff] }
 0x12c   :  { %4241 = vmatpush1.bf16.msra.mxu0 %v5383_v61  ;;  %v1258_v61 = vld [vmem:[#allocation9 + $0x500] sm:$0xff] }
 0x12d   :  { %4242 = vmatprep.subr.bf16.mxu0 %v5392_v5  ;;  %v1259_v5 = vld [vmem:[#allocation9 + $0x508] sm:$0xff]  ;;  %v5432_v12 = vcombine.high %v1258_v61, %v1262_v2 }
 0x12e   :  { %4405 = vmatpush1.bf16.msra.mxu1 %v5385_v18  ;;  %v5431_v18 = vcombine.low %v1258_v61, %v1262_v2  ;;  %v1314_v2 = vld [vmem:[#allocation9 + $0x6c0] sm:$0xff] }
 0x12f   :  { %4406 = vmatprep.subr.bf16.mxu1 %v5394_v19  ;;  %v5433_v19 = vcombine.low %v1259_v5, %v1263_v6 }
 0x130   :  { %4243 = vmatpush1.bf16.msra.mxu0 %v5391_v10  ;;  %v5423_v10 = vcombine.low %v1250_v54, %v1254_v56 }
 0x131   :  { %4253 = vmatprep.subr.bf16.mxu0 %v5400_v13  ;;  %v5434_v13 = vcombine.high %v1259_v5, %v1263_v6  ;;  %v1318_v5 = vld [vmem:[#allocation9 + $0x6e0] sm:$0xff]  ;;  %v1315_v6 = vld [vmem:[#allocation9 + $0x6c8] sm:$0xff] }
 0x132   :  { %4407 = vmatpush1.bf16.msra.mxu1 %v5393_v20  ;;  %v5440_v20 = vcombine.high %v1266_v14, %v1270_v15 }
 0x133   :  { %4417 = vmatprep.subr.bf16.mxu1 %v5402_v21  ;;  %v5442_v21 = vcombine.high %v1267_v16, %v1271_v17 }
 0x186   :  { %v952_v30 = vpop.f32.mrb[0].mxu0 }
 0x187   :  { %v953_v31 = vadd.f32 %v952_v30, %v241_v28  ;;  %v954_v32 = vpop.f32.mrb[1].mxu0  ;;  %v1278_v28 = vld [vmem:[#allocation9 + $0x5a0] sm:$0xff]  ;;  %v1279_v30 = vld [vmem:[#allocation9 + $0x5a8] sm:$0xff] }
 0x188   :  { %v955_v33 = vadd.f32 %v954_v32, %v245_v29  ;;  %v956_v34 = vpop.f32.mrb[2].mxu0  ;;  %v6216_v55 = vpop.f32.mrb[0].mxu1  ;;  %v1275_v29 = vld [vmem:[#allocation9 + $0x588] sm:$0xff]  ;;  %v5441_v32 = vcombine.low %v1267_v16, %v1271_v17  ;;  %v5447_v39 = vcombine.low %v1274_v22, %v1278_v28  ;;  %v1326_v16 = vld [vmem:[#allocation9 + $0x720] sm:$0xff] }
 0x189   :  { %v1082_v35 = vmax.f32 %v953_v31, 0.0  ;;  %v957_v36 = vpop.f32.mrb[3].mxu0  ;;  %v995_v59 = vpop.f32.mrb[1].mxu1  ;;  %v5439_v31 = vcombine.low %v1266_v14, %v1270_v15  ;;  %v5450_v34 = vcombine.high %v1275_v29, %v1279_v30  ;;  %v5449_v40 = vcombine.low %v1275_v29, %v1279_v30  ;;  %v1322_v15 = vld [vmem:[#allocation9 + $0x700] sm:$0xff]  ;;  %v1323_v17 = vld [vmem:[#allocation9 + $0x708] sm:$0xff] }
 0x18a   :  { %v1083_v38 = vmax.f32 %v955_v33, 0.0  ;;  %v996_v60 = vadd.f32 %v995_v59, %v253_v24  ;;  %v997_v62 = vpop.f32.mrb[2].mxu1  ;;  %v5448_v33 = vcombine.high %v1274_v22, %v1278_v28  ;;  %v1286_v36 = vld [vmem:[#allocation9 + $0x5e0] sm:$0xff]  ;;  %v1331_v30 = vld [vmem:[#allocation9 + $0x748] sm:$0xff] }
 0x18b   :  { %v6201_v44 = vpack.c.bf16 %v1082_v35, %v1082_v35  ;;  %v998_v4 = vpop.f32.mrb[3].mxu1  ;;  %v1282_v35 = vld [vmem:[#allocation9 + $0x5c0] sm:$0xff] }
 0x18c   :  { %v6199_v43 = vpack.c.bf16 %v1083_v38, %v1083_v38  ;;  %v1085_v1 = vmax.f32 %v996_v60, 0.0  ;;  %v1287_v38 = vld [vmem:[#allocation9 + $0x5e8] sm:$0xff]  ;;  %v5456_v41 = vcombine.high %v1282_v35, %v1286_v36  ;;  %v5455_v49 = vcombine.low %v1282_v35, %v1286_v36  ;;  %v1306_v62 = vld [vmem:[#allocation9 + $0x680] sm:$0xff] }
 0x18d   :  { %v5457_v24 = vcombine.low %v1283_v37, %v1287_v38  ;;  %v1311_v4 = vld [vmem:[#allocation9 + $0x6a8] sm:$0xff]  ;;  %v1330_v28 = vld [vmem:[#allocation9 + $0x740] sm:$0xff] }
 0x18e   :  { %4244 = vmatprep.mubr.bf16.mxu0 %v6199_v43  ;;  %4408 = vmatprep.mubr.bf16.mxu1 %v6199_v43  ;;  %v6218_v7 = vpack.c.bf16 %v1085_v1, %v1085_v1  ;;  %v1334_v29 = vld [vmem:[#allocation9 + $0x760] sm:$0xff] }
 0x18f   :  { %4245 = vmatmul.mubr.bf16.vlgmr.msra.gmra.mrb[8].mxu0 %v6201_v44  ;;  %4409 = vmatmul.mubr.bf16.vlgmr.msra.gmra.mrb[8].mxu1 %v6201_v44  ;;  %v5504_v35 = vcombine.high %v1330_v28, %v1334_v29 }
 0x190   :  { %4254 = vmatpush1.bf16.msra.mxu0 %v5399_v8  ;;  %4418 = vmatpush1.bf16.msra.mxu1 %v5401_v9  ;;  %v5424_v8 = vcombine.high %v1250_v54, %v1254_v56  ;;  %v5426_v9 = vcombine.high %v1251_v57, %v1255_v58  ;;  %v1299_v54 = vld [vmem:[#allocation9 + $0x648] sm:$0xff]  ;;  %v5465_v58 = vcombine.low %v1291_v48, %v1295_v3 }
 0x191   :  { %4255 = vmatprep.subr.bf16.mxu0 %v5408_v45  ;;  %4419 = vmatprep.subr.bf16.mxu1 %v5410_v46  ;;  %v5458_v45 = vcombine.high %v1283_v37, %v1287_v38  ;;  %v1290_v46 = vld [vmem:[#allocation9 + $0x600] sm:$0xff]  ;;  %v1303_v56 = vld [vmem:[#allocation9 + $0x668] sm:$0xff] }
 0x192   :  { %4285 = vmatprep.mubr.bf16.mxu0 %v6218_v7  ;;  %4449 = vmatprep.mubr.bf16.mxu1 %v6218_v7  ;;  %v5463_v57 = vcombine.low %v1290_v46, %v1294_v47  ;;  %v5474_v60 = vcombine.high %v1299_v54, %v1303_v56  ;;  %v1338_v37 = vld [vmem:[#allocation9 + $0x780] sm:$0xff] }
 0x193   :  { %v1342_v38 = vld [vmem:[#allocation9 + $0x7a0] sm:$0xff] }
 0x194   :  { %4256 = vmatpush1.bf16.msra.mxu0 %v5407_v50  ;;  %4420 = vmatpush1.bf16.msra.mxu1 %v5409_v51  ;;  %v5464_v50 = vcombine.high %v1290_v46, %v1294_v47  ;;  %v5466_v51 = vcombine.high %v1291_v48, %v1295_v3  ;;  %v260_v47 = vsub.s32 5, %v6185_v23  ;;  %v5512_v48 = vcombine.high %v1338_v37, %v1342_v38 }
 0x195   :  { %4257 = vmatprep.subr.bf16.mxu0 %v5416_v52  ;;  %4421 = vmatprep.subr.bf16.mxu1 %v5418_v53  ;;  %v1298_v52 = vld [vmem:[#allocation9 + $0x640] sm:$0xff] }
 0x196   :  { %v1302_v53 = vld [vmem:[#allocation9 + $0x660] sm:$0xff] }
 0x197   :  { %v5472_v59 = vcombine.high %v1298_v52, %v1302_v53 }
 0x198   :  { %4258 = vmatpush1.bf16.msra.mxu0 %v5415_v63  ;;  %4422 = vmatpush1.bf16.msra.mxu1 %v5417_v0  ;;  %v1310_v63 = vld [vmem:[#allocation9 + $0x6a0] sm:$0xff]  ;;  %v1307_v0 = vld [vmem:[#allocation9 + $0x688] sm:$0xff] }
 0x199   :  { %4259 = vmatprep.subr.bf16.mxu0 %v5424_v8  ;;  %4423 = vmatprep.subr.bf16.mxu1 %v5426_v9  ;;  %v5471_v8 = vcombine.low %v1298_v52, %v1302_v53  ;;  %v5473_v9 = vcombine.low %v1299_v54, %v1303_v56  ;;  %v5480_v61 = vcombine.high %v1306_v62, %v1310_v63 }
 0x19a   :  { %v5482_v1 = vcombine.high %v1307_v0, %v1311_v4  ;;  %v5511_v53 = vcombine.low %v1338_v37, %v1342_v38  ;;  %v261_v56 = vrot.slane %v6190_v26, %v260_v47  ;;  %v1382_v37 = vld [vmem:[#allocation9 + $0x8e0] sm:$0xff]  ;;  %v1379_v38 = vld [vmem:[#allocation9 + $0x8c8] sm:$0xff] }
 0x19c   :  { %4260 = vmatpush1.bf16.msra.mxu0 %v5423_v10  ;;  %4424 = vmatpush1.bf16.msra.mxu1 %v5425_v11  ;;  %v1319_v10 = vld [vmem:[#allocation9 + $0x6e8] sm:$0xff]  ;;  %v5479_v11 = vcombine.low %v1306_v62, %v1310_v63 }
 0x19d   :  { %4261 = vmatprep.subr.bf16.mxu0 %v5432_v12  ;;  %4425 = vmatprep.subr.bf16.mxu1 %v5434_v13  ;;  %v5481_v12 = vcombine.low %v1307_v0, %v1311_v4  ;;  %v5488_v13 = vcombine.high %v1314_v2, %v1318_v5  ;;  %v5490_v14 = vcombine.high %v1315_v6, %v1319_v10  ;;  %v1355_v62 = vld [vmem:[#allocation9 + $0x808] sm:$0xff] }
 0x19e   :  { %v1359_v63 = vld [vmem:[#allocation9 + $0x828] sm:$0xff] }
 0x1a0   :  { %4262 = vmatpush1.bf16.msra.mxu0 %v5431_v18  ;;  %4426 = vmatpush1.bf16.msra.mxu1 %v5433_v19  ;;  %v1327_v18 = vld [vmem:[#allocation9 + $0x728] sm:$0xff]  ;;  %v5487_v19 = vcombine.low %v1314_v2, %v1318_v5  ;;  %v5530_v5 = vcombine.high %v1355_v62, %v1359_v63 }
 0x1a1   :  { %4263 = vmatprep.subr.bf16.mxu0 %v5440_v20  ;;  %4427 = vmatprep.subr.bf16.mxu1 %v5442_v21  ;;  %v5489_v20 = vcombine.low %v1315_v6, %v1319_v10  ;;  %v5496_v21 = vcombine.high %v1322_v15, %v1326_v16  ;;  %v5498_v22 = vcombine.high %v1323_v17, %v1327_v18  ;;  %v1362_v6 = vld [vmem:[#allocation9 + $0x840] sm:$0xff] }
 0x1a4   :  { %4264 = vmatpush1.bf16.msra.mxu0 %v5439_v31  ;;  %4428 = vmatpush1.bf16.msra.mxu1 %v5441_v32  ;;  %v1335_v31 = vld [vmem:[#allocation9 + $0x768] sm:$0xff]  ;;  %v248_v32 = vsub.s32 2, %v6185_v23 }
 0x1a5   :  { %4265 = vmatprep.subr.bf16.mxu0 %v5448_v33  ;;  %4429 = vmatprep.subr.bf16.mxu1 %v5450_v34  ;;  %v5495_v33 = vcombine.low %v1322_v15, %v1326_v16  ;;  %v5497_v34 = vcombine.low %v1323_v17, %v1327_v18  ;;  %v5506_v36 = vcombine.high %v1331_v30, %v1335_v31 }
 0x1a6   :  { %v5505_v46 = vcombine.low %v1331_v30, %v1335_v31  ;;  %v5529_v17 = vcombine.low %v1355_v62, %v1359_v63  ;;  %v1399_v62 = vld [vmem:[#allocation9 + $0x968] sm:$0xff] }
 0x1a8   :  { %4266 = vmatpush1.bf16.msra.mxu0 %v5447_v39  ;;  %4430 = vmatpush1.bf16.msra.mxu1 %v5449_v40  ;;  %v1339_v39 = vld [vmem:[#allocation9 + $0x788] sm:$0xff] }
 0x1a9   :  { %4267 = vmatprep.subr.bf16.mxu0 %v5456_v41  ;;  %4431 = vmatprep.subr.bf16.mxu1 %v5458_v45  ;;  %v1343_v40 = vld [vmem:[#allocation9 + $0x7a8] sm:$0xff]  ;;  %v249_v41 = vrot.slane %v6190_v26, %v248_v32  ;;  %v5503_v45 = vcombine.low %v1330_v28, %v1334_v29 }
 0x1aa   :  { %v5514_v3 = vcombine.high %v1339_v39, %v1343_v40  ;;  %v5513_v54 = vcombine.low %v1339_v39, %v1343_v40  ;;  %v1375_v28 = vld [vmem:[#allocation9 + $0x8a8] sm:$0xff] }
 0x1ab   :  { %v994_v52 = vadd.f32 %v6216_v55, %v249_v41  ;;  %v1383_v39 = vld [vmem:[#allocation9 + $0x8e8] sm:$0xff] }
 0x1ac   :  { %4268 = vmatpush1.bf16.msra.mxu0 %v5455_v49  ;;  %4432 = vmatpush1.bf16.msra.mxu1 %v5457_v24  ;;  %v1346_v49 = vld [vmem:[#allocation9 + $0x7c0] sm:$0xff] }
 0x1ad   :  { %4269 = vmatprep.subr.bf16.mxu0 %v5464_v50  ;;  %4433 = vmatprep.subr.bf16.mxu1 %v5466_v51  ;;  %v1350_v24 = vld [vmem:[#allocation9 + $0x7e0] sm:$0xff]  ;;  %v1347_v50 = vld [vmem:[#allocation9 + $0x7c8] sm:$0xff]  ;;  %v1084_v4 = vmax.f32 %v994_v52, 0.0 }
 0x1ae   :  { %v1351_v51 = vld [vmem:[#allocation9 + $0x7e8] sm:$0xff] }
 0x1af   :  { %v6233_v15 = vpack.c.bf16 %v1084_v4, %v1084_v4  ;;  %v1391_v52 = vld [vmem:[#allocation9 + $0x928] sm:$0xff] }
 0x1b0   :  { %4270 = vmatpush1.bf16.msra.mxu0 %v5463_v57  ;;  %4434 = vmatpush1.bf16.msra.mxu1 %v5465_v58  ;;  %v5520_v57 = vcombine.high %v1346_v49, %v1350_v24  ;;  %v5522_v58 = vcombine.high %v1347_v50, %v1351_v51 }
 0x1b1   :  { %4271 = vmatprep.subr.bf16.mxu0 %v5472_v59  ;;  %4435 = vmatprep.subr.bf16.mxu1 %v5474_v60  ;;  %v1354_v59 = vld [vmem:[#allocation9 + $0x800] sm:$0xff] }
 0x1b2   :  { %v1358_v60 = vld [vmem:[#allocation9 + $0x820] sm:$0xff] }
 0x1b3   :  { %v5528_v2 = vcombine.high %v1354_v59, %v1358_v60  ;;  %v5527_v16 = vcombine.low %v1354_v59, %v1358_v60  ;;  %v1398_v59 = vld [vmem:[#allocation9 + $0x960] sm:$0xff]  ;;  %v1395_v60 = vld [vmem:[#allocation9 + $0x948] sm:$0xff] }
 0x1b4   :  { %4272 = vmatpush1.bf16.msra.mxu0 %v5471_v8  ;;  %4436 = vmatpush1.bf16.msra.mxu1 %v5473_v9  ;;  %v5519_v8 = vcombine.low %v1346_v49, %v1350_v24  ;;  %v5521_v9 = vcombine.low %v1347_v50, %v1351_v51  ;;  %v5554_v49 = vcombine.high %v1379_v38, %v1383_v39  ;;  %v1386_v24 = vld [vmem:[#allocation9 + $0x900] sm:$0xff]  ;;  %v1387_v51 = vld [vmem:[#allocation9 + $0x908] sm:$0xff] }
 0x1b5   :  { %4273 = vmatprep.subr.bf16.mxu0 %v5480_v61  ;;  %4437 = vmatprep.subr.bf16.mxu1 %v5482_v1  ;;  %v1390_v50 = vld [vmem:[#allocation9 + $0x920] sm:$0xff]  ;;  %v5561_v4 = vcombine.low %v1387_v51, %v1391_v52 }
 0x1b6   :  { %v5559_v63 = vcombine.low %v1386_v24, %v1390_v50 }
 0x1b8   :  { %4274 = vmatpush1.bf16.msra.mxu0 %v5479_v11  ;;  %4438 = vmatpush1.bf16.msra.mxu1 %v5481_v12  ;;  %v1366_v11 = vld [vmem:[#allocation9 + $0x860] sm:$0xff]  ;;  %v1363_v12 = vld [vmem:[#allocation9 + $0x848] sm:$0xff] }
 0x1b9   :  { %4275 = vmatprep.subr.bf16.mxu0 %v5488_v13  ;;  %4439 = vmatprep.subr.bf16.mxu1 %v5490_v14  ;;  %v1367_v13 = vld [vmem:[#allocation9 + $0x868] sm:$0xff]  ;;  %v5536_v18 = vcombine.high %v1362_v6, %v1366_v11  ;;  %v5535_v30 = vcombine.low %v1362_v6, %v1366_v11  ;;  %v5569_v6 = vcombine.low %v1395_v60, %v1399_v62 }
 0x1ba   :  { %v5537_v31 = vcombine.low %v1363_v12, %v1367_v13 }
 0x1bc   :  { %4276 = vmatpush1.bf16.msra.mxu0 %v5487_v19  ;;  %4440 = vmatpush1.bf16.msra.mxu1 %v5489_v20  ;;  %v5538_v19 = vcombine.high %v1363_v12, %v1367_v13  ;;  %v1370_v20 = vld [vmem:[#allocation9 + $0x880] sm:$0xff] }
 0x1bd   :  { %4277 = vmatprep.subr.bf16.mxu0 %v5496_v21  ;;  %4441 = vmatprep.subr.bf16.mxu1 %v5498_v22  ;;  %v1374_v21 = vld [vmem:[#allocation9 + $0x8a0] sm:$0xff]  ;;  %v1371_v22 = vld [vmem:[#allocation9 + $0x888] sm:$0xff] }
 0x1be   :  { %v1410_v12 = vld [vmem:[#allocation9 + $0x9c0] sm:$0xff] }
 0x1bf   :  { %v1414_v13 = vld [vmem:[#allocation9 + $0x9e0] sm:$0xff] }
 0x1c0   :  { %4278 = vmatpush1.bf16.msra.mxu0 %v5495_v33  ;;  %4442 = vmatpush1.bf16.msra.mxu1 %v5497_v34  ;;  %v5544_v33 = vcombine.high %v1370_v20, %v1374_v21  ;;  %v5546_v34 = vcombine.high %v1371_v22, %v1375_v28 }
 0x1c1   :  { %4279 = vmatprep.subr.bf16.mxu0 %v5504_v35  ;;  %4443 = vmatprep.subr.bf16.mxu1 %v5506_v36  ;;  %v1378_v35 = vld [vmem:[#allocation9 + $0x8c0] sm:$0xff] }
 0x1c4   :  { %4280 = vmatpush1.bf16.msra.mxu0 %v5503_v45  ;;  %4444 = vmatpush1.bf16.msra.mxu1 %v5505_v46  ;;  %v5543_v45 = vcombine.low %v1370_v20, %v1374_v21  ;;  %v5545_v46 = vcombine.low %v1371_v22, %v1375_v28  ;;  %v1418_v21 = vld [vmem:[#allocation9 + $0xa00] sm:$0xff]  ;;  %v1419_v28 = vld [vmem:[#allocation9 + $0xa08] sm:$0xff] }
 0x1c5   :  { %4281 = vmatprep.subr.bf16.mxu0 %v5512_v48  ;;  %4445 = vmatprep.subr.bf16.mxu1 %v5514_v3  ;;  %v5552_v3 = vcombine.high %v1378_v35, %v1382_v37  ;;  %v1422_v22 = vld [vmem:[#allocation9 + $0xa20] sm:$0xff] }
 0x1c6   :  { %v6231_v0 = vpop.f32.mrb[4].mxu0 }
 0x1c7   :  { %v1036_v55 = vpop.f32.mrb[5].mxu0 }
 0x1c8   :  { %4282 = vmatpush1.bf16.msra.mxu0 %v5511_v53  ;;  %4446 = vmatpush1.bf16.msra.mxu1 %v5513_v54  ;;  %v1037_v61 = vadd.f32 %v1036_v55, %v261_v56  ;;  %v1038_v1 = vpop.f32.mrb[6].mxu0  ;;  %v6239_v36 = vpop.f32.mrb[4].mxu1  ;;  %v5551_v53 = vcombine.low %v1378_v35, %v1382_v37  ;;  %v5553_v54 = vcombine.low %v1379_v38, %v1383_v39  ;;  %v1426_v37 = vld [vmem:[#allocation9 + $0xa40] sm:$0xff]  ;;  %v1427_v39 = vld [vmem:[#allocation9 + $0xa48] sm:$0xff] }
 0x1c9   :  { %4283 = vmatprep.subr.bf16.mxu0 %v5520_v57  ;;  %4447 = vmatprep.subr.bf16.mxu1 %v5522_v58  ;;  %v1039_v10 = vpop.f32.mrb[7].mxu0  ;;  %v6243_v40 = vpop.f32.mrb[5].mxu1  ;;  %v5560_v56 = vcombine.high %v1386_v24, %v1390_v50  ;;  %v5562_v57 = vcombine.high %v1387_v51, %v1391_v52  ;;  %v1394_v58 = vld [vmem:[#allocation9 + $0x940] sm:$0xff]  ;;  %v1403_v1 = vld [vmem:[#allocation9 + $0x988] sm:$0xff] }
 0x1ca   :  { %v1087_v14 = vmax.f32 %v1037_v61, 0.0  ;;  %v1079_v41 = vpop.f32.mrb[6].mxu1  ;;  %v5568_v55 = vcombine.high %v1394_v58, %v1398_v59  ;;  %v1406_v61 = vld [vmem:[#allocation9 + $0x9a0] sm:$0xff]  ;;  %v1435_v50 = vld [vmem:[#allocation9 + $0xa88] sm:$0xff] }
 0x1cb   :  { %v1080_v48 = vpop.f32.mrb[7].mxu1  ;;  %v1430_v38 = vld [vmem:[#allocation9 + $0xa60] sm:$0xff]  ;;  %v1431_v41 = vld [vmem:[#allocation9 + $0xa68] sm:$0xff] }
 0x1cc   :  { %4284 = vmatpush1.bf16.msra.mxu0 %v5519_v8  ;;  %4448 = vmatpush1.bf16.msra.mxu1 %v5521_v9  ;;  %v6235_v29 = vpack.c.bf16 %v1087_v14, %v1087_v14  ;;  %v5570_v8 = vcombine.high %v1395_v60, %v1399_v62  ;;  %v1402_v9 = vld [vmem:[#allocation9 + $0x980] sm:$0xff]  ;;  %v1411_v14 = vld [vmem:[#allocation9 + $0x9c8] sm:$0xff]  ;;  %v5600_v48 = vcombine.high %v1426_v37, %v1430_v38 }
 0x1cd   :  { %4294 = vmatprep.subr.bf16.mxu0 %v5528_v2  ;;  %4458 = vmatprep.subr.bf16.mxu1 %v5530_v5  ;;  %v1407_v2 = vld [vmem:[#allocation9 + $0x9a8] sm:$0xff]  ;;  %v5567_v5 = vcombine.low %v1394_v58, %v1398_v59  ;;  %v5576_v10 = vcombine.high %v1402_v9, %v1406_v61  ;;  %v1438_v24 = vld [vmem:[#allocation9 + $0xaa0] sm:$0xff]  ;;  %v5599_v52 = vcombine.low %v1426_v37, %v1430_v38 }
 0x1ce   :  { %v5578_v11 = vcombine.high %v1403_v1, %v1407_v2  ;;  %v1439_v51 = vld [vmem:[#allocation9 + $0xaa8] sm:$0xff]  ;;  %v1446_v58 = vld [vmem:[#allocation9 + $0xae0] sm:$0xff] }
 0x1cf   :  { %4286 = vmatmul.mubr.bf16.vlgmr.msra.gmra.mrb[8].mxu0 %v6233_v15  ;;  %4450 = vmatmul.mubr.bf16.vlgmr.msra.gmra.mrb[8].mxu1 %v6233_v15  ;;  %v1443_v59 = vld [vmem:[#allocation9 + $0xac8] sm:$0xff] }
 0x1d0   :  { %4295 = vmatpush1.bf16.msra.mxu0 %v5527_v16  ;;  %4459 = vmatpush1.bf16.msra.mxu1 %v5529_v17  ;;  %v1415_v16 = vld [vmem:[#allocation9 + $0x9e8] sm:$0xff]  ;;  %v5575_v17 = vcombine.low %v1402_v9, %v1406_v61  ;;  %v1454_v9 = vld [vmem:[#allocation9 + $0xb20] sm:$0xff] }
 0x1d1   :  { %4296 = vmatprep.subr.bf16.mxu0 %v5536_v18  ;;  %4460 = vmatprep.subr.bf16.mxu1 %v5538_v19  ;;  %v5577_v18 = vcombine.low %v1403_v1, %v1407_v2  ;;  %v5584_v19 = vcombine.high %v1410_v12, %v1414_v13  ;;  %v5586_v20 = vcombine.high %v1411_v14, %v1415_v16  ;;  %v1447_v60 = vld [vmem:[#allocation9 + $0xae8] sm:$0xff] }
 0x1d2   :  { %4326 = vmatprep.mubr.bf16.mxu0 %v6235_v29  ;;  %4490 = vmatprep.mubr.bf16.mxu1 %v6235_v29  ;;  %v1451_v61 = vld [vmem:[#allocation9 + $0xb08] sm:$0xff] }
 0x1d3   :  { %v1455_v1 = vld [vmem:[#allocation9 + $0xb28] sm:$0xff] }
 0x1d4   :  { %4297 = vmatpush1.bf16.msra.mxu0 %v5535_v30  ;;  %4461 = vmatpush1.bf16.msra.mxu1 %v5537_v31  ;;  %v1423_v30 = vld [vmem:[#allocation9 + $0xa28] sm:$0xff]  ;;  %v5583_v31 = vcombine.low %v1410_v12, %v1414_v13  ;;  %v1462_v12 = vld [vmem:[#allocation9 + $0xb60] sm:$0xff] }
 0x1d5   :  { %4298 = vmatprep.subr.bf16.mxu0 %v5544_v33  ;;  %4462 = vmatprep.subr.bf16.mxu1 %v5546_v34  ;;  %v5585_v33 = vcombine.low %v1411_v14, %v1415_v16  ;;  %v5592_v34 = vcombine.high %v1418_v21, %v1422_v22  ;;  %v5594_v35 = vcombine.high %v1419_v28, %v1423_v30  ;;  %v1459_v13 = vld [vmem:[#allocation9 + $0xb48] sm:$0xff]  ;;  %v256_v16 = vsub.s32 4, %v6185_v23 }
 0x1d6   :  { %v1463_v14 = vld [vmem:[#allocation9 + $0xb68] sm:$0xff] }
 0x1d8   :  { %4299 = vmatpush1.bf16.msra.mxu0 %v5543_v45  ;;  %4463 = vmatpush1.bf16.msra.mxu1 %v5545_v46  ;;  %v5591_v45 = vcombine.low %v1418_v21, %v1422_v22  ;;  %v5593_v46 = vcombine.low %v1419_v28, %v1423_v30  ;;  %v1466_v21 = vld [vmem:[#allocation9 + $0xb80] sm:$0xff]  ;;  %v1467_v28 = vld [vmem:[#allocation9 + $0xb88] sm:$0xff] }
 0x1d9   :  { %4300 = vmatprep.subr.bf16.mxu0 %v5552_v3  ;;  %4464 = vmatprep.subr.bf16.mxu1 %v5554_v49  ;;  %v5602_v3 = vcombine.high %v1427_v39, %v1431_v41  ;;  %v1434_v49 = vld [vmem:[#allocation9 + $0xa80] sm:$0xff]  ;;  %v1471_v30 = vld [vmem:[#allocation9 + $0xba8] sm:$0xff] }
 0x1da   :  { %v5607_v62 = vcombine.low %v1434_v49, %v1438_v24  ;;  %v1470_v22 = vld [vmem:[#allocation9 + $0xba0] sm:$0xff]  ;;  %v5642_v38 = vcombine.high %v1467_v28, %v1471_v30 }
 0x1db   :  { %v5640_v37 = vcombine.high %v1466_v21, %v1470_v22 }
 0x1dc   :  { %4301 = vmatpush1.bf16.msra.mxu0 %v5551_v53  ;;  %4465 = vmatpush1.bf16.msra.mxu1 %v5553_v54  ;;  %v5601_v53 = vcombine.low %v1427_v39, %v1431_v41  ;;  %v5608_v54 = vcombine.high %v1434_v49, %v1438_v24  ;;  %v1474_v39 = vld [vmem:[#allocation9 + $0xbc0] sm:$0xff]  ;;  %v5639_v49 = vcombine.low %v1466_v21, %v1470_v22  ;;  %v1507_v21 = vld [vmem:[#allocation9 + $0xcc8] sm:$0xff] }
 0x1dd   :  { %4302 = vmatprep.subr.bf16.mxu0 %v5560_v56  ;;  %4466 = vmatprep.subr.bf16.mxu1 %v5562_v57  ;;  %v5610_v56 = vcombine.high %v1435_v50, %v1439_v51  ;;  %v1442_v57 = vld [vmem:[#allocation9 + $0xac0] sm:$0xff]  ;;  %v5641_v24 = vcombine.low %v1467_v28, %v1471_v30  ;;  %v1511_v22 = vld [vmem:[#allocation9 + $0xce8] sm:$0xff] }
 0x1de   :  { %v5615_v2 = vcombine.low %v1442_v57, %v1446_v58  ;;  %v1478_v41 = vld [vmem:[#allocation9 + $0xbe0] sm:$0xff] }
 0x1e0   :  { %4303 = vmatpush1.bf16.msra.mxu0 %v5559_v63  ;;  %4467 = vmatpush1.bf16.msra.mxu1 %v5561_v4  ;;  %v5609_v63 = vcombine.low %v1435_v50, %v1439_v51  ;;  %v5616_v4 = vcombine.high %v1442_v57, %v1446_v58  ;;  %v5648_v50 = vcombine.high %v1474_v39, %v1478_v41 }
 0x1e1   :  { %4304 = vmatprep.subr.bf16.mxu0 %v5568_v55  ;;  %4468 = vmatprep.subr.bf16.mxu1 %v5570_v8  ;;  %v5618_v55 = vcombine.high %v1443_v59, %v1447_v60  ;;  %v1450_v8 = vld [vmem:[#allocation9 + $0xb00] sm:$0xff] }
 0x1e4   :  { %4305 = vmatpush1.bf16.msra.mxu0 %v5567_v5  ;;  %4469 = vmatpush1.bf16.msra.mxu1 %v5569_v6  ;;  %v5617_v5 = vcombine.low %v1443_v59, %v1447_v60  ;;  %v5624_v6 = vcombine.high %v1450_v8, %v1454_v9 }
 0x1e5   :  { %4306 = vmatprep.subr.bf16.mxu0 %v5576_v10  ;;  %4470 = vmatprep.subr.bf16.mxu1 %v5578_v11  ;;  %v5626_v10 = vcombine.high %v1451_v61, %v1455_v1  ;;  %v1458_v11 = vld [vmem:[#allocation9 + $0xb40] sm:$0xff] }
 0x1e8   :  { %4307 = vmatpush1.bf16.msra.mxu0 %v5575_v17  ;;  %4471 = vmatpush1.bf16.msra.mxu1 %v5577_v18  ;;  %v5623_v17 = vcombine.low %v1450_v8, %v1454_v9  ;;  %v5625_v18 = vcombine.low %v1451_v61, %v1455_v1 }
 0x1e9   :  { %4308 = vmatprep.subr.bf16.mxu0 %v5584_v19  ;;  %4472 = vmatprep.subr.bf16.mxu1 %v5586_v20  ;;  %v5632_v19 = vcombine.high %v1458_v11, %v1462_v12  ;;  %v5634_v20 = vcombine.high %v1459_v13, %v1463_v14 }
 0x1ec   :  { %4309 = vmatpush1.bf16.msra.mxu0 %v5583_v31  ;;  %4473 = vmatpush1.bf16.msra.mxu1 %v5585_v33  ;;  %v268_v31 = vsub.s32 7, %v6185_v23  ;;  %v257_v33 = vrot.slane %v6190_v26, %v256_v16 }
 0x1ed   :  { %4310 = vmatprep.subr.bf16.mxu0 %v5592_v34  ;;  %4474 = vmatprep.subr.bf16.mxu1 %v5594_v35  ;;  %v5631_v34 = vcombine.low %v1458_v11, %v1462_v12  ;;  %v5633_v35 = vcombine.low %v1459_v13, %v1463_v14  ;;  %v1503_v11 = vld [vmem:[#allocation9 + $0xca8] sm:$0xff] }
 0x1f0   :  { %4311 = vmatpush1.bf16.msra.mxu0 %v5591_v45  ;;  %4475 = vmatpush1.bf16.msra.mxu1 %v5593_v46  ;;  %v1475_v45 = vld [vmem:[#allocation9 + $0xbc8] sm:$0xff] }
 0x1f1   :  { %4312 = vmatprep.subr.bf16.mxu0 %v5600_v48  ;;  %4476 = vmatprep.subr.bf16.mxu1 %v5602_v3  ;;  %v1479_v46 = vld [vmem:[#allocation9 + $0xbe8] sm:$0xff]  ;;  %v269_v48 = vrot.slane %v6190_v26, %v268_v31  ;;  %v1035_v3 = vadd.f32 %v6231_v0, %v257_v33  ;;  %v5647_v26 = vcombine.low %v1474_v39, %v1478_v41 }
 0x1f2   :  { %v5650_v51 = vcombine.high %v1475_v45, %v1479_v46  ;;  %v5649_v59 = vcombine.low %v1475_v45, %v1479_v46  ;;  %v1519_v39 = vld [vmem:[#allocation9 + $0xd28] sm:$0xff]  ;;  %v5681_v45 = vcombine.low %v1507_v21, %v1511_v22 }
 0x1f3   :  { %v1078_v57 = vadd.f32 %v6243_v40, %v269_v48  ;;  %v1086_v58 = vmax.f32 %v1035_v3, 0.0  ;;  %v1522_v3 = vld [vmem:[#allocation9 + $0xd40] sm:$0xff] }
 0x1f4   :  { %4313 = vmatpush1.bf16.msra.mxu0 %v5599_v52  ;;  %4477 = vmatpush1.bf16.msra.mxu1 %v5601_v53  ;;  %v1482_v52 = vld [vmem:[#allocation9 + $0xc00] sm:$0xff] }
 0x1f5   :  { %4314 = vmatprep.subr.bf16.mxu0 %v5608_v54  ;;  %4478 = vmatprep.subr.bf16.mxu1 %v5610_v56  ;;  %v1486_v53 = vld [vmem:[#allocation9 + $0xc20] sm:$0xff]  ;;  %v1483_v54 = vld [vmem:[#allocation9 + $0xc08] sm:$0xff]  ;;  %v1089_v8 = vmax.f32 %v1078_v57, 0.0  ;;  %v6255_v9 = vpack.c.bf16 %v1086_v58, %v1086_v58 }
 0x1f6   :  { %v1487_v56 = vld [vmem:[#allocation9 + $0xc28] sm:$0xff]  ;;  %v5656_v0 = vcombine.high %v1482_v52, %v1486_v53  ;;  %v5655_v61 = vcombine.low %v1482_v52, %v1486_v53  ;;  %v1534_v57 = vld [vmem:[#allocation9 + $0xda0] sm:$0xff] }
 0x1f7   :  { %v5658_v60 = vcombine.high %v1483_v54, %v1487_v56  ;;  %v5657_v40 = vcombine.low %v1483_v54, %v1487_v56  ;;  %v6257_v12 = vpack.c.bf16 %v1089_v8, %v1089_v8  ;;  %v1530_v56 = vld [vmem:[#allocation9 + $0xd80] sm:$0xff]  ;;  %v1531_v58 = vld [vmem:[#allocation9 + $0xd88] sm:$0xff] }
 0x1f8   :  { %4315 = vmatpush1.bf16.msra.mxu0 %v5607_v62  ;;  %4479 = vmatpush1.bf16.msra.mxu1 %v5609_v63  ;;  %v1490_v62 = vld [vmem:[#allocation9 + $0xc40] sm:$0xff]  ;;  %v1543_v8 = vld [vmem:[#allocation9 + $0xde8] sm:$0xff] }
 0x1f9   :  { %4316 = vmatprep.subr.bf16.mxu0 %v5616_v4  ;;  %4480 = vmatprep.subr.bf16.mxu1 %v5618_v55  ;;  %v1494_v63 = vld [vmem:[#allocation9 + $0xc60] sm:$0xff]  ;;  %v1491_v4 = vld [vmem:[#allocation9 + $0xc48] sm:$0xff] }
 0x1fa   :  { %v1495_v55 = vld [vmem:[#allocation9 + $0xc68] sm:$0xff]  ;;  %v5664_v1 = vcombine.high %v1490_v62, %v1494_v63  ;;  %v5663_v13 = vcombine.low %v1490_v62, %v1494_v63  ;;  %v1538_v63 = vld [vmem:[#allocation9 + $0xdc0] sm:$0xff] }
 0x1fb   :  { %v5665_v14 = vcombine.low %v1491_v4, %v1495_v55 }
 0x1fc   :  { %4317 = vmatpush1.bf16.msra.mxu0 %v5615_v2  ;;  %4481 = vmatpush1.bf16.msra.mxu1 %v5617_v5  ;;  %v5666_v2 = vcombine.high %v1491_v4, %v1495_v55  ;;  %v1498_v5 = vld [vmem:[#allocation9 + $0xc80] sm:$0xff]  ;;  %v1539_v55 = vld [vmem:[#allocation9 + $0xdc8] sm:$0xff] }
 0x1fd   :  { %4318 = vmatprep.subr.bf16.mxu0 %v5624_v6  ;;  %4482 = vmatprep.subr.bf16.mxu1 %v5626_v10  ;;  %v1502_v6 = vld [vmem:[#allocation9 + $0xca0] sm:$0xff]  ;;  %v1499_v10 = vld [vmem:[#allocation9 + $0xc88] sm:$0xff] }
 0x1fe   :  { %v5671_v28 = vcombine.low %v1498_v5, %v1502_v6  ;;  %v5673_v30 = vcombine.low %v1499_v10, %v1503_v11  ;;  %v1542_v4 = vld [vmem:[#allocation9 + $0xde0] sm:$0xff] }
 0x200   :  { %4319 = vmatpush1.bf16.msra.mxu0 %v5623_v17  ;;  %4483 = vmatpush1.bf16.msra.mxu1 %v5625_v18  ;;  %v5672_v17 = vcombine.high %v1498_v5, %v1502_v6  ;;  %v5674_v18 = vcombine.high %v1499_v10, %v1503_v11  ;;  %v1546_v5 = vld [vmem:[#allocation9 + $0xe00] sm:$0xff]  ;;  %v1547_v10 = vld [vmem:[#allocation9 + $0xe08] sm:$0xff] }
 0x201   :  { %4320 = vmatprep.subr.bf16.mxu0 %v5632_v19  ;;  %4484 = vmatprep.subr.bf16.mxu1 %v5634_v20  ;;  %v1506_v19 = vld [vmem:[#allocation9 + $0xcc0] sm:$0xff]  ;;  %v1551_v11 = vld [vmem:[#allocation9 + $0xe28] sm:$0xff] }
 0x202   :  { %v1510_v20 = vld [vmem:[#allocation9 + $0xce0] sm:$0xff] }
 0x203   :  { %v5680_v33 = vcombine.high %v1506_v19, %v1510_v20  ;;  %v5679_v41 = vcombine.low %v1506_v19, %v1510_v20  ;;  %v1550_v6 = vld [vmem:[#allocation9 + $0xe20] sm:$0xff] }
 0x204   :  { %4321 = vmatpush1.bf16.msra.mxu0 %v5631_v34  ;;  %4485 = vmatpush1.bf16.msra.mxu1 %v5633_v35  ;;  %v5682_v34 = vcombine.high %v1507_v21, %v1511_v22  ;;  %v1514_v35 = vld [vmem:[#allocation9 + $0xd00] sm:$0xff]  ;;  %v1555_v21 = vld [vmem:[#allocation9 + $0xe48] sm:$0xff] }
 0x205   :  { %4322 = vmatprep.subr.bf16.mxu0 %v5640_v37  ;;  %4486 = vmatprep.subr.bf16.mxu1 %v5642_v38  ;;  %v1518_v37 = vld [vmem:[#allocation9 + $0xd20] sm:$0xff]  ;;  %v1515_v38 = vld [vmem:[#allocation9 + $0xd08] sm:$0xff] }
 0x206   :  { %v5688_v46 = vcombine.high %v1514_v35, %v1518_v37  ;;  %v5690_v48 = vcombine.high %v1515_v38, %v1519_v39  ;;  %v5689_v52 = vcombine.low %v1515_v38, %v1519_v39  ;;  %v1554_v19 = vld [vmem:[#allocation9 + $0xe40] sm:$0xff]  ;;  %v1559_v22 = vld [vmem:[#allocation9 + $0xe68] sm:$0xff] }
 0x207   :  { %v1558_v20 = vld [vmem:[#allocation9 + $0xe60] sm:$0xff]  ;;  %v1563_v38 = vld [vmem:[#allocation9 + $0xe88] sm:$0xff] }
 0x208   :  { %4323 = vmatpush1.bf16.msra.mxu0 %v5639_v49  ;;  %4487 = vmatpush1.bf16.msra.mxu1 %v5641_v24  ;;  %v1526_v49 = vld [vmem:[#allocation9 + $0xd60] sm:$0xff]  ;;  %v1523_v24 = vld [vmem:[#allocation9 + $0xd48] sm:$0xff] }
 0x209   :  { %4324 = vmatprep.subr.bf16.mxu0 %v5648_v50  ;;  %4488 = vmatprep.subr.bf16.mxu1 %v5650_v51  ;;  %v1527_v50 = vld [vmem:[#allocation9 + $0xd68] sm:$0xff]  ;;  %v5687_v51 = vcombine.low %v1514_v35, %v1518_v37  ;;  %v5696_v53 = vcombine.high %v1522_v3, %v1526_v49  ;;  %v1562_v35 = vld [vmem:[#allocation9 + $0xe80] sm:$0xff] }
 0x20a   :  { %v5698_v54 = vcombine.high %v1523_v24, %v1527_v50  ;;  %v1566_v37 = vld [vmem:[#allocation9 + $0xea0] sm:$0xff]  ;;  %v1567_v39 = vld [vmem:[#allocation9 + $0xea8] sm:$0xff] }
 0x20c   :  { %4325 = vmatpush1.bf16.msra.mxu0 %v5647_v26  ;;  %4489 = vmatpush1.bf16.msra.mxu1 %v5649_v59  ;;  %v1535_v26 = vld [vmem:[#allocation9 + $0xda8] sm:$0xff]  ;;  %v5695_v59 = vcombine.low %v1522_v3, %v1526_v49  ;;  %v1570_v3 = vld [vmem:[#allocation9 + $0xec0] sm:$0xff] }
 0x20d   :  { %4335 = vmatprep.subr.bf16.mxu0 %v5656_v0  ;;  %4499 = vmatprep.subr.bf16.mxu1 %v5658_v60  ;;  %v5697_v0 = vcombine.low %v1523_v24, %v1527_v50  ;;  %v5704_v60 = vcombine.high %v1530_v56, %v1534_v57  ;;  %v5706_v62 = vcombine.high %v1531_v58, %v1535_v26  ;;  %v1574_v49 = vld [vmem:[#allocation9 + $0xee0] sm:$0xff]  ;;  %v1571_v24 = vld [vmem:[#allocation9 + $0xec8] sm:$0xff] }
 0x20e   :  { %v1575_v50 = vld [vmem:[#allocation9 + $0xee8] sm:$0xff] }
 0x20f   :  { %4327 = vmatmul.mubr.bf16.vlgmr.msra.gmra.mrb[8].mxu0 %v6255_v9  ;;  %4491 = vmatmul.mubr.bf16.vlgmr.msra.gmra.mrb[8].mxu1 %v6255_v9 }
 0x210   :  { %4336 = vmatpush1.bf16.msra.mxu0 %v5655_v61  ;;  %4500 = vmatpush1.bf16.msra.mxu1 %v5657_v40  ;;  %v5703_v61 = vcombine.low %v1530_v56, %v1534_v57  ;;  %v5705_v40 = vcombine.low %v1531_v58, %v1535_v26  ;;  %v1578_v56 = vld [vmem:[#allocation9 + $0xf00] sm:$0xff]  ;;  %v1579_v58 = vld [vmem:[#allocation9 + $0xf08] sm:$0xff] }
 0x211   :  { %4337 = vmatprep.subr.bf16.mxu0 %v5664_v1  ;;  %4501 = vmatprep.subr.bf16.mxu1 %v5666_v2  ;;  %v5712_v1 = vcombine.high %v1538_v63, %v1542_v4  ;;  %v5714_v2 = vcombine.high %v1539_v55, %v1543_v8  ;;  %v1582_v57 = vld [vmem:[#allocation9 + $0xf20] sm:$0xff]  ;;  %v1583_v26 = vld [vmem:[#allocation9 + $0xf28] sm:$0xff] }
 0x212   :  { %4367 = vmatprep.mubr.bf16.mxu0 %v6257_v12  ;;  %4531 = vmatprep.mubr.bf16.mxu1 %v6257_v12 }
 0x214   :  { %4338 = vmatpush1.bf16.msra.mxu0 %v5663_v13  ;;  %4502 = vmatpush1.bf16.msra.mxu1 %v5665_v14  ;;  %v5711_v13 = vcombine.low %v1538_v63, %v1542_v4  ;;  %v5713_v14 = vcombine.low %v1539_v55, %v1543_v8  ;;  %v1586_v63 = vld [vmem:[#allocation9 + $0xf40] sm:$0xff]  ;;  %v1587_v55 = vld [vmem:[#allocation9 + $0xf48] sm:$0xff] }
 0x215   :  { %4339 = vmatprep.subr.bf16.mxu0 %v5672_v17  ;;  %4503 = vmatprep.subr.bf16.mxu1 %v5674_v18  ;;  %v5720_v17 = vcombine.high %v1546_v5, %v1550_v6  ;;  %v5722_v18 = vcombine.high %v1547_v10, %v1551_v11  ;;  %v1590_v4 = vld [vmem:[#allocation9 + $0xf60] sm:$0xff]  ;;  %v1591_v8 = vld [vmem:[#allocation9 + $0xf68] sm:$0xff] }
 0x218   :  { %4340 = vmatpush1.bf16.msra.mxu0 %v5671_v28  ;;  %4504 = vmatpush1.bf16.msra.mxu1 %v5673_v30  ;;  %v5719_v28 = vcombine.low %v1546_v5, %v1550_v6  ;;  %v5721_v30 = vcombine.low %v1547_v10, %v1551_v11  ;;  %v5762_v5 = vcombine.high %v1587_v55, %v1591_v8  ;;  %v1594_v6 = vld [vmem:[#allocation9 + $0xf80] sm:$0xff]  ;;  %v1595_v11 = vld [vmem:[#allocation9 + $0xf88] sm:$0xff] }
 0x219   :  { %4341 = vmatprep.subr.bf16.mxu0 %v5680_v33  ;;  %4505 = vmatprep.subr.bf16.mxu1 %v5682_v34  ;;  %v5728_v33 = vcombine.high %v1554_v19, %v1558_v20  ;;  %v5730_v34 = vcombine.high %v1555_v21, %v1559_v22  ;;  %v1598_v10 = vld [vmem:[#allocation9 + $0xfa0] sm:$0xff] }
 0x21c   :  { %4342 = vmatpush1.bf16.msra.mxu0 %v5679_v41  ;;  %4506 = vmatpush1.bf16.msra.mxu1 %v5681_v45  ;;  %v5727_v41 = vcombine.low %v1554_v19, %v1558_v20  ;;  %v5729_v45 = vcombine.low %v1555_v21, %v1559_v22  ;;  %v5768_v20 = vcombine.high %v1594_v6, %v1598_v10  ;;  %v1602_v22 = vld [vmem:[#allocation9 + $0xfc0] sm:$0xff] }
 0x21d   :  { %4343 = vmatprep.subr.bf16.mxu0 %v5688_v46  ;;  %4507 = vmatprep.subr.bf16.mxu1 %v5690_v48  ;;  %v5736_v46 = vcombine.high %v1562_v35, %v1566_v37  ;;  %v5738_v48 = vcombine.high %v1563_v38, %v1567_v39 }
 0x220   :  { %4344 = vmatpush1.bf16.msra.mxu0 %v5687_v51  ;;  %4508 = vmatpush1.bf16.msra.mxu1 %v5689_v52  ;;  %v5735_v51 = vcombine.low %v1562_v35, %v1566_v37  ;;  %v5737_v52 = vcombine.low %v1563_v38, %v1567_v39 }
 0x221   :  { %4345 = vmatprep.subr.bf16.mxu0 %v5696_v53  ;;  %4509 = vmatprep.subr.bf16.mxu1 %v5698_v54  ;;  %v5744_v53 = vcombine.high %v1570_v3, %v1574_v49  ;;  %v5746_v54 = vcombine.high %v1571_v24, %v1575_v50 }
 0x224   :  { %4346 = vmatpush1.bf16.msra.mxu0 %v5695_v59  ;;  %4510 = vmatpush1.bf16.msra.mxu1 %v5697_v0  ;;  %v5743_v59 = vcombine.low %v1570_v3, %v1574_v49  ;;  %v5745_v0 = vcombine.low %v1571_v24, %v1575_v50 }
 0x225   :  { %4347 = vmatprep.subr.bf16.mxu0 %v5704_v60  ;;  %4511 = vmatprep.subr.bf16.mxu1 %v5706_v62  ;;  %v5752_v60 = vcombine.high %v1578_v56, %v1582_v57  ;;  %v5754_v62 = vcombine.high %v1579_v58, %v1583_v26 }
 0x228   :  { %4348 = vmatpush1.bf16.msra.mxu0 %v5703_v61  ;;  %4512 = vmatpush1.bf16.msra.mxu1 %v5705_v40  ;;  %v5751_v61 = vcombine.low %v1578_v56, %v1582_v57  ;;  %v5753_v40 = vcombine.low %v1579_v58, %v1583_v26 }
 0x229   :  { %4349 = vmatprep.subr.bf16.mxu0 %v5712_v1  ;;  %4513 = vmatprep.subr.bf16.mxu1 %v5714_v2  ;;  %v264_v1 = vsub.s32 6, %v6185_v23  ;;  %v5760_v2 = vcombine.high %v1586_v63, %v1590_v4 }
 0x22c   :  { %4350 = vmatpush1.bf16.msra.mxu0 %v5711_v13  ;;  %4514 = vmatpush1.bf16.msra.mxu1 %v5713_v14  ;;  %v1599_v13 = vld [vmem:[#allocation9 + $0xfa8] sm:$0xff]  ;;  %v5759_v14 = vcombine.low %v1586_v63, %v1590_v4  ;;  %v1121_v63 = vld [vmem:[#allocation9 + $0xb8] sm:$0xff] }
 0x22d   :  { %4351 = vmatprep.subr.bf16.mxu0 %v5720_v17  ;;  %4515 = vmatprep.subr.bf16.mxu1 %v5722_v18  ;;  %v5761_v17 = vcombine.low %v1587_v55, %v1591_v8  ;;  %v5866_v18 = vld [vmem:[#allocation8] sm:$0xff]  ;;  %v5770_v21 = vcombine.high %v1595_v11, %v1599_v13  ;;  %v5769_v35 = vcombine.low %v1595_v11, %v1599_v13 }
 0x22e   :  { %v265_v19 = vrot.slane %v5866_v18, %v264_v1  ;;  %v1136_v18 = vld [vmem:[#allocation9 + $0x130] sm:$0xff] }
 0x230   :  { %4352 = vmatpush1.bf16.msra.mxu0 %v5719_v28  ;;  %4516 = vmatpush1.bf16.msra.mxu1 %v5721_v30  ;;  %v1606_v28 = vld [vmem:[#allocation9 + $0xfe0] sm:$0xff]  ;;  %v1603_v30 = vld [vmem:[#allocation9 + $0xfc8] sm:$0xff]  ;;  %v1076_v37 = vadd.f32 %v6239_v36, %v265_v19  ;;  %v1109_v36 = vld [vmem:[#allocation9 + $0x58] sm:$0xff] }
 0x231   :  { %4353 = vmatprep.subr.bf16.mxu0 %v5728_v33  ;;  %4517 = vmatprep.subr.bf16.mxu1 %v5730_v34  ;;  %v1607_v33 = vld [vmem:[#allocation9 + $0xfe8] sm:$0xff]  ;;  %v5767_v34 = vcombine.low %v1594_v6, %v1598_v10  ;;  %v5776_v38 = vcombine.high %v1602_v22, %v1606_v28  ;;  %v5775_v3 = vcombine.low %v1602_v22, %v1606_v28  ;;  %v1129_v6 = vld [vmem:[#allocation9 + $0xf8] sm:$0xff] }
 0x232   :  { %v5778_v39 = vcombine.high %v1603_v30, %v1607_v33  ;;  %v5777_v49 = vcombine.low %v1603_v30, %v1607_v33  ;;  %v1088_v24 = vmax.f32 %v1076_v37, 0.0  ;;  %v1137_v19 = vld [vmem:[#allocation9 + $0x138] sm:$0xff]  ;;  %v1140_v30 = vld [vmem:[#allocation9 + $0x150] sm:$0xff] }
 0x233   :  { %v1144_v33 = vld [vmem:[#allocation9 + $0x170] sm:$0xff] }
 0x234   :  { %4354 = vmatpush1.bf16.msra.mxu0 %v5727_v41  ;;  %4518 = vmatpush1.bf16.msra.mxu1 %v5729_v45  ;;  %v1100_v41 = vld [vmem:[#allocation9 + $0x10] sm:$0xff]  ;;  %v6267_v57 = vpack.c.bf16 %v1088_v24, %v1088_v24 }
 0x235   :  { %4355 = vmatprep.subr.bf16.mxu0 %v5736_v46  ;;  %4519 = vmatprep.subr.bf16.mxu1 %v5738_v48  ;;  %v1104_v45 = vld [vmem:[#allocation9 + $0x30] sm:$0xff]  ;;  %v1101_v46 = vld [vmem:[#allocation9 + $0x18] sm:$0xff] }
 0x236   :  { %v1105_v48 = vld [vmem:[#allocation9 + $0x38] sm:$0xff]  ;;  %v5276_v50 = vcombine.high %v1100_v41, %v1104_v45  ;;  %v5275_v56 = vcombine.low %v1100_v41, %v1104_v45  ;;  %v1148_v45 = vld [vmem:[#allocation9 + $0x190] sm:$0xff] }
 0x237   :  { %v5277_v58 = vcombine.low %v1101_v46, %v1105_v48 }
 0x238   :  { %4356 = vmatpush1.bf16.msra.mxu0 %v5735_v51  ;;  %4520 = vmatpush1.bf16.msra.mxu1 %v5737_v52  ;;  %v5278_v51 = vcombine.high %v1101_v46, %v1105_v48  ;;  %v1108_v52 = vld [vmem:[#allocation9 + $0x50] sm:$0xff]  ;;  %v1149_v48 = vld [vmem:[#allocation9 + $0x198] sm:$0xff] }
 0x239   :  { %4357 = vmatprep.subr.bf16.mxu0 %v5744_v53  ;;  %4521 = vmatprep.subr.bf16.mxu1 %v5746_v54  ;;  %v1112_v53 = vld [vmem:[#allocation9 + $0x70] sm:$0xff]  ;;  %v1113_v54 = vld [vmem:[#allocation9 + $0x78] sm:$0xff] }
 0x23a   :  { %v5284_v26 = vcombine.high %v1108_v52, %v1112_v53  ;;  %v5283_v4 = vcombine.low %v1108_v52, %v1112_v53  ;;  %v5285_v55 = vcombine.low %v1109_v36, %v1113_v54  ;;  %v1152_v46 = vld [vmem:[#allocation9 + $0x1b0] sm:$0xff] }
 0x23b   :  { %v1156_v52 = vld [vmem:[#allocation9 + $0x1d0] sm:$0xff] }
 0x23c   :  { %4358 = vmatpush1.bf16.msra.mxu0 %v5743_v59  ;;  %4522 = vmatpush1.bf16.msra.mxu1 %v5745_v0  ;;  %v5286_v59 = vcombine.high %v1109_v36, %v1113_v54  ;;  %v1116_v0 = vld [vmem:[#allocation9 + $0x90] sm:$0xff]  ;;  %v1157_v36 = vld [vmem:[#allocation9 + $0x1d8] sm:$0xff] }
 0x23d   :  { %4359 = vmatprep.subr.bf16.mxu0 %v5752_v60  ;;  %4523 = vmatprep.subr.bf16.mxu1 %v5754_v62  ;;  %v1120_v60 = vld [vmem:[#allocation9 + $0xb0] sm:$0xff]  ;;  %v1117_v62 = vld [vmem:[#allocation9 + $0x98] sm:$0xff] }
 0x23e   :  { %v5292_v8 = vcombine.high %v1116_v0, %v1120_v60  ;;  %v5291_v10 = vcombine.low %v1116_v0, %v1120_v60  ;;  %v5293_v11 = vcombine.low %v1117_v62, %v1121_v63  ;;  %v1160_v53 = vld [vmem:[#allocation9 + $0x1f0] sm:$0xff]  ;;  %v1161_v54 = vld [vmem:[#allocation9 + $0x1f8] sm:$0xff] }
 0x23f   :  { %v1164_v0 = vld [vmem:[#allocation9 + $0x210] sm:$0xff] }
 0x240   :  { %4360 = vmatpush1.bf16.msra.mxu0 %v5751_v61  ;;  %4524 = vmatpush1.bf16.msra.mxu1 %v5753_v40  ;;  %v5294_v61 = vcombine.high %v1117_v62, %v1121_v63  ;;  %v1124_v40 = vld [vmem:[#allocation9 + $0xd0] sm:$0xff]  ;;  %v1165_v62 = vld [vmem:[#allocation9 + $0x218] sm:$0xff] }
 0x241   :  { %4361 = vmatprep.subr.bf16.mxu0 %v5760_v2  ;;  %4525 = vmatprep.subr.bf16.mxu1 %v5762_v5  ;;  %v1128_v2 = vld [vmem:[#allocation9 + $0xf0] sm:$0xff]  ;;  %v1125_v5 = vld [vmem:[#allocation9 + $0xd8] sm:$0xff] }
 0x242   :  { %v5300_v13 = vcombine.high %v1124_v40, %v1128_v2  ;;  %v1168_v60 = vld [vmem:[#allocation9 + $0x230] sm:$0xff]  ;;  %v1169_v63 = vld [vmem:[#allocation9 + $0x238] sm:$0xff] }
 0x244   :  { %4362 = vmatpush1.bf16.msra.mxu0 %v5759_v14  ;;  %4526 = vmatpush1.bf16.msra.mxu1 %v5761_v17  ;;  %v5302_v14 = vcombine.high %v1125_v5, %v1129_v6  ;;  %v1132_v17 = vld [vmem:[#allocation9 + $0x110] sm:$0xff] }
 0x245   :  { %4363 = vmatprep.subr.bf16.mxu0 %v5768_v20  ;;  %4527 = vmatprep.subr.bf16.mxu1 %v5770_v21  ;;  %v5299_v20 = vcombine.low %v1124_v40, %v1128_v2  ;;  %v5301_v21 = vcombine.low %v1125_v5, %v1129_v6  ;;  %v5308_v22 = vcombine.high %v1132_v17, %v1136_v18  ;;  %v1172_v40 = vld [vmem:[#allocation9 + $0x250] sm:$0xff]  ;;  %v1173_v5 = vld [vmem:[#allocation9 + $0x258] sm:$0xff] }
 0x246   :  { %v5307_v37 = vcombine.low %v1132_v17, %v1136_v18  ;;  %v1176_v2 = vld [vmem:[#allocation9 + $0x270] sm:$0xff]  ;;  %v1177_v6 = vld [vmem:[#allocation9 + $0x278] sm:$0xff] }
 0x247   :  { %v1180_v17 = vld [vmem:[#allocation9 + $0x290] sm:$0xff] }
 0x248   :  { %4364 = vmatpush1.bf16.msra.mxu0 %v5767_v34  ;;  %4528 = vmatpush1.bf16.msra.mxu1 %v5769_v35  ;;  %v1141_v34 = vld [vmem:[#allocation9 + $0x158] sm:$0xff]  ;;  %v1184_v18 = vld [vmem:[#allocation9 + $0x2b0] sm:$0xff] }
 0x249   :  { %4365 = vmatprep.subr.bf16.mxu0 %v5776_v38  ;;  %4529 = vmatprep.subr.bf16.mxu1 %v5778_v39  ;;  %v1145_v35 = vld [vmem:[#allocation9 + $0x178] sm:$0xff]  ;;  %v5316_v39 = vcombine.high %v1140_v30, %v1144_v33 }
 0x24a   :  { %v5318_v41 = vcombine.high %v1141_v34, %v1145_v35  ;;  %v5317_v24 = vcombine.low %v1141_v34, %v1145_v35  ;;  %v1189_v34 = vld [vmem:[#allocation9 + $0x2d8] sm:$0xff] }
 0x24b   :  { %v1193_v35 = vld [vmem:[#allocation9 + $0x2f8] sm:$0xff] }
 0x24c   :  { %4366 = vmatpush1.bf16.msra.mxu0 %v5775_v3  ;;  %4530 = vmatpush1.bf16.msra.mxu1 %v5777_v49  ;;  %v1153_v3 = vld [vmem:[#allocation9 + $0x1b8] sm:$0xff]  ;;  %v5315_v49 = vcombine.low %v1140_v30, %v1144_v33  ;;  %v1188_v30 = vld [vmem:[#allocation9 + $0x2d0] sm:$0xff] }
 0x24d   :  { %4540 = vmatprep.subr.bf16.mxu0 %v5276_v50  ;;  %4704 = vmatprep.subr.bf16.mxu1 %v5278_v51  ;;  %v5324_v50 = vcombine.high %v1148_v45, %v1152_v46  ;;  %v5326_v51 = vcombine.high %v1149_v48, %v1153_v3  ;;  %v1192_v33 = vld [vmem:[#allocation9 + $0x2f0] sm:$0xff] }
 0x24f   :  { %4368 = vmatmul.mubr.bf16.vlgmr.msra.gmra.mrb[8].mxu0 %v6267_v57  ;;  %4532 = vmatmul.mubr.bf16.vlgmr.msra.gmra.mrb[8].mxu1 %v6267_v57 }
 0x250   :  { %4541 = vmatpush1.bf16.msra.mxu0 %v5275_v56  ;;  %4572 = vmatprep.mubr.bf16.mxu0 %v6199_v43  ;;  %v5323_v56 = vcombine.low %v1148_v45, %v1152_v46  ;;  %v1196_v45 = vld [vmem:[#allocation9 + $0x310] sm:$0xff] }
 0x251   :  { %4705 = vmatpush1.bf16.msra.mxu1 %v5277_v58  ;;  %4736 = vmatprep.mubr.bf16.mxu1 %v6199_v43  ;;  %v1133_v43 = vld [vmem:[#allocation9 + $0x118] sm:$0xff]  ;;  %v5325_v58 = vcombine.low %v1149_v48, %v1153_v3  ;;  %v1200_v46 = vld [vmem:[#allocation9 + $0x330] sm:$0xff] }
 0x252   :  { %4542 = vmatprep.subr.bf16.mxu0 %v5284_v26  ;;  %4706 = vmatprep.subr.bf16.mxu1 %v5286_v59  ;;  %v5310_v28 = vcombine.high %v1133_v43, %v1137_v19  ;;  %v5309_v38 = vcombine.low %v1133_v43, %v1137_v19  ;;  %v5332_v26 = vcombine.high %v1156_v52, %v1160_v53  ;;  %v1181_v43 = vld [vmem:[#allocation9 + $0x298] sm:$0xff] }
 0x253   :  { %v5334_v59 = vcombine.high %v1157_v36, %v1161_v54  ;;  %v1185_v19 = vld [vmem:[#allocation9 + $0x2b8] sm:$0xff] }
 0x254   :  { %4543 = vmatpush1.bf16.msra.mxu0 %v5283_v4  ;;  %v5331_v4 = vcombine.low %v1156_v52, %v1160_v53  ;;  %v1197_v48 = vld [vmem:[#allocation9 + $0x318] sm:$0xff]  ;;  %v1204_v52 = vld [vmem:[#allocation9 + $0x350] sm:$0xff] }
 0x255   :  { %4707 = vmatpush1.bf16.msra.mxu1 %v5285_v55  ;;  %4544 = vmatprep.subr.bf16.mxu0 %v5292_v8  ;;  %v5333_v55 = vcombine.low %v1157_v36, %v1161_v54  ;;  %v5340_v8 = vcombine.high %v1164_v0, %v1168_v60  ;;  %v1201_v3 = vld [vmem:[#allocation9 + $0x338] sm:$0xff]  ;;  %v1208_v53 = vld [vmem:[#allocation9 + $0x370] sm:$0xff] }
 0x256   :  { %4708 = vmatprep.subr.bf16.mxu1 %v5294_v61  ;;  %v5342_v61 = vcombine.high %v1165_v62, %v1169_v63  ;;  %v1205_v36 = vld [vmem:[#allocation9 + $0x358] sm:$0xff] }
 0x257   :  { %v1209_v54 = vld [vmem:[#allocation9 + $0x378] sm:$0xff] }
 0x258   :  { %4545 = vmatpush1.bf16.msra.mxu0 %v5291_v10  ;;  %v5339_v10 = vcombine.low %v1164_v0, %v1168_v60  ;;  %v1212_v0 = vld [vmem:[#allocation9 + $0x390] sm:$0xff] }
 0x259   :  { %4709 = vmatpush1.bf16.msra.mxu1 %v5293_v11  ;;  %4546 = vmatprep.subr.bf16.mxu0 %v5300_v13  ;;  %v5341_v11 = vcombine.low %v1165_v62, %v1169_v63  ;;  %v5348_v13 = vcombine.high %v1172_v40, %v1176_v2  ;;  %v1216_v60 = vld [vmem:[#allocation9 + $0x3b0] sm:$0xff]  ;;  %v1213_v62 = vld [vmem:[#allocation9 + $0x398] sm:$0xff] }
 0x25a   :  { %4710 = vmatprep.subr.bf16.mxu1 %v5302_v14  ;;  %v5350_v14 = vcombine.high %v1173_v5, %v1177_v6  ;;  %v1217_v63 = vld [vmem:[#allocation9 + $0x3b8] sm:$0xff] }
 0x25c   :  { %4547 = vmatpush1.bf16.msra.mxu0 %v5299_v20  ;;  %v5347_v20 = vcombine.low %v1172_v40, %v1176_v2  ;;  %v1220_v40 = vld [vmem:[#allocation9 + $0x3d0] sm:$0xff] }
 0x25d   :  { %4711 = vmatpush1.bf16.msra.mxu1 %v5301_v21  ;;  %4548 = vmatprep.subr.bf16.mxu0 %v5308_v22  ;;  %v5349_v21 = vcombine.low %v1173_v5, %v1177_v6  ;;  %v5356_v22 = vcombine.high %v1180_v17, %v1184_v18  ;;  %v1224_v2 = vld [vmem:[#allocation9 + $0x3f0] sm:$0xff]  ;;  %v1221_v5 = vld [vmem:[#allocation9 + $0x3d8] sm:$0xff] }
 0x25e   :  { %4712 = vmatprep.subr.bf16.mxu1 %v5310_v28  ;;  %v5358_v28 = vcombine.high %v1181_v43, %v1185_v19  ;;  %v1225_v6 = vld [vmem:[#allocation9 + $0x3f8] sm:$0xff] }
 0x260   :  { %4549 = vmatpush1.bf16.msra.mxu0 %v5307_v37  ;;  %v5355_v37 = vcombine.low %v1180_v17, %v1184_v18  ;;  %v1228_v17 = vld [vmem:[#allocation9 + $0x410] sm:$0xff] }
 0x261   :  { %4713 = vmatpush1.bf16.msra.mxu1 %v5309_v38  ;;  %4550 = vmatprep.subr.bf16.mxu0 %v5316_v39  ;;  %v5357_v38 = vcombine.low %v1181_v43, %v1185_v19  ;;  %v5364_v39 = vcombine.high %v1188_v30, %v1192_v33  ;;  %v1232_v18 = vld [vmem:[#allocation9 + $0x430] sm:$0xff]  ;;  %v1229_v43 = vld [vmem:[#allocation9 + $0x418] sm:$0xff] }
 0x262   :  { %4714 = vmatprep.subr.bf16.mxu1 %v5318_v41  ;;  %v5366_v41 = vcombine.high %v1189_v34, %v1193_v35  ;;  %v1233_v19 = vld [vmem:[#allocation9 + $0x438] sm:$0xff] }
 0x264   :  { %4551 = vmatpush1.bf16.msra.mxu0 %v5315_v49  ;;  %v5363_v49 = vcombine.low %v1188_v30, %v1192_v33  ;;  %v1236_v30 = vld [vmem:[#allocation9 + $0x450] sm:$0xff] }
 0x265   :  { %4715 = vmatpush1.bf16.msra.mxu1 %v5317_v24  ;;  %4552 = vmatprep.subr.bf16.mxu0 %v5324_v50  ;;  %v5365_v24 = vcombine.low %v1189_v34, %v1193_v35  ;;  %v5372_v50 = vcombine.high %v1196_v45, %v1200_v46  ;;  %v1240_v33 = vld [vmem:[#allocation9 + $0x470] sm:$0xff]  ;;  %v5403_v34 = vcombine.low %v1228_v17, %v1232_v18  ;;  %v1237_v35 = vld [vmem:[#allocation9 + $0x458] sm:$0xff] }
 0x266   :  { %4716 = vmatprep.subr.bf16.mxu1 %v5326_v51  ;;  %v5374_v51 = vcombine.high %v1197_v48, %v1201_v3 }
 0x268   :  { %4553 = vmatpush1.bf16.msra.mxu0 %v5323_v56  ;;  %v5371_v56 = vcombine.low %v1196_v45, %v1200_v46  ;;  %v1248_v45 = vld [vmem:[#allocation9 + $0x4b0] sm:$0xff] }
 0x269   :  { %4717 = vmatpush1.bf16.msra.mxu1 %v5325_v58  ;;  %4554 = vmatprep.subr.bf16.mxu0 %v5332_v26  ;;  %v5373_v58 = vcombine.low %v1197_v48, %v1201_v3  ;;  %v5380_v26 = vcombine.high %v1204_v52, %v1208_v53  ;;  %v1245_v48 = vld [vmem:[#allocation9 + $0x498] sm:$0xff] }
 0x26a   :  { %4718 = vmatprep.subr.bf16.mxu1 %v5334_v59  ;;  %v5382_v59 = vcombine.high %v1205_v36, %v1209_v54  ;;  %v1249_v3 = vld [vmem:[#allocation9 + $0x4b8] sm:$0xff] }
 0x26c   :  { %4555 = vmatpush1.bf16.msra.mxu0 %v5331_v4  ;;  %v5379_v4 = vcombine.low %v1204_v52, %v1208_v53  ;;  %v1252_v52 = vld [vmem:[#allocation9 + $0x4d0] sm:$0xff] }
 0x26d   :  { %4719 = vmatpush1.bf16.msra.mxu1 %v5333_v55  ;;  %4556 = vmatprep.subr.bf16.mxu0 %v5340_v8  ;;  %v5381_v55 = vcombine.low %v1205_v36, %v1209_v54  ;;  %v5388_v8 = vcombine.high %v1212_v0, %v1216_v60  ;;  %v1256_v53 = vld [vmem:[#allocation9 + $0x4f0] sm:$0xff]  ;;  %v1253_v36 = vld [vmem:[#allocation9 + $0x4d8] sm:$0xff] }
 0x26e   :  { %4720 = vmatprep.subr.bf16.mxu1 %v5342_v61  ;;  %v5390_v61 = vcombine.high %v1213_v62, %v1217_v63  ;;  %v1257_v54 = vld [vmem:[#allocation9 + $0x4f8] sm:$0xff] }
 0x270   :  { %4557 = vmatpush1.bf16.msra.mxu0 %v5339_v10  ;;  %v5387_v10 = vcombine.low %v1212_v0, %v1216_v60  ;;  %v1264_v0 = vld [vmem:[#allocation9 + $0x530] sm:$0xff]  ;;  %v1261_v60 = vld [vmem:[#allocation9 + $0x518] sm:$0xff] }
 0x271   :  { %4721 = vmatpush1.bf16.msra.mxu1 %v5341_v11  ;;  %4558 = vmatprep.subr.bf16.mxu0 %v5348_v13  ;;  %v5389_v11 = vcombine.low %v1213_v62, %v1217_v63  ;;  %v5396_v13 = vcombine.high %v1220_v40, %v1224_v2  ;;  %v1265_v62 = vld [vmem:[#allocation9 + $0x538] sm:$0xff]  ;;  %v5429_v63 = vcombine.low %v1253_v36, %v1257_v54 }
 0x272   :  { %4722 = vmatprep.subr.bf16.mxu1 %v5350_v14  ;;  %v5398_v14 = vcombine.high %v1221_v5, %v1225_v6 }
 0x274   :  { %4559 = vmatpush1.bf16.msra.mxu0 %v5347_v20  ;;  %v5395_v20 = vcombine.low %v1220_v40, %v1224_v2  ;;  %v1269_v40 = vld [vmem:[#allocation9 + $0x558] sm:$0xff] }
 0x275   :  { %4723 = vmatpush1.bf16.msra.mxu1 %v5349_v21  ;;  %4560 = vmatprep.subr.bf16.mxu0 %v5356_v22  ;;  %v5397_v21 = vcombine.low %v1221_v5, %v1225_v6  ;;  %v5404_v22 = vcombine.high %v1228_v17, %v1232_v18  ;;  %v1273_v2 = vld [vmem:[#allocation9 + $0x578] sm:$0xff]  ;;  %v5437_v6 = vcombine.low %v1261_v60, %v1265_v62 }
 0x276   :  { %4724 = vmatprep.subr.bf16.mxu1 %v5358_v28  ;;  %v5406_v28 = vcombine.high %v1229_v43, %v1233_v19  ;;  %v1277_v17 = vld [vmem:[#allocation9 + $0x598] sm:$0xff] }
 0x277   :  { %v1281_v18 = vld [vmem:[#allocation9 + $0x5b8] sm:$0xff] }
 0x278   :  { %4561 = vmatpush1.bf16.msra.mxu0 %v5355_v37  ;;  %v1241_v37 = vld [vmem:[#allocation9 + $0x478] sm:$0xff] }
 0x279   :  { %4725 = vmatpush1.bf16.msra.mxu1 %v5357_v38  ;;  %4562 = vmatprep.subr.bf16.mxu0 %v5364_v39  ;;  %v5405_v38 = vcombine.low %v1229_v43, %v1233_v19  ;;  %v5412_v39 = vcombine.high %v1236_v30, %v1240_v33  ;;  %v5414_v46 = vcombine.high %v1237_v35, %v1241_v37 }
 0x27a   :  { %4726 = vmatprep.subr.bf16.mxu1 %v5366_v41  ;;  %v1244_v41 = vld [vmem:[#allocation9 + $0x490] sm:$0xff]  ;;  %v5445_v19 = vcombine.low %v1269_v40, %v1273_v2 }
 0x27c   :  { %4563 = vmatpush1.bf16.msra.mxu0 %v5363_v49  ;;  %v5411_v49 = vcombine.low %v1236_v30, %v1240_v33  ;;  %v1285_v30 = vld [vmem:[#allocation9 + $0x5d8] sm:$0xff] }
 0x27d   :  { %4727 = vmatpush1.bf16.msra.mxu1 %v5365_v24  ;;  %4564 = vmatprep.subr.bf16.mxu0 %v5372_v50  ;;  %v5413_v24 = vcombine.low %v1237_v35, %v1241_v37  ;;  %v5420_v50 = vcombine.high %v1244_v41, %v1248_v45  ;;  %v1289_v33 = vld [vmem:[#allocation9 + $0x5f8] sm:$0xff]  ;;  %v5453_v35 = vcombine.low %v1277_v17, %v1281_v18 }
 0x27e   :  { %4728 = vmatprep.subr.bf16.mxu1 %v5374_v51  ;;  %v5422_v51 = vcombine.high %v1245_v48, %v1249_v3 }
 0x280   :  { %4565 = vmatpush1.bf16.msra.mxu0 %v5371_v56  ;;  %v5419_v56 = vcombine.low %v1244_v41, %v1248_v45  ;;  %v1296_v41 = vld [vmem:[#allocation9 + $0x630] sm:$0xff]  ;;  %v1293_v45 = vld [vmem:[#allocation9 + $0x618] sm:$0xff] }
 0x281   :  { %4729 = vmatpush1.bf16.msra.mxu1 %v5373_v58  ;;  %4566 = vmatprep.subr.bf16.mxu0 %v5380_v26  ;;  %v5428_v58 = vcombine.high %v1252_v52, %v1256_v53  ;;  %v5430_v26 = vcombine.high %v1253_v36, %v1257_v54 }
 0x282   :  { %4730 = vmatprep.subr.bf16.mxu1 %v5382_v59  ;;  %v1260_v59 = vld [vmem:[#allocation9 + $0x510] sm:$0xff] }
 0x283   :  { %v5435_v5 = vcombine.low %v1260_v59, %v1264_v0 }
 0x284   :  { %4567 = vmatpush1.bf16.msra.mxu0 %v5379_v4  ;;  %v5436_v4 = vcombine.high %v1260_v59, %v1264_v0  ;;  %v1309_v59 = vld [vmem:[#allocation9 + $0x698] sm:$0xff] }
 0x285   :  { %4731 = vmatpush1.bf16.msra.mxu1 %v5381_v55  ;;  %4568 = vmatprep.subr.bf16.mxu0 %v5388_v8  ;;  %v5438_v55 = vcombine.high %v1261_v60, %v1265_v62  ;;  %v1268_v8 = vld [vmem:[#allocation9 + $0x550] sm:$0xff]  ;;  %v1313_v0 = vld [vmem:[#allocation9 + $0x6b8] sm:$0xff] }
 0x286   :  { %4732 = vmatprep.subr.bf16.mxu1 %v5390_v61  ;;  %v1272_v61 = vld [vmem:[#allocation9 + $0x570] sm:$0xff] }
 0x287   :  { %v5443_v43 = vcombine.low %v1268_v8, %v1272_v61 }
 0x288   :  { %4569 = vmatpush1.bf16.msra.mxu0 %v5387_v10  ;;  %v5444_v10 = vcombine.high %v1268_v8, %v1272_v61  ;;  %v1317_v8 = vld [vmem:[#allocation9 + $0x6d8] sm:$0xff] }
 0x289   :  { %4733 = vmatpush1.bf16.msra.mxu1 %v5389_v11  ;;  %4570 = vmatprep.subr.bf16.mxu0 %v5396_v13  ;;  %v5446_v11 = vcombine.high %v1269_v40, %v1273_v2  ;;  %v1276_v13 = vld [vmem:[#allocation9 + $0x590] sm:$0xff]  ;;  %v1321_v61 = vld [vmem:[#allocation9 + $0x6f8] sm:$0xff]  ;;  %v5485_v2 = vcombine.low %v1309_v59, %v1313_v0 }
 0x28a   :  { %4734 = vmatprep.subr.bf16.mxu1 %v5398_v14  ;;  %v1280_v14 = vld [vmem:[#allocation9 + $0x5b0] sm:$0xff] }
 0x28c   :  { %4571 = vmatpush1.bf16.msra.mxu0 %v5395_v20  ;;  %v5452_v20 = vcombine.high %v1276_v13, %v1280_v14 }
 0x28d   :  { %4735 = vmatpush1.bf16.msra.mxu1 %v5397_v21  ;;  %4581 = vmatprep.subr.bf16.mxu0 %v5404_v22  ;;  %v5454_v21 = vcombine.high %v1277_v17, %v1281_v18  ;;  %v1284_v22 = vld [vmem:[#allocation9 + $0x5d0] sm:$0xff]  ;;  %v5493_v18 = vcombine.low %v1317_v8, %v1321_v61 }
 0x28e   :  { %4745 = vmatprep.subr.bf16.mxu1 %v5406_v28  ;;  %v1288_v28 = vld [vmem:[#allocation9 + $0x5f0] sm:$0xff] }
 0x28f   :  { %4573 = vmatmul.mubr.bf16.vlgmr.msra.gmra.mrb[12].mxu0 %v6201_v44  ;;  %v5460_v37 = vcombine.high %v1284_v22, %v1288_v28 }
 0x290   :  { %4737 = vmatmul.mubr.bf16.vlgmr.msra.gmra.mrb[12].mxu1 %v6201_v44  ;;  %4582 = vmatpush1.bf16.msra.mxu0 %v5403_v34  ;;  %v5421_v44 = vcombine.low %v1245_v48, %v1249_v3  ;;  %v5451_v34 = vcombine.low %v1276_v13, %v1280_v14  ;;  %v5459_v48 = vcombine.low %v1284_v22, %v1288_v28  ;;  %v1325_v13 = vld [vmem:[#allocation9 + $0x718] sm:$0xff] }
 0x291   :  { %4613 = vmatprep.mubr.bf16.mxu0 %v6218_v7  ;;  %4746 = vmatpush1.bf16.msra.mxu1 %v5405_v38  ;;  %v5462_v38 = vcombine.high %v1285_v30, %v1289_v33  ;;  %v5461_v3 = vcombine.low %v1285_v30, %v1289_v33  ;;  %v1329_v14 = vld [vmem:[#allocation9 + $0x738] sm:$0xff] }
 0x292   :  { %4777 = vmatprep.mubr.bf16.mxu1 %v6218_v7  ;;  %4583 = vmatprep.subr.bf16.mxu0 %v5412_v39  ;;  %v5427_v7 = vcombine.low %v1252_v52, %v1256_v53  ;;  %v1292_v39 = vld [vmem:[#allocation9 + $0x610] sm:$0xff]  ;;  %v1301_v52 = vld [vmem:[#allocation9 + $0x658] sm:$0xff]  ;;  %v5501_v33 = vcombine.low %v1325_v13, %v1329_v14 }
 0x293   :  { %4747 = vmatprep.subr.bf16.mxu1 %v5414_v46  ;;  %v1297_v46 = vld [vmem:[#allocation9 + $0x638] sm:$0xff]  ;;  %v5467_v36 = vcombine.low %v1292_v39, %v1296_v41 }
 0x294   :  { %4584 = vmatpush1.bf16.msra.mxu0 %v5411_v49  ;;  %v5468_v49 = vcombine.high %v1292_v39, %v1296_v41  ;;  %v1305_v53 = vld [vmem:[#allocation9 + $0x678] sm:$0xff]  ;;  %v5469_v54 = vcombine.low %v1293_v45, %v1297_v46 }
 0x295   :  { %4748 = vmatpush1.bf16.msra.mxu1 %v5413_v24  ;;  %4585 = vmatprep.subr.bf16.mxu0 %v5420_v50  ;;  %v5470_v24 = vcombine.high %v1293_v45, %v1297_v46  ;;  %v1300_v50 = vld [vmem:[#allocation9 + $0x650] sm:$0xff]  ;;  %v5477_v62 = vcombine.low %v1301_v52, %v1305_v53  ;;  %v1333_v22 = vld [vmem:[#allocation9 + $0x758] sm:$0xff] }
 0x296   :  { %4749 = vmatprep.subr.bf16.mxu1 %v5422_v51  ;;  %v1304_v51 = vld [vmem:[#allocation9 + $0x670] sm:$0xff]  ;;  %v1337_v28 = vld [vmem:[#allocation9 + $0x778] sm:$0xff] }
 0x297   :  { %v5475_v60 = vcombine.low %v1300_v50, %v1304_v51  ;;  %v1341_v39 = vld [vmem:[#allocation9 + $0x798] sm:$0xff]  ;;  %v5509_v46 = vcombine.low %v1333_v22, %v1337_v28 }
 0x298   :  { %4586 = vmatpush1.bf16.msra.mxu0 %v5419_v56  ;;  %v5476_v56 = vcombine.high %v1300_v50, %v1304_v51  ;;  %v1345_v41 = vld [vmem:[#allocation9 + $0x7b8] sm:$0xff] }
 0x299   :  { %4750 = vmatpush1.bf16.msra.mxu1 %v5421_v44  ;;  %4587 = vmatprep.subr.bf16.mxu0 %v5428_v58  ;;  %v5478_v44 = vcombine.high %v1301_v52, %v1305_v53  ;;  %v1308_v58 = vld [vmem:[#allocation9 + $0x690] sm:$0xff]  ;;  %v1349_v50 = vld [vmem:[#allocation9 + $0x7d8] sm:$0xff]  ;;  %v5517_v53 = vcombine.low %v1341_v39, %v1345_v41 }
 0x29a   :  { %4751 = vmatprep.subr.bf16.mxu1 %v5430_v26  ;;  %v1312_v26 = vld [vmem:[#allocation9 + $0x6b0] sm:$0xff]  ;;  %v1353_v51 = vld [vmem:[#allocation9 + $0x7f8] sm:$0xff] }
 0x29b   :  { %v5483_v40 = vcombine.low %v1308_v58, %v1312_v26 }
 0x29c   :  { %4588 = vmatpush1.bf16.msra.mxu0 %v5427_v7  ;;  %v5484_v7 = vcombine.high %v1308_v58, %v1312_v26  ;;  %v1357_v58 = vld [vmem:[#allocation9 + $0x818] sm:$0xff] }
 0x29d   :  { %4752 = vmatpush1.bf16.msra.mxu1 %v5429_v63  ;;  %4589 = vmatprep.subr.bf16.mxu0 %v5436_v4  ;;  %v5486_v63 = vcombine.high %v1309_v59, %v1313_v0  ;;  %v1316_v4 = vld [vmem:[#allocation9 + $0x6d0] sm:$0xff]  ;;  %v1361_v26 = vld [vmem:[#allocation9 + $0x838] sm:$0xff]  ;;  %v5525_v0 = vcombine.low %v1349_v50, %v1353_v51 }
 0x29e   :  { %4753 = vmatprep.subr.bf16.mxu1 %v5438_v55  ;;  %v1320_v55 = vld [vmem:[#allocation9 + $0x6f0] sm:$0xff] }
 0x29f   :  { %v5491_v17 = vcombine.low %v1316_v4, %v1320_v55 }
 0x2a0   :  { %4590 = vmatpush1.bf16.msra.mxu0 %v5435_v5  ;;  %v5492_v5 = vcombine.high %v1316_v4, %v1320_v55  ;;  %v1365_v55 = vld [vmem:[#allocation9 + $0x858] sm:$0xff] }
 0x2a1   :  { %4754 = vmatpush1.bf16.msra.mxu1 %v5437_v6  ;;  %4591 = vmatprep.subr.bf16.mxu0 %v5444_v10  ;;  %v5494_v6 = vcombine.high %v1317_v8, %v1321_v61  ;;  %v1324_v10 = vld [vmem:[#allocation9 + $0x710] sm:$0xff]  ;;  %v1369_v8 = vld [vmem:[#allocation9 + $0x878] sm:$0xff]  ;;  %v5533_v61 = vcombine.low %v1357_v58, %v1361_v26 }
 0x2a2   :  { %4755 = vmatprep.subr.bf16.mxu1 %v5446_v11  ;;  %v1328_v11 = vld [vmem:[#allocation9 + $0x730] sm:$0xff] }
 0x2a3   :  { %v5499_v30 = vcombine.low %v1324_v10, %v1328_v11 }
 0x2a4   :  { %4592 = vmatpush1.bf16.msra.mxu0 %v5443_v43  ;;  %v5500_v43 = vcombine.high %v1324_v10, %v1328_v11  ;;  %v1373_v10 = vld [vmem:[#allocation9 + $0x898] sm:$0xff] }
 0x2a5   :  { %4756 = vmatpush1.bf16.msra.mxu1 %v5445_v19  ;;  %4593 = vmatprep.subr.bf16.mxu0 %v5452_v20  ;;  %v5502_v19 = vcombine.high %v1325_v13, %v1329_v14  ;;  %v1332_v20 = vld [vmem:[#allocation9 + $0x750] sm:$0xff]  ;;  %v1377_v11 = vld [vmem:[#allocation9 + $0x8b8] sm:$0xff]  ;;  %v5541_v14 = vcombine.low %v1365_v55, %v1369_v8 }
 0x2a6   :  { %4757 = vmatprep.subr.bf16.mxu1 %v5454_v21  ;;  %v1336_v21 = vld [vmem:[#allocation9 + $0x770] sm:$0xff] }
 0x2a7   :  { %v5507_v45 = vcombine.low %v1332_v20, %v1336_v21 }
 0x2a8   :  { %4594 = vmatpush1.bf16.msra.mxu0 %v5451_v34  ;;  %v5508_v34 = vcombine.high %v1332_v20, %v1336_v21  ;;  %v1381_v20 = vld [vmem:[#allocation9 + $0x8d8] sm:$0xff] }
 0x2a9   :  { %4758 = vmatpush1.bf16.msra.mxu1 %v5453_v35  ;;  %4595 = vmatprep.subr.bf16.mxu0 %v5460_v37  ;;  %v5510_v35 = vcombine.high %v1333_v22, %v1337_v28  ;;  %v1340_v37 = vld [vmem:[#allocation9 + $0x790] sm:$0xff]  ;;  %v1385_v21 = vld [vmem:[#allocation9 + $0x8f8] sm:$0xff] }
 0x2aa   :  { %4759 = vmatprep.subr.bf16.mxu1 %v5462_v38  ;;  %v1344_v38 = vld [vmem:[#allocation9 + $0x7b0] sm:$0xff] }
 0x2ab   :  { %v5515_v52 = vcombine.low %v1340_v37, %v1344_v38 }
 0x2ac   :  { %4596 = vmatpush1.bf16.msra.mxu0 %v5459_v48  ;;  %v5516_v48 = vcombine.high %v1340_v37, %v1344_v38  ;;  %v1393_v37 = vld [vmem:[#allocation9 + $0x938] sm:$0xff]  ;;  %v5557_v38 = vcombine.low %v1381_v20, %v1385_v21 }
 0x2ad   :  { %4760 = vmatpush1.bf16.msra.mxu1 %v5461_v3  ;;  %4597 = vmatprep.subr.bf16.mxu0 %v5468_v49  ;;  %v5518_v3 = vcombine.high %v1341_v39, %v1345_v41  ;;  %v1348_v49 = vld [vmem:[#allocation9 + $0x7d0] sm:$0xff] }
 0x2ae   :  { %4761 = vmatprep.subr.bf16.mxu1 %v5470_v24  ;;  %v1352_v24 = vld [vmem:[#allocation9 + $0x7f0] sm:$0xff] }
 0x2af   :  { %v5523_v59 = vcombine.low %v1348_v49, %v1352_v24 }
 0x2b0   :  { %4598 = vmatpush1.bf16.msra.mxu0 %v5467_v36  ;;  %v5524_v36 = vcombine.high %v1348_v49, %v1352_v24 }
 0x2b1   :  { %4762 = vmatpush1.bf16.msra.mxu1 %v5469_v54  ;;  %4599 = vmatprep.subr.bf16.mxu0 %v5476_v56  ;;  %v5526_v54 = vcombine.high %v1349_v50, %v1353_v51  ;;  %v1356_v56 = vld [vmem:[#allocation9 + $0x810] sm:$0xff] }
 0x2b2   :  { %4763 = vmatprep.subr.bf16.mxu1 %v5478_v44  ;;  %v1360_v44 = vld [vmem:[#allocation9 + $0x830] sm:$0xff] }
 0x2b3   :  { %v5531_v4 = vcombine.low %v1356_v56, %v1360_v44 }
 0x2b4   :  { %4600 = vmatpush1.bf16.msra.mxu0 %v5475_v60  ;;  %v5532_v60 = vcombine.high %v1356_v56, %v1360_v44 }
 0x2b5   :  { %4764 = vmatpush1.bf16.msra.mxu1 %v5477_v62  ;;  %4601 = vmatprep.subr.bf16.mxu0 %v5484_v7  ;;  %v5534_v62 = vcombine.high %v1357_v58, %v1361_v26  ;;  %v1364_v7 = vld [vmem:[#allocation9 + $0x850] sm:$0xff] }
 0x2b6   :  { %4765 = vmatprep.subr.bf16.mxu1 %v5486_v63  ;;  %v1368_v63 = vld [vmem:[#allocation9 + $0x870] sm:$0xff] }
 0x2b7   :  { %v5539_v13 = vcombine.low %v1364_v7, %v1368_v63 }
 0x2b8   :  { %4602 = vmatpush1.bf16.msra.mxu0 %v5483_v40  ;;  %v5540_v40 = vcombine.high %v1364_v7, %v1368_v63 }
 0x2b9   :  { %4766 = vmatpush1.bf16.msra.mxu1 %v5485_v2  ;;  %4603 = vmatprep.subr.bf16.mxu0 %v5492_v5  ;;  %v1372_v2 = vld [vmem:[#allocation9 + $0x890] sm:$0xff] }
 0x2ba   :  { %4767 = vmatprep.subr.bf16.mxu1 %v5494_v6  ;;  %v1376_v5 = vld [vmem:[#allocation9 + $0x8b0] sm:$0xff]  ;;  %v5542_v6 = vcombine.high %v1365_v55, %v1369_v8 }
 0x2bb   :  { %v5547_v22 = vcombine.low %v1372_v2, %v1376_v5  ;;  %v1420_v8 = vld [vmem:[#allocation9 + $0xa10] sm:$0xff] }
 0x2bc   :  { %4604 = vmatpush1.bf16.msra.mxu0 %v5491_v17  ;;  %v5548_v17 = vcombine.high %v1372_v2, %v1376_v5  ;;  %v1425_v2 = vld [vmem:[#allocation9 + $0xa38] sm:$0xff] }
 0x2bd   :  { %4768 = vmatpush1.bf16.msra.mxu1 %v5493_v18  ;;  %4605 = vmatprep.subr.bf16.mxu0 %v5500_v43  ;;  %v5550_v18 = vcombine.high %v1373_v10, %v1377_v11  ;;  %v1380_v43 = vld [vmem:[#allocation9 + $0x8d0] sm:$0xff] }
 0x2be   :  { %4769 = vmatprep.subr.bf16.mxu1 %v5502_v19  ;;  %v1384_v19 = vld [vmem:[#allocation9 + $0x8f0] sm:$0xff] }
 0x2bf   :  { %v5556_v28 = vcombine.high %v1380_v43, %v1384_v19 }
 0x2c0   :  { %4606 = vmatpush1.bf16.msra.mxu0 %v5499_v30  ;;  %v5558_v30 = vcombine.high %v1381_v20, %v1385_v21 }
 0x2c1   :  { %4770 = vmatpush1.bf16.msra.mxu1 %v5501_v33  ;;  %4607 = vmatprep.subr.bf16.mxu0 %v5508_v34  ;;  %v1388_v33 = vld [vmem:[#allocation9 + $0x910] sm:$0xff] }
 0x2c2   :  { %4771 = vmatprep.subr.bf16.mxu1 %v5510_v35  ;;  %v1392_v34 = vld [vmem:[#allocation9 + $0x930] sm:$0xff]  ;;  %v1389_v35 = vld [vmem:[#allocation9 + $0x918] sm:$0xff] }
 0x2c3   :  { %v5564_v39 = vcombine.high %v1388_v33, %v1392_v34  ;;  %v5566_v41 = vcombine.high %v1389_v35, %v1393_v37  ;;  %v5563_v49 = vcombine.low %v1388_v33, %v1392_v34  ;;  %v5565_v24 = vcombine.low %v1389_v35, %v1393_v37 }
 0x2c4   :  { %4608 = vmatpush1.bf16.msra.mxu0 %v5507_v45  ;;  %v1396_v45 = vld [vmem:[#allocation9 + $0x950] sm:$0xff] }
 0x2c5   :  { %4772 = vmatpush1.bf16.msra.mxu1 %v5509_v46  ;;  %4609 = vmatprep.subr.bf16.mxu0 %v5516_v48  ;;  %v1400_v46 = vld [vmem:[#allocation9 + $0x970] sm:$0xff]  ;;  %v1397_v48 = vld [vmem:[#allocation9 + $0x958] sm:$0xff] }
 0x2c6   :  { %4773 = vmatprep.subr.bf16.mxu1 %v5518_v3  ;;  %v1401_v3 = vld [vmem:[#allocation9 + $0x978] sm:$0xff]  ;;  %v5572_v50 = vcombine.high %v1396_v45, %v1400_v46  ;;  %v5571_v56 = vcombine.low %v1396_v45, %v1400_v46 }
 0x2c7   :  { %v5574_v51 = vcombine.high %v1397_v48, %v1401_v3  ;;  %v5573_v44 = vcombine.low %v1397_v48, %v1401_v3 }
 0x2c8   :  { %4610 = vmatpush1.bf16.msra.mxu0 %v5515_v52  ;;  %v1404_v52 = vld [vmem:[#allocation9 + $0x990] sm:$0xff] }
 0x2c9   :  { %4774 = vmatpush1.bf16.msra.mxu1 %v5517_v53  ;;  %4611 = vmatprep.subr.bf16.mxu0 %v5524_v36  ;;  %v1408_v53 = vld [vmem:[#allocation9 + $0x9b0] sm:$0xff]  ;;  %v1405_v36 = vld [vmem:[#allocation9 + $0x998] sm:$0xff] }
 0x2ca   :  { %4775 = vmatprep.subr.bf16.mxu1 %v5526_v54  ;;  %v1409_v54 = vld [vmem:[#allocation9 + $0x9b8] sm:$0xff]  ;;  %v5580_v58 = vcombine.high %v1404_v52, %v1408_v53  ;;  %v5579_v7 = vcombine.low %v1404_v52, %v1408_v53 }
 0x2cb   :  { %v5582_v26 = vcombine.high %v1405_v36, %v1409_v54  ;;  %v5581_v63 = vcombine.low %v1405_v36, %v1409_v54 }
 0x2cc   :  { %4612 = vmatpush1.bf16.msra.mxu0 %v5523_v59  ;;  %v1412_v59 = vld [vmem:[#allocation9 + $0x9d0] sm:$0xff] }
 0x2cd   :  { %4776 = vmatpush1.bf16.msra.mxu1 %v5525_v0  ;;  %4622 = vmatprep.subr.bf16.mxu0 %v5532_v60  ;;  %v1416_v0 = vld [vmem:[#allocation9 + $0x9f0] sm:$0xff]  ;;  %v1413_v60 = vld [vmem:[#allocation9 + $0x9d8] sm:$0xff] }
 0x2ce   :  { %4786 = vmatprep.subr.bf16.mxu1 %v5534_v62  ;;  %v1417_v62 = vld [vmem:[#allocation9 + $0x9f8] sm:$0xff]  ;;  %v5587_v5 = vcombine.low %v1412_v59, %v1416_v0 }
 0x2cf   :  { %4614 = vmatmul.mubr.bf16.vlgmr.msra.gmra.mrb[12].mxu0 %v6233_v15  ;;  %v5590_v55 = vcombine.high %v1413_v60, %v1417_v62 }
 0x2d0   :  { %4778 = vmatmul.mubr.bf16.vlgmr.msra.gmra.mrb[12].mxu1 %v6233_v15  ;;  %4623 = vmatpush1.bf16.msra.mxu0 %v5531_v4  ;;  %v5549_v15 = vcombine.low %v1373_v10, %v1377_v11  ;;  %v5588_v4 = vcombine.high %v1412_v59, %v1416_v0 }
 0x2d1   :  { %4654 = vmatprep.mubr.bf16.mxu0 %v6235_v29  ;;  %4787 = vmatpush1.bf16.msra.mxu1 %v5533_v61  ;;  %v1424_v61 = vld [vmem:[#allocation9 + $0xa30] sm:$0xff] }
 0x2d2   :  { %4818 = vmatprep.mubr.bf16.mxu1 %v6235_v29  ;;  %4624 = vmatprep.subr.bf16.mxu0 %v5540_v40  ;;  %v5555_v29 = vcombine.low %v1380_v43, %v1384_v19  ;;  %v1421_v40 = vld [vmem:[#allocation9 + $0xa18] sm:$0xff]  ;;  %v5596_v10 = vcombine.high %v1420_v8, %v1424_v61  ;;  %v5595_v43 = vcombine.low %v1420_v8, %v1424_v61 }
 0x2d3   :  { %4788 = vmatprep.subr.bf16.mxu1 %v5542_v6  ;;  %v5589_v6 = vcombine.low %v1413_v60, %v1417_v62  ;;  %v5598_v11 = vcombine.high %v1421_v40, %v1425_v2  ;;  %v5597_v19 = vcombine.low %v1421_v40, %v1425_v2 }
 0x2d4   :  { %4625 = vmatpush1.bf16.msra.mxu0 %v5539_v13  ;;  %v1428_v13 = vld [vmem:[#allocation9 + $0xa50] sm:$0xff] }
 0x2d5   :  { %4789 = vmatpush1.bf16.msra.mxu1 %v5541_v14  ;;  %4626 = vmatprep.subr.bf16.mxu0 %v5548_v17  ;;  %v1432_v14 = vld [vmem:[#allocation9 + $0xa70] sm:$0xff]  ;;  %v1429_v17 = vld [vmem:[#allocation9 + $0xa58] sm:$0xff] }
 0x2d6   :  { %4790 = vmatprep.subr.bf16.mxu1 %v5550_v18  ;;  %v1433_v18 = vld [vmem:[#allocation9 + $0xa78] sm:$0xff]  ;;  %v5604_v20 = vcombine.high %v1428_v13, %v1432_v14  ;;  %v5603_v33 = vcombine.low %v1428_v13, %v1432_v14 }
 0x2d7   :  { %v5606_v21 = vcombine.high %v1429_v17, %v1433_v18  ;;  %v5605_v34 = vcombine.low %v1429_v17, %v1433_v18 }
 0x2d8   :  { %4627 = vmatpush1.bf16.msra.mxu0 %v5547_v22  ;;  %v1436_v22 = vld [vmem:[#allocation9 + $0xa90] sm:$0xff] }
 0x2d9   :  { %4791 = vmatpush1.bf16.msra.mxu1 %v5549_v15  ;;  %4628 = vmatprep.subr.bf16.mxu0 %v5556_v28  ;;  %v1440_v15 = vld [vmem:[#allocation9 + $0xab0] sm:$0xff]  ;;  %v1437_v28 = vld [vmem:[#allocation9 + $0xa98] sm:$0xff] }
 0x2da   :  { %4792 = vmatprep.subr.bf16.mxu1 %v5558_v30  ;;  %v1441_v30 = vld [vmem:[#allocation9 + $0xab8] sm:$0xff]  ;;  %v5612_v35 = vcombine.high %v1436_v22, %v1440_v15  ;;  %v5611_v45 = vcombine.low %v1436_v22, %v1440_v15 }
 0x2db   :  { %v5614_v37 = vcombine.high %v1437_v28, %v1441_v30  ;;  %v5613_v46 = vcombine.low %v1437_v28, %v1441_v30 }
 0x2dc   :  { %4629 = vmatpush1.bf16.msra.mxu0 %v5555_v29  ;;  %v1444_v29 = vld [vmem:[#allocation9 + $0xad0] sm:$0xff] }
 0x2dd   :  { %4793 = vmatpush1.bf16.msra.mxu1 %v5557_v38  ;;  %4630 = vmatprep.subr.bf16.mxu0 %v5564_v39  ;;  %v1448_v38 = vld [vmem:[#allocation9 + $0xaf0] sm:$0xff]  ;;  %v1445_v39 = vld [vmem:[#allocation9 + $0xad8] sm:$0xff] }
 0x2de   :  { %4794 = vmatprep.subr.bf16.mxu1 %v5566_v41  ;;  %v1449_v41 = vld [vmem:[#allocation9 + $0xaf8] sm:$0xff]  ;;  %v5620_v48 = vcombine.high %v1444_v29, %v1448_v38  ;;  %v5619_v52 = vcombine.low %v1444_v29, %v1448_v38 }
 0x2df   :  { %v5622_v3 = vcombine.high %v1445_v39, %v1449_v41  ;;  %v5621_v53 = vcombine.low %v1445_v39, %v1449_v41  ;;  %v1497_v29 = vld [vmem:[#allocation9 + $0xc78] sm:$0xff]  ;;  %v1500_v41 = vld [vmem:[#allocation9 + $0xc90] sm:$0xff] }
 0x2e0   :  { %4631 = vmatpush1.bf16.msra.mxu0 %v5563_v49  ;;  %v1452_v49 = vld [vmem:[#allocation9 + $0xb10] sm:$0xff] }
 0x2e1   :  { %4795 = vmatpush1.bf16.msra.mxu1 %v5565_v24  ;;  %4632 = vmatprep.subr.bf16.mxu0 %v5572_v50  ;;  %v1456_v24 = vld [vmem:[#allocation9 + $0xb30] sm:$0xff]  ;;  %v1453_v50 = vld [vmem:[#allocation9 + $0xb18] sm:$0xff] }
 0x2e2   :  { %4796 = vmatprep.subr.bf16.mxu1 %v5574_v51  ;;  %v1457_v51 = vld [vmem:[#allocation9 + $0xb38] sm:$0xff]  ;;  %v5628_v36 = vcombine.high %v1452_v49, %v1456_v24  ;;  %v5627_v59 = vcombine.low %v1452_v49, %v1456_v24 }
 0x2e3   :  { %v5630_v54 = vcombine.high %v1453_v50, %v1457_v51  ;;  %v5629_v0 = vcombine.low %v1453_v50, %v1457_v51 }
 0x2e4   :  { %4633 = vmatpush1.bf16.msra.mxu0 %v5571_v56  ;;  %v1460_v56 = vld [vmem:[#allocation9 + $0xb50] sm:$0xff] }
 0x2e5   :  { %4797 = vmatpush1.bf16.msra.mxu1 %v5573_v44  ;;  %4634 = vmatprep.subr.bf16.mxu0 %v5580_v58  ;;  %v1464_v44 = vld [vmem:[#allocation9 + $0xb70] sm:$0xff]  ;;  %v1461_v58 = vld [vmem:[#allocation9 + $0xb58] sm:$0xff] }
 0x2e6   :  { %4798 = vmatprep.subr.bf16.mxu1 %v5582_v26  ;;  %v1465_v26 = vld [vmem:[#allocation9 + $0xb78] sm:$0xff]  ;;  %v5636_v60 = vcombine.high %v1460_v56, %v1464_v44  ;;  %v5635_v8 = vcombine.low %v1460_v56, %v1464_v44 }
 0x2e7   :  { %v5638_v62 = vcombine.high %v1461_v58, %v1465_v26  ;;  %v5637_v61 = vcombine.low %v1461_v58, %v1465_v26  ;;  %v1516_v26 = vld [vmem:[#allocation9 + $0xd10] sm:$0xff] }
 0x2e8   :  { %4635 = vmatpush1.bf16.msra.mxu0 %v5579_v7  ;;  %v1468_v7 = vld [vmem:[#allocation9 + $0xb90] sm:$0xff] }
 0x2e9   :  { %4799 = vmatpush1.bf16.msra.mxu1 %v5581_v63  ;;  %4636 = vmatprep.subr.bf16.mxu0 %v5588_v4  ;;  %v1472_v63 = vld [vmem:[#allocation9 + $0xbb0] sm:$0xff]  ;;  %v1469_v4 = vld [vmem:[#allocation9 + $0xb98] sm:$0xff] }
 0x2ea   :  { %4800 = vmatprep.subr.bf16.mxu1 %v5590_v55  ;;  %v1473_v55 = vld [vmem:[#allocation9 + $0xbb8] sm:$0xff]  ;;  %v5644_v40 = vcombine.high %v1468_v7, %v1472_v63  ;;  %v5643_v13 = vcombine.low %v1468_v7, %v1472_v63 }
 0x2eb   :  { %v5646_v2 = vcombine.high %v1469_v4, %v1473_v55  ;;  %v5645_v14 = vcombine.low %v1469_v4, %v1473_v55  ;;  %v1524_v4 = vld [vmem:[#allocation9 + $0xd50] sm:$0xff] }
 0x2ec   :  { %4637 = vmatpush1.bf16.msra.mxu0 %v5587_v5  ;;  %v1476_v5 = vld [vmem:[#allocation9 + $0xbd0] sm:$0xff] }
 0x2ed   :  { %4801 = vmatpush1.bf16.msra.mxu1 %v5589_v6  ;;  %4638 = vmatprep.subr.bf16.mxu0 %v5596_v10  ;;  %v1480_v6 = vld [vmem:[#allocation9 + $0xbf0] sm:$0xff]  ;;  %v1477_v10 = vld [vmem:[#allocation9 + $0xbd8] sm:$0xff] }
 0x2ee   :  { %4802 = vmatprep.subr.bf16.mxu1 %v5598_v11  ;;  %v1481_v11 = vld [vmem:[#allocation9 + $0xbf8] sm:$0xff]  ;;  %v5652_v17 = vcombine.high %v1476_v5, %v1480_v6  ;;  %v5651_v22 = vcombine.low %v1476_v5, %v1480_v6  ;;  %v1528_v55 = vld [vmem:[#allocation9 + $0xd70] sm:$0xff] }
 0x2ef   :  { %v5654_v18 = vcombine.high %v1477_v10, %v1481_v11  ;;  %v5653_v15 = vcombine.low %v1477_v10, %v1481_v11  ;;  %v5700_v5 = vcombine.high %v1524_v4, %v1528_v55  ;;  %v1532_v10 = vld [vmem:[#allocation9 + $0xd90] sm:$0xff] }
 0x2f0   :  { %4639 = vmatpush1.bf16.msra.mxu0 %v5595_v43  ;;  %v1484_v43 = vld [vmem:[#allocation9 + $0xc10] sm:$0xff] }
 0x2f1   :  { %4803 = vmatpush1.bf16.msra.mxu1 %v5597_v19  ;;  %4640 = vmatprep.subr.bf16.mxu0 %v5604_v20  ;;  %v1488_v19 = vld [vmem:[#allocation9 + $0xc30] sm:$0xff]  ;;  %v1485_v20 = vld [vmem:[#allocation9 + $0xc18] sm:$0xff] }
 0x2f2   :  { %4804 = vmatprep.subr.bf16.mxu1 %v5606_v21  ;;  %v1489_v21 = vld [vmem:[#allocation9 + $0xc38] sm:$0xff]  ;;  %v5660_v28 = vcombine.high %v1484_v43, %v1488_v19  ;;  %v1536_v11 = vld [vmem:[#allocation9 + $0xdb0] sm:$0xff] }
 0x2f3   :  { %v5662_v30 = vcombine.high %v1485_v20, %v1489_v21  ;;  %v5661_v38 = vcombine.low %v1485_v20, %v1489_v21 }
 0x2f4   :  { %4641 = vmatpush1.bf16.msra.mxu0 %v5603_v33  ;;  %v1492_v33 = vld [vmem:[#allocation9 + $0xc50] sm:$0xff] }
 0x2f5   :  { %4805 = vmatpush1.bf16.msra.mxu1 %v5605_v34  ;;  %4642 = vmatprep.subr.bf16.mxu0 %v5612_v35  ;;  %v1496_v34 = vld [vmem:[#allocation9 + $0xc70] sm:$0xff]  ;;  %v5659_v35 = vcombine.low %v1484_v43, %v1488_v19  ;;  %v5708_v43 = vcombine.high %v1532_v10, %v1536_v11 }
 0x2f6   :  { %4806 = vmatprep.subr.bf16.mxu1 %v5614_v37  ;;  %v1493_v37 = vld [vmem:[#allocation9 + $0xc58] sm:$0xff]  ;;  %v5668_v39 = vcombine.high %v1492_v33, %v1496_v34  ;;  %v5667_v49 = vcombine.low %v1492_v33, %v1496_v34 }
 0x2f7   :  { %v5669_v24 = vcombine.low %v1493_v37, %v1497_v29  ;;  %v1541_v33 = vld [vmem:[#allocation9 + $0xdd8] sm:$0xff] }
 0x2f8   :  { %4643 = vmatpush1.bf16.msra.mxu0 %v5611_v45  ;;  %v1504_v45 = vld [vmem:[#allocation9 + $0xcb0] sm:$0xff]  ;;  %v1545_v34 = vld [vmem:[#allocation9 + $0xdf8] sm:$0xff] }
 0x2f9   :  { %4807 = vmatpush1.bf16.msra.mxu1 %v5613_v46  ;;  %4644 = vmatprep.subr.bf16.mxu0 %v5620_v48  ;;  %v5670_v46 = vcombine.high %v1493_v37, %v1497_v29  ;;  %v1501_v48 = vld [vmem:[#allocation9 + $0xc98] sm:$0xff]  ;;  %v5676_v50 = vcombine.high %v1500_v41, %v1504_v45  ;;  %v5675_v56 = vcombine.low %v1500_v41, %v1504_v45 }
 0x2fa   :  { %4808 = vmatprep.subr.bf16.mxu1 %v5622_v3  ;;  %v1505_v3 = vld [vmem:[#allocation9 + $0xcb8] sm:$0xff]  ;;  %v5707_v29 = vcombine.low %v1532_v10, %v1536_v11 }
 0x2fb   :  { %v5678_v51 = vcombine.high %v1501_v48, %v1505_v3 }
 0x2fc   :  { %4645 = vmatpush1.bf16.msra.mxu0 %v5619_v52  ;;  %v1508_v52 = vld [vmem:[#allocation9 + $0xcd0] sm:$0xff] }
 0x2fd   :  { %4809 = vmatpush1.bf16.msra.mxu1 %v5621_v53  ;;  %4646 = vmatprep.subr.bf16.mxu0 %v5628_v36  ;;  %v1512_v53 = vld [vmem:[#allocation9 + $0xcf0] sm:$0xff]  ;;  %v1509_v36 = vld [vmem:[#allocation9 + $0xcd8] sm:$0xff] }
 0x2fe   :  { %4810 = vmatprep.subr.bf16.mxu1 %v5630_v54  ;;  %v1513_v54 = vld [vmem:[#allocation9 + $0xcf8] sm:$0xff]  ;;  %v5684_v44 = vcombine.high %v1508_v52, %v1512_v53 }
 0x2ff   :  { %v5686_v58 = vcombine.high %v1509_v36, %v1513_v54 }
 0x300   :  { %4647 = vmatpush1.bf16.msra.mxu0 %v5627_v59  ;;  %v1520_v59 = vld [vmem:[#allocation9 + $0xd30] sm:$0xff] }
 0x301   :  { %4811 = vmatpush1.bf16.msra.mxu1 %v5629_v0  ;;  %4648 = vmatprep.subr.bf16.mxu0 %v5636_v60  ;;  %v1517_v0 = vld [vmem:[#allocation9 + $0xd18] sm:$0xff]  ;;  %v5692_v7 = vcombine.high %v1516_v26, %v1520_v59 }
 0x302   :  { %4812 = vmatprep.subr.bf16.mxu1 %v5638_v62  ;;  %v1521_v60 = vld [vmem:[#allocation9 + $0xd38] sm:$0xff]  ;;  %v5685_v62 = vcombine.low %v1509_v36, %v1513_v54  ;;  %v1556_v36 = vld [vmem:[#allocation9 + $0xe50] sm:$0xff] }
 0x303   :  { %v5694_v63 = vcombine.high %v1517_v0, %v1521_v60  ;;  %v1560_v54 = vld [vmem:[#allocation9 + $0xe70] sm:$0xff] }
 0x304   :  { %4649 = vmatpush1.bf16.msra.mxu0 %v5635_v8  ;;  %v1525_v8 = vld [vmem:[#allocation9 + $0xd58] sm:$0xff] }
 0x305   :  { %4813 = vmatpush1.bf16.msra.mxu1 %v5637_v61  ;;  %4650 = vmatprep.subr.bf16.mxu0 %v5644_v40  ;;  %v1529_v61 = vld [vmem:[#allocation9 + $0xd78] sm:$0xff]  ;;  %v5691_v40 = vcombine.low %v1516_v26, %v1520_v59  ;;  %v5732_v26 = vcombine.high %v1556_v36, %v1560_v54 }
 0x306   :  { %4814 = vmatprep.subr.bf16.mxu1 %v5646_v2  ;;  %v5693_v2 = vcombine.low %v1517_v0, %v1521_v60  ;;  %v5702_v6 = vcombine.high %v1525_v8, %v1529_v61  ;;  %v1564_v0 = vld [vmem:[#allocation9 + $0xe90] sm:$0xff] }
 0x307   :  { %v1568_v60 = vld [vmem:[#allocation9 + $0xeb0] sm:$0xff] }
 0x308   :  { %4651 = vmatpush1.bf16.msra.mxu0 %v5643_v13  ;;  %v1533_v13 = vld [vmem:[#allocation9 + $0xd98] sm:$0xff] }
 0x309   :  { %4815 = vmatpush1.bf16.msra.mxu1 %v5645_v14  ;;  %4652 = vmatprep.subr.bf16.mxu0 %v5652_v17  ;;  %v1537_v14 = vld [vmem:[#allocation9 + $0xdb8] sm:$0xff]  ;;  %v5699_v17 = vcombine.low %v1524_v4, %v1528_v55  ;;  %v5740_v4 = vcombine.high %v1564_v0, %v1568_v60 }
 0x30a   :  { %4816 = vmatprep.subr.bf16.mxu1 %v5654_v18  ;;  %v5701_v18 = vcombine.low %v1525_v8, %v1529_v61  ;;  %v5710_v21 = vcombine.high %v1533_v13, %v1537_v14  ;;  %v5709_v41 = vcombine.low %v1533_v13, %v1537_v14  ;;  %v1572_v8 = vld [vmem:[#allocation9 + $0xed0] sm:$0xff] }
 0x30b   :  { %v1576_v61 = vld [vmem:[#allocation9 + $0xef0] sm:$0xff] }
 0x30c   :  { %4653 = vmatpush1.bf16.msra.mxu0 %v5651_v22  ;;  %v1540_v22 = vld [vmem:[#allocation9 + $0xdd0] sm:$0xff]  ;;  %v5748_v10 = vcombine.high %v1572_v8, %v1576_v61 }
 0x30d   :  { %4817 = vmatpush1.bf16.msra.mxu1 %v5653_v15  ;;  %4663 = vmatprep.subr.bf16.mxu0 %v5660_v28  ;;  %v1544_v15 = vld [vmem:[#allocation9 + $0xdf0] sm:$0xff] }
 0x30e   :  { %4827 = vmatprep.subr.bf16.mxu1 %v5662_v30  ;;  %v5716_v45 = vcombine.high %v1540_v22, %v1544_v15  ;;  %v1580_v13 = vld [vmem:[#allocation9 + $0xf10] sm:$0xff] }
 0x30f   :  { %4655 = vmatmul.mubr.bf16.vlgmr.msra.gmra.mrb[12].mxu0 %v6255_v9  ;;  %v1584_v14 = vld [vmem:[#allocation9 + $0xf30] sm:$0xff] }
 0x310   :  { %4819 = vmatmul.mubr.bf16.vlgmr.msra.gmra.mrb[12].mxu1 %v6255_v9  ;;  %4664 = vmatpush1.bf16.msra.mxu0 %v5659_v35  ;;  %v5677_v9 = vcombine.low %v1501_v48, %v1505_v3  ;;  %v1548_v48 = vld [vmem:[#allocation9 + $0xe10] sm:$0xff] }
 0x311   :  { %4695 = vmatprep.mubr.bf16.mxu0 %v6257_v12  ;;  %4828 = vmatpush1.bf16.msra.mxu1 %v5661_v38  ;;  %v1552_v3 = vld [vmem:[#allocation9 + $0xe30] sm:$0xff] }
 0x312   :  { %4859 = vmatprep.mubr.bf16.mxu1 %v6257_v12  ;;  %4665 = vmatprep.subr.bf16.mxu0 %v5668_v39  ;;  %v5683_v12 = vcombine.low %v1508_v52, %v1512_v53  ;;  %v5724_v52 = vcombine.high %v1548_v48, %v1552_v3 }
 0x313   :  { %4829 = vmatprep.subr.bf16.mxu1 %v5670_v46  ;;  %v5718_v46 = vcombine.high %v1541_v33, %v1545_v34 }
 0x314   :  { %4666 = vmatpush1.bf16.msra.mxu0 %v5667_v49  ;;  %v1549_v49 = vld [vmem:[#allocation9 + $0xe18] sm:$0xff] }
 0x315   :  { %4830 = vmatpush1.bf16.msra.mxu1 %v5669_v24  ;;  %4667 = vmatprep.subr.bf16.mxu0 %v5676_v50  ;;  %v1553_v24 = vld [vmem:[#allocation9 + $0xe38] sm:$0xff]  ;;  %v5715_v50 = vcombine.low %v1540_v22, %v1544_v15  ;;  %v5756_v22 = vcombine.high %v1580_v13, %v1584_v14  ;;  %v6039_v15 = vmov 1966171168  }
 0x316   :  { %4831 = vmatprep.subr.bf16.mxu1 %v5678_v51  ;;  %v5717_v51 = vcombine.low %v1541_v33, %v1545_v34  ;;  %v5726_v53 = vcombine.high %v1549_v49, %v1553_v24  ;;  %v4898_v33 = vunpack.c.l.s4 %v6039_v15 }
 0x318   :  { %4668 = vmatpush1.bf16.msra.mxu0 %v5675_v56  ;;  %v1557_v56 = vld [vmem:[#allocation9 + $0xe58] sm:$0xff] }
 0x319   :  { %4832 = vmatpush1.bf16.msra.mxu1 %v5677_v9  ;;  %4669 = vmatprep.subr.bf16.mxu0 %v5684_v44  ;;  %v1561_v9 = vld [vmem:[#allocation9 + $0xe78] sm:$0xff]  ;;  %v5723_v44 = vcombine.low %v1548_v48, %v1552_v3  ;;  %v4899_v48 = vunpack.c.0.s8 %v4898_v33 }
 0x31a   :  { %4833 = vmatprep.subr.bf16.mxu1 %v5686_v58  ;;  %v5725_v58 = vcombine.low %v1549_v49, %v1553_v24  ;;  %v5734_v59 = vcombine.high %v1557_v56, %v1561_v9  ;;  %v1596_v49 = vld [vmem:[#allocation9 + $0xf90] sm:$0xff] }
 0x31b   :  { %v1600_v24 = vld [vmem:[#allocation9 + $0xfb0] sm:$0xff] }
 0x31c   :  { %4670 = vmatpush1.bf16.msra.mxu0 %v5683_v12  ;;  %v1565_v12 = vld [vmem:[#allocation9 + $0xe98] sm:$0xff] }
 0x31d   :  { %4834 = vmatpush1.bf16.msra.mxu1 %v5685_v62  ;;  %4671 = vmatprep.subr.bf16.mxu0 %v5692_v7  ;;  %v1569_v62 = vld [vmem:[#allocation9 + $0xeb8] sm:$0xff]  ;;  %v5731_v7 = vcombine.low %v1556_v36, %v1560_v54  ;;  %v5772_v54 = vcombine.high %v1596_v49, %v1600_v24 }
 0x31e   :  { %4835 = vmatprep.subr.bf16.mxu1 %v5694_v63  ;;  %v5733_v63 = vcombine.low %v1557_v56, %v1561_v9  ;;  %v5742_v55 = vcombine.high %v1565_v12, %v1569_v62  ;;  %v6299_v56 = vsub.s32 %v4899_v48, %v6185_v23 }
 0x320   :  { %4672 = vmatpush1.bf16.msra.mxu0 %v5691_v40  ;;  %v1573_v40 = vld [vmem:[#allocation9 + $0xed8] sm:$0xff] }
 0x321   :  { %4836 = vmatpush1.bf16.msra.mxu1 %v5693_v2  ;;  %4673 = vmatprep.subr.bf16.mxu0 %v5700_v5  ;;  %v1577_v2 = vld [vmem:[#allocation9 + $0xef8] sm:$0xff]  ;;  %v5739_v5 = vcombine.low %v1564_v0, %v1568_v60 }
 0x322   :  { %v6285_v19 = vpop.f32.mrb[8].mxu0  ;;  %v6287_v20 = vpop.f32.mrb[8].mxu1  ;;  %4837 = vmatprep.subr.bf16.mxu1 %v5702_v6  ;;  %v5741_v6 = vcombine.low %v1565_v12, %v1569_v62  ;;  %v5750_v11 = vcombine.high %v1573_v40, %v1577_v2  ;;  %v1609_v0 = vld [vmem:[#allocation9 + $0xff8] sm:$0xff] }
 0x323   :  { %v6289_v28 = vpop.f32.mrb[9].mxu0  ;;  %v6291_v30 = vpop.f32.mrb[9].mxu1 }
 0x324   :  { %v4373_v35 = vpop.f32.mrb[10].mxu0  ;;  %v4537_v37 = vpop.f32.mrb[10].mxu1  ;;  %4674 = vmatpush1.bf16.msra.mxu0 %v5699_v17  ;;  %v1581_v17 = vld [vmem:[#allocation9 + $0xf18] sm:$0xff] }
 0x325   :  { %4838 = vmatpush1.bf16.msra.mxu1 %v5701_v18  ;;  %v4374_v38 = vpop.f32.mrb[11].mxu0  ;;  %v4538_v39 = vpop.f32.mrb[11].mxu1  ;;  %4675 = vmatprep.subr.bf16.mxu0 %v5708_v43  ;;  %v1585_v18 = vld [vmem:[#allocation9 + $0xf38] sm:$0xff]  ;;  %v5747_v43 = vcombine.low %v1572_v8, %v1576_v61  ;;  %v1588_v35 = vld [vmem:[#allocation9 + $0xf50] sm:$0xff] }
 0x326   :  { %4839 = vmatprep.subr.bf16.mxu1 %v5710_v21  ;;  %v5749_v21 = vcombine.low %v1573_v40, %v1577_v2  ;;  %v5758_v34 = vcombine.high %v1581_v17, %v1585_v18  ;;  %v1592_v37 = vld [vmem:[#allocation9 + $0xf70] sm:$0xff]  ;;  %v1593_v38 = vld [vmem:[#allocation9 + $0xf78] sm:$0xff]  ;;  %v5755_v39 = vcombine.low %v1580_v13, %v1584_v14 }
 0x328   :  { %4676 = vmatpush1.bf16.msra.mxu0 %v5707_v29  ;;  %v1589_v29 = vld [vmem:[#allocation9 + $0xf58] sm:$0xff] }
 0x329   :  { %4840 = vmatpush1.bf16.msra.mxu1 %v5709_v41  ;;  %4677 = vmatprep.subr.bf16.mxu0 %v5716_v45  ;;  %v6293_v41 = vld [vmem:[#allocation11] sm:$0xff]  ;;  %v5757_v45 = vcombine.low %v1581_v17, %v1585_v18  ;;  %v5766_v3 = vcombine.high %v1589_v29, %v1593_v38  ;;  %v5765_v36 = vcombine.low %v1589_v29, %v1593_v38 }
 0x32a   :  { %4841 = vmatprep.subr.bf16.mxu1 %v5718_v46  ;;  %v5764_v46 = vcombine.high %v1588_v35, %v1592_v37  ;;  %v1643_v29 = vrot.slane %v6293_v41, %v268_v31 }
 0x32c   :  { %4678 = vmatpush1.bf16.msra.mxu0 %v5715_v50  ;;  %v1597_v50 = vld [vmem:[#allocation9 + $0xf98] sm:$0xff] }
 0x32d   :  { %4842 = vmatpush1.bf16.msra.mxu1 %v5717_v51  ;;  %4679 = vmatprep.subr.bf16.mxu0 %v5724_v52  ;;  %v1601_v51 = vld [vmem:[#allocation9 + $0xfb8] sm:$0xff]  ;;  %v1619_v52 = vrot.slane %v6293_v41, %v244_v27  ;;  %v5771_v27 = vcombine.low %v1596_v49, %v1600_v24 }
 0x32e   :  { %4843 = vmatprep.subr.bf16.mxu1 %v5726_v53  ;;  %v5763_v53 = vcombine.low %v1588_v35, %v1592_v37  ;;  %v5774_v9 = vcombine.high %v1597_v50, %v1601_v51  ;;  %v5773_v12 = vcombine.low %v1597_v50, %v1601_v51  ;;  %v1631_v35 = vrot.slane %v6293_v41, %v256_v16 }
 0x32f   :  { %v5784_v60 = vadd.f32 %v6289_v28, %v1619_v52  ;;  %v1627_v28 = vrot.slane %v6293_v41, %v252_v42  ;;  %v1623_v42 = vrot.slane %v6293_v41, %v248_v32  ;;  %v1635_v37 = vrot.slane %v6293_v41, %v260_v47 }
 0x330   :  { %4680 = vmatpush1.bf16.msra.mxu0 %v5723_v44  ;;  %v1604_v44 = vld [vmem:[#allocation9 + $0xfd0] sm:$0xff]  ;;  %v1639_v16 = vrot.slane %v6293_v41, %v264_v1 }
 0x331   :  { %4844 = vmatpush1.bf16.msra.mxu1 %v5725_v58  ;;  %4681 = vmatprep.subr.bf16.mxu0 %v5732_v26  ;;  %v1608_v58 = vld [vmem:[#allocation9 + $0xff0] sm:$0xff]  ;;  %v4876_v26 = vld [vmem:[#allocation12] sm:$0xff]  ;;  %v5785_v14 = vadd.f32 %v6287_v20, %v1623_v42  ;;  %v4885_v20 = vld [vmem:[#allocation2] sm:$0x1] }
 0x332   :  { %4845 = vmatprep.subr.bf16.mxu1 %v5734_v59  ;;  %v1605_v59 = vld [vmem:[#allocation9 + $0xfd8] sm:$0xff]  ;;  %v5780_v62 = vcombine.high %v1604_v44, %v1608_v58  ;;  %v5779_v8 = vcombine.low %v1604_v44, %v1608_v58 }
 0x333   :  { %v5781_v61 = vcombine.low %v1605_v59, %v1609_v0 }
 0x334   :  { %4682 = vmatpush1.bf16.msra.mxu0 %v5731_v7  ;;  %v4903_v7 = vrot.slane %v4876_v26, %v6299_v56 }
 0x335   :  { %4846 = vmatpush1.bf16.msra.mxu1 %v5733_v63  ;;  %4683 = vmatprep.subr.bf16.mxu0 %v5740_v4  ;;  %v5782_v63 = vcombine.high %v1605_v59, %v1609_v0  ;;  %v1615_v4 = vrot.slane %v6293_v41, %v6188_v25 }
 0x336   :  { %4847 = vmatprep.subr.bf16.mxu1 %v5742_v55  ;;  %v4869_v55 = vmax.f32 %v5784_v60, 0.0  ;;  %v4911_v40 = vcombine.high %v4903_v7, %v4903_v7  ;;  %v4919_v18 = vrot.slane %v4903_v7, %v6299_v56 }
 0x337   :  { %v5783_v2 = vadd.f32 %v6285_v19, %v1615_v4 }
 0x338   :  { %4684 = vmatpush1.bf16.msra.mxu0 %v5739_v5  ;;  %v4878_v5 = vpack.c.bf16 %v4869_v55, %v4869_v55  ;;  %v4941_v15 = vcombine.high %v4919_v18, %v4919_v18 }
 0x339   :  { %4848 = vmatpush1.bf16.msra.mxu1 %v5741_v6  ;;  %4685 = vmatprep.subr.bf16.mxu0 %v5748_v10  ;;  %v5786_v6 = vadd.f32 %v6291_v30, %v1627_v28  ;;  %v4933_v10 = vrot.slane %v4911_v40, %v6299_v56  ;;  %v4870_v30 = vmax.f32 %v5785_v14, 0.0 }
 0x33a   :  { %4849 = vmatprep.subr.bf16.mxu1 %v5750_v11  ;;  %v4868_v11 = vmax.f32 %v5783_v2, 0.0 }
 0x33b   :  { %v4871_v13 = vmax.f32 %v5786_v6, 0.0 }
 0x33c   :  { %4686 = vmatpush1.bf16.msra.mxu0 %v5747_v43  ;;  %v4877_v19 = vpack.c.bf16 %v4868_v11, %v4868_v11  ;;  %v4879_v43 = vpack.c.bf16 %v4870_v30, %v4870_v30 }
 0x33d   :  { %4850 = vmatpush1.bf16.msra.mxu1 %v5749_v21  ;;  %4687 = vmatprep.subr.bf16.mxu0 %v5756_v22  ;;  %v4880_v17 = vpack.c.bf16 %v4871_v13, %v4871_v13  ;;  %v4896_v21 = vcombine.high %v4876_v26, %v4876_v26  ;;  %v4943_v22 = vcombine.high %v4933_v10, %v4933_v10 }
 0x33e   :  { %4851 = vmatprep.subr.bf16.mxu1 %v5758_v34  ;;  %v6040_v34 = vmov 0  }
 0x33f   :  { %v4910_v32 = vrot.slane %v4896_v21, %v6299_v56  ;;  %5860 = vset.pattern.permute.xlu0 %v6040_v34 }
 0x340   :  { %4688 = vmatpush1.bf16.msra.mxu0 %v5755_v39  ;;  %4888 = vperm.xlu0 %5860, %v4885_v20  }
 0x341   :  { %4852 = vmatpush1.bf16.msra.mxu1 %v5757_v45  ;;  %4689 = vmatprep.subr.bf16.mxu0 %v5764_v46  ;;  %v4926_v26 = vrot.slane %v4910_v32, %v6299_v56 }
 0x342   :  { %4853 = vmatprep.subr.bf16.mxu1 %v5766_v3 }
 0x343   :  { %v4942_v1 = vcombine.high %v4926_v26, %v4926_v26 }
 0x344   :  { %4690 = vmatpush1.bf16.msra.mxu0 %v5763_v53 }
 0x345   :  { %4854 = vmatpush1.bf16.msra.mxu1 %v5765_v36  ;;  %4691 = vmatprep.subr.bf16.mxu0 %v5772_v54 }
 0x346   :  { %4855 = vmatprep.subr.bf16.mxu1 %v5774_v9 }
 0x348   :  { %4692 = vmatpush1.bf16.msra.mxu0 %v5771_v27 }
 0x349   :  { %4856 = vmatpush1.bf16.msra.mxu1 %v5773_v12  ;;  %4693 = vmatprep.subr.bf16.mxu0 %v5780_v62 }
 0x34a   :  { %4857 = vmatprep.subr.bf16.mxu1 %v5782_v63 }
 0x34c   :  { %4694 = vmatpush1.bf16.msra.mxu0 %v5779_v8 }
 0x34d   :  { %4858 = vmatpush1.bf16.msra.mxu1 %v5781_v61 }
 0x34e   :  { %4953 = vmatprep.subr.bf16.mxu1 %v4878_v5 }
 0x34f   :  { %4696 = vmatmul.mubr.bf16.vlgmr.msra.gmra.mrb[12].mxu0 %v6267_v57 }
 0x350   :  { %4860 = vmatmul.mubr.bf16.vlgmr.msra.gmra.mrb[12].mxu1 %v6267_v57  ;;  %v4912_v57 = vcombine.high %v4910_v32, %v4910_v32 }
 0x351   :  { %4985 = vmatprep.mubr.bf16.mxu1 %v4933_v10 }
 0x352   :  { %v4940_v33 = vrot.slane %v4912_v57, %v6299_v56 }
 0x354   :  { %5065 = vmatprep.mubr.bf16.mxu0 %v4940_v33  ;;  %v4944_v59 = vcombine.high %v4940_v33, %v4940_v33 }
 0x356   :  { %4954 = vmatpush1.bf16.xpose.msra.mxu1 %v4877_v19 }
 0x357   :  { %4993 = vmatprep.subr.bf16.mxu1 %v4880_v17 }
 0x35d   :  { %4986 = vmatmul.mubr.bf16.vlgmr.msra.gmra.mrb[16].mxu1 %v4919_v18 }
 0x35e   :  { %4994 = vmatpush1.bf16.xpose.msra.mxu1 %v4879_v43  ;;  %5025 = vmatprep.mubr.bf16.mxu1 %v4943_v22 }
 0x369   :  { %5026 = vmatmul.mubr.bf16.vlgmr.msra.gmra.mrb[16].mxu1 %v4941_v15 }
 0x3bf   :  { %v4889_v12 = vpop.permute.xlu0 %4888 }
 0x3c0   :  { %v4894_v62 = vrot.slane %v4889_v12, %v6188_v25 }
 0x422   :  { %v4697_v38 = vpop.f32.mrb[12].mxu0 }
 0x423   :  { %v5787_v39 = vadd.f32 %v4697_v38, %v1631_v35  ;;  %v4861_v45 = vpop.f32.mrb[12].mxu1  ;;  %v4699_v46 = vpop.f32.mrb[13].mxu0 }
 0x424   :  { %v5788_v48 = vadd.f32 %v4699_v46, %v1635_v37  ;;  %v4863_v3 = vpop.f32.mrb[13].mxu1  ;;  %v4701_v49 = vpop.f32.mrb[14].mxu0  ;;  %v5789_v9 = vadd.f32 %v4861_v45, %v1639_v16 }
 0x425   :  { %v4872_v24 = vmax.f32 %v5787_v39, 0.0  ;;  %v5790_v50 = vadd.f32 %v4863_v3, %v1643_v29  ;;  %v4865_v51 = vpop.f32.mrb[14].mxu1  ;;  %v4702_v52 = vpop.f32.mrb[15].mxu0 }
 0x426   :  { %v4873_v47 = vmax.f32 %v5788_v48, 0.0  ;;  %v4866_v53 = vpop.f32.mrb[15].mxu1  ;;  %v4874_v58 = vmax.f32 %v5789_v9, 0.0 }
 0x427   :  { %v4875_v36 = vmax.f32 %v5790_v50, 0.0  ;;  %v4881_v31 = vpack.c.bf16 %v4872_v24, %v4872_v24 }
 0x428   :  { %v4882_v54 = vpack.c.bf16 %v4873_v47, %v4873_v47  ;;  %v4883_v23 = vpack.c.bf16 %v4874_v58, %v4874_v58 }
 0x429   :  { %v4884_v44 = vpack.c.bf16 %v4875_v36, %v4875_v36 }
 0x42a   :  { %5033 = vmatprep.subr.bf16.mxu0 %v4882_v54 }
 0x42b   :  { %5034 = vmatpush1.bf16.xpose.msra.mxu0 %v4881_v31 }
 0x42c   :  { %5073 = vmatprep.subr.bf16.mxu0 %v4884_v44 }
 0x432   :  { %5066 = vmatmul.mubr.bf16.vlgmr.msra.gmra.mrb[16].mxu0 %v4926_v26 }
 0x433   :  { %5074 = vmatpush1.bf16.xpose.msra.mxu0 %v4883_v23  ;;  %5105 = vmatprep.mubr.bf16.mxu0 %v4944_v59 }
 0x43c   :  { %v5027_v41 = vpop.f32.mrb[16].mxu1 }
 0x43d   :  { %v5029_v0 = vpop.f32.mrb[17].mxu1  ;;  %v5791_v7 = vadd.f32 %v5027_v41, %v4894_v62 }
 0x43e   :  { %5106 = vmatmul.mubr.bf16.vlgmr.msra.gmra.mrb[16].mxu0 %v4942_v1  ;;  %v5030_v60 = vpop.f32.mrb[18].mxu1 }
 0x43f   :  { %v5031_v27 = vpop.f32.mrb[19].mxu1 }
 0x511   :  { %v5107_v63 = vpop.f32.mrb[16].mxu0 }
 0x512   :  { %v5792_v4 = vadd.f32 %v5791_v7, %v5107_v63  ;;  %v5109_v55 = vpop.f32.mrb[17].mxu0 }
 0x513   :  { %v5110_v8 = vpop.f32.mrb[18].mxu0 }
 0x514   :  { %v5113_v56 = vand.u32 2147483647, %v5792_v4  ;;  %v5111_v28 = vpop.f32.mrb[19].mxu0  ;;  %vm5117_vm1 = vcmp.ge.f32.partialorder %v5792_v4, 0.0 }
 0x516   :  { %v5114_v61 = vsub.f32 0.0, %v5113_v56 }
 0x518   :  { %v5115_v40 = vmul.f32 1.442695, %v5114_v61 }
 0x51a   :  { %5862 = vpow2.f32 %v5115_v40 }
 0x524   :  { %v5863_v2 = vpop.eup %5862 }
 0x525   :  { %v5118_v5 = vadd.f32 1.0, %v5863_v2 }
 0x527   :  { %5864 = vrcp.f32 %v5118_v5 }
 0x531   :  { %v5865_v6 = vpop.eup %5864 }
 0x532   :  { %v5121_v10 = vmul.f32 %v5865_v6, %v5863_v2 }
 0x534   :  { %v5122_v25 = vsel %vm5117_vm1, %v5865_v6, %v5121_v10 }
 0x535   :  { %5124 = vst.msk [vmem:[#allocation14] sm:$0x1] %vm5123_vm0, %v5122_v25 }
 0x536   :  { %6010 = shalt.err (!%p6007_p10)
}
 0x537   :  { %s6011_s19 = scalar_lea.hbm %s6353_s7, 16 }
 0x538   :  { %p6012_p11 = scmp.ne.s32.totalorder %s6353_s7, %s6011_s19  ;;  %p6015_p12 = scmp.lt.u32.totalorder %s6011_s19, %s6353_s7 }
 0x53a   :  { %p6017_p13 = pnand %p6015_p12, %p6012_p11 }
 0x53c   :  { %6020 = shalt.err (!%p6017_p13)
}
 0x53d   :  { %5134 = dma.vmem_to_hbm [thread:$0]  %s5132_s22, 16, %s6353_s7, [#allocation5]  }
 0x53e   :  { %6029 = dma.done.wait [#allocation5], 16  }
 0x53f   :  { %6030 = vsyncadd [#allocation5], 4294967280 }
 0x540   :  { %5138 = vsyncpa [#allocation4], 1 }
 0x541   :  { %5139 = vsyncpa [#allocation7], 1 }
 0x542   :  { %5140 = vsyncpa [#allocation10], 1 }
 0x543   :  { %5141 = vsyncpa [#allocation13], 1 }
 0x544   :  { %5142 = vsyncpa [#allocation5], 1 }

</bundles_post_ra>
